<compile_context>
chip_gen: v7x
topology: tpu7x:2x2x1
jax: 0.10.0
libtpu: 0.0.40
codegen_flags: <defaults>
</compile_context>

<pallas_src>
import functools

import jax
import jax.numpy as jnp
import numpy as np
from jax.experimental import pallas as pl
from jax.experimental.pallas import tpu as pltpu

DENSE_LAYER_SIZE = 128
EVALUATION_OUTPUT_SIZE = 32
LSTM_HIDDEN_SIZE = 64
LSTM_PAD = 128            # hidden padded to a full vreg lane width
NUM_LAYERS = 1

VMEM_SPEC = pl.BlockSpec(memory_space=pltpu.MemorySpace.VMEM)


# ----------------------------------------------------------------------------
# Weight preparation (done ONCE, outside the forward / kernel)
# ----------------------------------------------------------------------------
def _conv3x3_relu_pool_dense(w, b, H, W):
    """Dense (Toeplitz) matrix for Conv2d(3x3, stride=1, pad=1).

    Input rows are in NCHW-flatten (cin, H, W) order.  Output columns are
    ordered (dy, dx, cout, H//2, W//2), where the conv output spatial position
    is (2*py + dy, 2*px + dx).  With this layout the subsequent 2x2 max-pool is
    just the elementwise max of four lane-aligned column blocks, and the pooled
    result is already in NCHW-flatten (cout, H//2, W//2) order.
    """
    w = np.asarray(w, np.float32)          # (cout, cin, 3, 3)
    b = np.asarray(b, np.float32)          # (cout,)
    cout, cin = w.shape[:2]
    Hp, Wp = H // 2, W // 2
    D = np.zeros((cin, H, W, 2, 2, cout, Hp, Wp), np.float32)
    for ky in range(3):
        for kx in range(3):
            wt = w[:, :, ky, kx].T         # (cin, cout)
            for oy in range(H):
                iy = oy + ky - 1
                if iy < 0 or iy >= H:
                    continue
                py, dy = divmod(oy, 2)
                for ox in range(W):
                    ix = ox + kx - 1
                    if ix < 0 or ix >= W:
                        continue
                    px, dx = divmod(ox, 2)
                    D[:, iy, ix, dy, dx, :, py, px] += wt
    dense = D.reshape(cin * H * W, 4 * cout * Hp * Wp)
    bias = np.tile(np.repeat(b, Hp * Wp), 4).reshape(1, 4 * cout * Hp * Wp)
    return jnp.asarray(dense), jnp.asarray(bias)


def _pad_lstm(w_ih, w_hh, b_ih, b_hh, hid, hpad):
    """Pad LSTM weights so every gate occupies a full 128-lane block."""
    w_ih = np.asarray(w_ih, np.float32)    # (4*hid, in)
    w_hh = np.asarray(w_hh, np.float32)    # (4*hid, hid)
    b = np.asarray(b_ih, np.float32) + np.asarray(b_hh, np.float32)
    din = w_ih.shape[1]
    wih_p = np.zeros((4 * hpad, din), np.float32)
    whh_p = np.zeros((4 * hpad, hpad), np.float32)
    b_p = np.zeros((4 * hpad,), np.float32)
    for k in range(4):                     # gate order i, f, g, o (PyTorch)
        wih_p[k * hpad:k * hpad + hid] = w_ih[k * hid:(k + 1) * hid]
        whh_p[k * hpad:k * hpad + hid, :hid] = w_hh[k * hid:(k + 1) * hid]
        b_p[k * hpad:k * hpad + hid] = b[k * hid:(k + 1) * hid]
    return (jnp.asarray(wih_p.T),          # (in, 4*hpad)
            jnp.asarray(whh_p.T),          # (hpad, 4*hpad)
            jnp.asarray(b_p.reshape(1, 4 * hpad)))


def prepare_params(params, board_hw=(8, 8)):
    H, W = board_hw
    c1d, c1b = _conv3x3_relu_pool_dense(params["conv1_w"], params["conv1_b"], H, W)
    c2d, c2b = _conv3x3_relu_pool_dense(params["conv2_w"], params["conv2_b"],
                                        H // 2, W // 2)
    eval_wT = jnp.asarray(np.asarray(params["eval_w"], np.float32).T)
    eval_b = jnp.asarray(np.asarray(params["eval_b"], np.float32).reshape(1, -1))

    d1w = np.asarray(params["d1_w"], np.float32)         # (128, 256 + 32)
    npos = params["conv2_w"].shape[0] * (H // 4) * (W // 4)   # 64 * 2 * 2 = 256
    d1_pos_wT = jnp.asarray(d1w[:, :npos].T)              # (256, 128)
    d1_eval_wT = jnp.asarray(d1w[:, npos:].T)             # (32, 128)
    d1_b = jnp.asarray(np.asarray(params["d1_b"], np.float32).reshape(1, -1))

    wih_T, whh_T, lstm_b = _pad_lstm(params["lstm_w_ih"], params["lstm_w_hh"],
                                     params["lstm_b_ih"], params["lstm_b_hh"],
                                     LSTM_HIDDEN_SIZE, LSTM_PAD)

    d2w = np.asarray(params["d2_w"], np.float32)          # (num_classes, hid)
    d2w_p = np.zeros((LSTM_PAD, d2w.shape[0]), np.float32)
    d2w_p[:LSTM_HIDDEN_SIZE, :] = d2w.T
    d2_wT = jnp.asarray(d2w_p)                            # (128, num_classes)
    d2_b = jnp.asarray(np.asarray(params["d2_b"], np.float32).reshape(1, -1))

    return dict(conv1_dense=c1d, conv1_bias=c1b,
                conv2_dense=c2d, conv2_bias=c2b,
                eval_wT=eval_wT, eval_b=eval_b,
                d1_pos_wT=d1_pos_wT, d1_eval_wT=d1_eval_wT, d1_b=d1_b,
                lstm_wih_T=wih_T, lstm_whh_T=whh_T, lstm_b=lstm_b,
                d2_wT=d2_wT, d2_b=d2_b)


# ----------------------------------------------------------------------------
# Fused forward kernel (single program, everything resident in VMEM)
# ----------------------------------------------------------------------------
def _elo_fused_kernel(pos_ref, ev_ref, h0_ref, c0_ref,
                      c1d_ref, c1b_ref, c2d_ref, c2b_ref,
                      we_ref, be_ref, wd1p_ref, wd1e_ref, bd1_ref,
                      wih_ref, whh_ref, bl_ref, wd2_ref, bd2_ref,
                      out_ref, hn_ref, cn_ref, *, seq, hid, hpad):
    f32 = jnp.float32

    def mm(a, b):
        return jnp.dot(a, b, preferred_element_type=f32)

    def pool_quarters(y):
        # 2x2 max-pool == max of four lane-aligned column blocks.
        s = y.shape[1] // 4
        return jnp.maximum(jnp.maximum(y[:, 0:s], y[:, s:2 * s]),
                           jnp.maximum(y[:, 2 * s:3 * s], y[:, 3 * s:4 * s]))

    # conv1 + ReLU + pool : one MXU matmul, K=64, N=2048
    y1 = jnp.maximum(mm(pos_ref[...], c1d_ref[...]) + c1b_ref[...], 0.0)
    p1 = pool_quarters(y1)                            # (B, 512), (c,h,w) order
    # conv2 + ReLU + pool : one MXU matmul, K=512, N=1024
    y2 = jnp.maximum(mm(p1, c2d_ref[...]) + c2b_ref[...], 0.0)
    p2 = pool_quarters(y2)                            # (B, 256) == Flatten NCHW
    # evaluation parser (Linear + ReLU)
    pe = jnp.maximum(mm(ev_ref[...], we_ref[...]) + be_ref[...], 0.0)   # (B, 32)
    # dense_layer1 with the concat folded into two accumulating matmuls
    lstm_in = mm(p2, wd1p_ref[...]) + mm(pe, wd1e_ref[...]) + bd1_ref[...]  # (B,128)

    # LSTM: input projection hoisted to one M=seq matmul; hidden padded to 128.
    gx = mm(lstm_in, wih_ref[...]) + bl_ref[...]      # (seq, 4*hpad)
    whh = whh_ref[...]
    h = h0_ref[...]                                   # (1, hpad), upper lanes 0
    c = c0_ref[...]
    for t in range(seq):                              # static unrolled recurrence
        gates = gx[t:t + 1, :] + mm(h, whh)           # (1, 4*hpad)
        i = jax.nn.sigmoid(gates[:, 0:hpad])
        f = jax.nn.sigmoid(gates[:, hpad:2 * hpad])
        g = jnp.tanh(gates[:, 2 * hpad:3 * hpad])
        o = jax.nn.sigmoid(gates[:, 3 * hpad:4 * hpad])
        c = f * c + i * g                             # padded lanes stay exactly 0
        h = o * jnp.tanh(c)

    # dense_layer2 + Softmax head (eval mode)
    z = mm(h, wd2_ref[...]) + bd2_ref[...]            # (1, num_classes)
    z = z - jnp.max(z, axis=-1, keepdims=True)
    e = jnp.exp(z)
    out_ref[...] = (e / jnp.sum(e, axis=-1, keepdims=True)).astype(out_ref.dtype)
    hn_ref[...] = h[:, :hid].astype(hn_ref.dtype)
    cn_ref[...] = c[:, :hid].astype(cn_ref.dtype)


def elo_guesser_forward(prepped, position, evaluation, h0=None, c0=None):
    # position: (B, C, 8, 8) NCHW ; evaluation: (B, input_size)
    B = position.shape[0]
    pos_flat = position.astype(jnp.float32).reshape(B, -1)    # NCHW flatten
    ev = evaluation.astype(jnp.float32)
    if h0 is None:
        h0 = jnp.zeros((NUM_LAYERS, 1, LSTM_HIDDEN_SIZE), jnp.float32)
    if c0 is None:
        c0 = jnp.zeros((NUM_LAYERS, 1, LSTM_HIDDEN_SIZE), jnp.float32)
    h0p = jnp.zeros((1, LSTM_PAD), jnp.float32).at[:, :LSTM_HIDDEN_SIZE].set(h0[0])
    c0p = jnp.zeros((1, LSTM_PAD), jnp.float32).at[:, :LSTM_HIDDEN_SIZE].set(c0[0])
    num_classes = prepped["d2_wT"].shape[1]

    kernel = functools.partial(_elo_fused_kernel, seq=B,
                               hid=LSTM_HIDDEN_SIZE, hpad=LSTM_PAD)
    out, hn, cn = pl.pallas_call(
        kernel,
        out_shape=(jax.ShapeDtypeStruct((1, num_classes), jnp.float32),
                   jax.ShapeDtypeStruct((1, LSTM_HIDDEN_SIZE), jnp.float32),
                   jax.ShapeDtypeStruct((1, LSTM_HIDDEN_SIZE), jnp.float32)),
        in_specs=[VMEM_SPEC] * 18,
        out_specs=(VMEM_SPEC, VMEM_SPEC, VMEM_SPEC),
    )(pos_flat, ev, h0p, c0p,
      prepped["conv1_dense"], prepped["conv1_bias"],
      prepped["conv2_dense"], prepped["conv2_bias"],
      prepped["eval_wT"], prepped["eval_b"],
      prepped["d1_pos_wT"], prepped["d1_eval_wT"], prepped["d1_b"],
      prepped["lstm_wih_T"], prepped["lstm_whh_T"], prepped["lstm_b"],
      prepped["d2_wT"], prepped["d2_b"])
    return out, (hn.reshape(NUM_LAYERS, 1, LSTM_HIDDEN_SIZE),
                 cn.reshape(NUM_LAYERS, 1, LSTM_HIDDEN_SIZE))


# ----------------------------------------------------------------------------
# Pure-JAX reference for correctness checking
# ----------------------------------------------------------------------------
def reference_forward(params, position, evaluation):
    x = position.astype(jnp.float32)

    def conv(x, w, b):
        y = jax.lax.conv_general_dilated(
            x, w, (1, 1), ((1, 1), (1, 1)),
            dimension_numbers=("NCHW", "OIHW", "NCHW"))
        return jax.nn.relu(y + b[None, :, None, None])

    def pool(x):
        return jax.lax.reduce_window(x, -jnp.inf, jax.lax.max,
                                     (1, 1, 2, 2), (1, 1, 2, 2), "VALID")

    y = pool(conv(x, params["conv1_w"], params["conv1_b"]))
    y = pool(conv(y, params["conv2_w"], params["conv2_b"]))
    parsed_position = y.reshape(y.shape[0], -1)
    parsed_eval = jax.nn.relu(evaluation @ params["eval_w"].T + params["eval_b"])
    combined = jnp.concatenate([parsed_position, parsed_eval], axis=-1)
    lstm_in = combined @ params["d1_w"].T + params["d1_b"]
    H = LSTM_HIDDEN_SIZE
    wih, whh = params["lstm_w_ih"], params["lstm_w_hh"]
    b = params["lstm_b_ih"] + params["lstm_b_hh"]

    def step(carry, xt):
        h, c = carry
        g = xt @ wih.T + h @ whh.T + b
        i = jax.nn.sigmoid(g[:H])
        f = jax.nn.sigmoid(g[H:2 * H])
        gg = jnp.tanh(g[2 * H:3 * H])
        o = jax.nn.sigmoid(g[3 * H:])
        c = f * c + i * gg
        h = o * jnp.tanh(c)
        return (h, c), h

    (h, c), _ = jax.lax.scan(step, (jnp.zeros(H), jnp.zeros(H)), lstm_in)
    z = h @ params["d2_w"].T + params["d2_b"]
    out = jax.nn.softmax(z[None, :], axis=-1)
    return out, h, c


if __name__ == "__main__":
    key = jax.random.PRNGKey(0)
    B, C, Hb, Wb = 8, 1, 8, 8          # 8 board positions (LSTM seq), 8x8 board
    input_size = 8
    k_in, k_ev, kp = jax.random.split(key, 3)
    position = jax.random.normal(k_in, (B, C, Hb, Wb), jnp.float32)
    evaluation = jax.random.normal(k_ev, (B, input_size), jnp.float32)

    keys = jax.random.split(kp, 14)

    def init(k, shape, scale=0.1):
        return scale * jax.random.normal(k, shape, jnp.float32)

    params = {
        "conv1_w": init(keys[0], (32, C, 3, 3)),
        "conv1_b": init(keys[1], (32,)),
        "conv2_w": init(keys[2], (64, 32, 3, 3)),
        "conv2_b": init(keys[3], (64,)),
        "eval_w": init(keys[4], (EVALUATION_OUTPUT_SIZE, input_size)),
        "eval_b": init(keys[5], (EVALUATION_OUTPUT_SIZE,)),
        "d1_w": init(keys[6], (DENSE_LAYER_SIZE, EVALUATION_OUTPUT_SIZE + 256)),
        "d1_b": init(keys[7], (DENSE_LAYER_SIZE,)),
        "lstm_w_ih": init(keys[8], (4 * LSTM_HIDDEN_SIZE, DENSE_LAYER_SIZE)),
        "lstm_w_hh": init(keys[9], (4 * LSTM_HIDDEN_SIZE, LSTM_HIDDEN_SIZE)),
        "lstm_b_ih": init(keys[10], (4 * LSTM_HIDDEN_SIZE,)),
        "lstm_b_hh": init(keys[11], (4 * LSTM_HIDDEN_SIZE,)),
        "d2_w": init(keys[12], (1, LSTM_HIDDEN_SIZE)),
        "d2_b": init(keys[13], (1,)),
    }

    prepped = prepare_params(params, board_hw=(Hb, Wb))   # one-time weight prep
    fwd = jax.jit(functools.partial(elo_guesser_forward, prepped))

    out, (hn, cn) = fwd(position, evaluation)
    jax.block_until_ready(out)

    ref_out, ref_h, ref_c = reference_forward(params, position, evaluation)
    assert np.allclose(np.asarray(out), np.asarray(ref_out), atol=1e-4)
    assert np.allclose(np.asarray(hn).ravel(), np.asarray(ref_h), atol=1e-4)
    assert np.allclose(np.asarray(cn).ravel(), np.asarray(ref_c), atol=1e-4)
    print("KERNEL_OK")
</pallas_src>

<mosaic_0001>
module attributes {stable_mosaic.version = 11 : i64} {
  func.func @_elo_fused_kernel(%arg0: memref<8x64xf32, #tpu.memory_space<vmem>>, %arg1: memref<8x8xf32, #tpu.memory_space<vmem>>, %arg2: memref<1x128xf32, #tpu.memory_space<vmem>>, %arg3: memref<1x128xf32, #tpu.memory_space<vmem>>, %arg4: memref<64x2048xf32, #tpu.memory_space<vmem>>, %arg5: memref<1x2048xf32, #tpu.memory_space<vmem>>, %arg6: memref<512x1024xf32, #tpu.memory_space<vmem>>, %arg7: memref<1x1024xf32, #tpu.memory_space<vmem>>, %arg8: memref<8x32xf32, #tpu.memory_space<vmem>>, %arg9: memref<1x32xf32, #tpu.memory_space<vmem>>, %arg10: memref<256x128xf32, #tpu.memory_space<vmem>>, %arg11: memref<32x128xf32, #tpu.memory_space<vmem>>, %arg12: memref<1x128xf32, #tpu.memory_space<vmem>>, %arg13: memref<128x512xf32, #tpu.memory_space<vmem>>, %arg14: memref<128x512xf32, #tpu.memory_space<vmem>>, %arg15: memref<1x512xf32, #tpu.memory_space<vmem>>, %arg16: memref<128x1xf32, #tpu.memory_space<vmem>>, %arg17: memref<1x1xf32, #tpu.memory_space<vmem>>, %arg18: memref<1x1xf32, #tpu.memory_space<vmem>>, %arg19: memref<1x64xf32, #tpu.memory_space<vmem>>, %arg20: memref<1x64xf32, #tpu.memory_space<vmem>>) attributes {dimension_semantics = [], scalar_prefetch = 0 : i64, scratch_operands = 0 : i64, tpu.core_type = #tpu.core_type<tc>} {
    %c0 = arith.constant 0 : index
    %c0_0 = arith.constant 0 : index
    %0 = vector.load %arg0[%c0, %c0_0] : memref<8x64xf32, #tpu.memory_space<vmem>>, vector<8x64xf32>
    %c0_1 = arith.constant 0 : index
    %c0_2 = arith.constant 0 : index
    %1 = vector.load %arg4[%c0_1, %c0_2] : memref<64x2048xf32, #tpu.memory_space<vmem>>, vector<64x2048xf32>
    %cst = arith.constant dense<0.000000e+00> : vector<8x2048xf32>
    %2 = tpu.matmul %0, %1, %cst {dimension_numbers = #tpu.dot_dimension_numbers<[1], [0], [0], [1], [0, 0, 1, 1], [], []>} : vector<8x64xf32>, vector<64x2048xf32>, vector<8x2048xf32> -> vector<8x2048xf32>
    %c0_3 = arith.constant 0 : index
    %c0_4 = arith.constant 0 : index
    %3 = vector.load %arg5[%c0_3, %c0_4] : memref<1x2048xf32, #tpu.memory_space<vmem>>, vector<1x2048xf32>
    %4 = vector.broadcast %3 : vector<1x2048xf32> to vector<8x2048xf32>
    %5 = arith.addf %2, %4 : vector<8x2048xf32>
    %cst_5 = arith.constant 0.000000e+00 : f32
    %6 = vector.broadcast %cst_5 : f32 to vector<8x2048xf32>
    %7 = arith.maximumf %5, %6 : vector<8x2048xf32>
    %8 = vector.extract_strided_slice %7 {offsets = [0, 0], sizes = [8, 512], strides = [1, 1]} : vector<8x2048xf32> to vector<8x512xf32>
    %9 = vector.extract_strided_slice %7 {offsets = [0, 512], sizes = [8, 512], strides = [1, 1]} : vector<8x2048xf32> to vector<8x512xf32>
    %10 = arith.maximumf %8, %9 : vector<8x512xf32>
    %11 = vector.extract_strided_slice %7 {offsets = [0, 1024], sizes = [8, 512], strides = [1, 1]} : vector<8x2048xf32> to vector<8x512xf32>
    %12 = vector.extract_strided_slice %7 {offsets = [0, 1536], sizes = [8, 512], strides = [1, 1]} : vector<8x2048xf32> to vector<8x512xf32>
    %13 = arith.maximumf %11, %12 : vector<8x512xf32>
    %14 = arith.maximumf %10, %13 : vector<8x512xf32>
    %c0_6 = arith.constant 0 : index
    %c0_7 = arith.constant 0 : index
    %15 = vector.load %arg6[%c0_6, %c0_7] : memref<512x1024xf32, #tpu.memory_space<vmem>>, vector<512x1024xf32>
    %cst_8 = arith.constant dense<0.000000e+00> : vector<8x1024xf32>
    %16 = tpu.matmul %14, %15, %cst_8 {dimension_numbers = #tpu.dot_dimension_numbers<[1], [0], [0], [1], [0, 0, 1, 1], [], []>} : vector<8x512xf32>, vector<512x1024xf32>, vector<8x1024xf32> -> vector<8x1024xf32>
    %c0_9 = arith.constant 0 : index
    %c0_10 = arith.constant 0 : index
    %17 = vector.load %arg7[%c0_9, %c0_10] : memref<1x1024xf32, #tpu.memory_space<vmem>>, vector<1x1024xf32>
    %18 = vector.broadcast %17 : vector<1x1024xf32> to vector<8x1024xf32>
    %19 = arith.addf %16, %18 : vector<8x1024xf32>
    %cst_11 = arith.constant 0.000000e+00 : f32
    %20 = vector.broadcast %cst_11 : f32 to vector<8x1024xf32>
    %21 = arith.maximumf %19, %20 : vector<8x1024xf32>
    %22 = vector.extract_strided_slice %21 {offsets = [0, 0], sizes = [8, 256], strides = [1, 1]} : vector<8x1024xf32> to vector<8x256xf32>
    %23 = vector.extract_strided_slice %21 {offsets = [0, 256], sizes = [8, 256], strides = [1, 1]} : vector<8x1024xf32> to vector<8x256xf32>
    %24 = arith.maximumf %22, %23 : vector<8x256xf32>
    %25 = vector.extract_strided_slice %21 {offsets = [0, 512], sizes = [8, 256], strides = [1, 1]} : vector<8x1024xf32> to vector<8x256xf32>
    %26 = vector.extract_strided_slice %21 {offsets = [0, 768], sizes = [8, 256], strides = [1, 1]} : vector<8x1024xf32> to vector<8x256xf32>
    %27 = arith.maximumf %25, %26 : vector<8x256xf32>
    %28 = arith.maximumf %24, %27 : vector<8x256xf32>
    %c0_12 = arith.constant 0 : index
    %c0_13 = arith.constant 0 : index
    %29 = vector.load %arg1[%c0_12, %c0_13] : memref<8x8xf32, #tpu.memory_space<vmem>>, vector<8x8xf32>
    %c0_14 = arith.constant 0 : index
    %c0_15 = arith.constant 0 : index
    %30 = vector.load %arg8[%c0_14, %c0_15] : memref<8x32xf32, #tpu.memory_space<vmem>>, vector<8x32xf32>
    %cst_16 = arith.constant dense<0.000000e+00> : vector<8x32xf32>
    %31 = tpu.matmul %29, %30, %cst_16 {dimension_numbers = #tpu.dot_dimension_numbers<[1], [0], [0], [1], [0, 0, 1, 1], [], []>} : vector<8x8xf32>, vector<8x32xf32>, vector<8x32xf32> -> vector<8x32xf32>
    %c0_17 = arith.constant 0 : index
    %c0_18 = arith.constant 0 : index
    %32 = vector.load %arg9[%c0_17, %c0_18] : memref<1x32xf32, #tpu.memory_space<vmem>>, vector<1x32xf32>
    %33 = vector.broadcast %32 : vector<1x32xf32> to vector<8x32xf32>
    %34 = arith.addf %31, %33 : vector<8x32xf32>
    %cst_19 = arith.constant 0.000000e+00 : f32
    %35 = vector.broadcast %cst_19 : f32 to vector<8x32xf32>
    %36 = arith.maximumf %34, %35 : vector<8x32xf32>
    %c0_20 = arith.constant 0 : index
    %c0_21 = arith.constant 0 : index
    %37 = vector.load %arg10[%c0_20, %c0_21] : memref<256x128xf32, #tpu.memory_space<vmem>>, vector<256x128xf32>
    %cst_22 = arith.constant dense<0.000000e+00> : vector<8x128xf32>
    %38 = tpu.matmul %28, %37, %cst_22 {dimension_numbers = #tpu.dot_dimension_numbers<[1], [0], [0], [1], [0, 0, 1, 1], [], []>} : vector<8x256xf32>, vector<256x128xf32>, vector<8x128xf32> -> vector<8x128xf32>
    %c0_23 = arith.constant 0 : index
    %c0_24 = arith.constant 0 : index
    %39 = vector.load %arg11[%c0_23, %c0_24] : memref<32x128xf32, #tpu.memory_space<vmem>>, vector<32x128xf32>
    %cst_25 = arith.constant dense<0.000000e+00> : vector<8x128xf32>
    %40 = tpu.matmul %36, %39, %cst_25 {dimension_numbers = #tpu.dot_dimension_numbers<[1], [0], [0], [1], [0, 0, 1, 1], [], []>} : vector<8x32xf32>, vector<32x128xf32>, vector<8x128xf32> -> vector<8x128xf32>
    %41 = arith.addf %38, %40 : vector<8x128xf32>
    %c0_26 = arith.constant 0 : index
    %c0_27 = arith.constant 0 : index
    %42 = vector.load %arg12[%c0_26, %c0_27] : memref<1x128xf32, #tpu.memory_space<vmem>>, vector<1x128xf32>
    %43 = vector.broadcast %42 : vector<1x128xf32> to vector<8x128xf32>
    %44 = arith.addf %41, %43 : vector<8x128xf32>
    %c0_28 = arith.constant 0 : index
    %c0_29 = arith.constant 0 : index
    %45 = vector.load %arg13[%c0_28, %c0_29] : memref<128x512xf32, #tpu.memory_space<vmem>>, vector<128x512xf32>
    %cst_30 = arith.constant dense<0.000000e+00> : vector<8x512xf32>
    %46 = tpu.matmul %44, %45, %cst_30 {dimension_numbers = #tpu.dot_dimension_numbers<[1], [0], [0], [1], [0, 0, 1, 1], [], []>} : vector<8x128xf32>, vector<128x512xf32>, vector<8x512xf32> -> vector<8x512xf32>
    %c0_31 = arith.constant 0 : index
    %c0_32 = arith.constant 0 : index
    %47 = vector.load %arg15[%c0_31, %c0_32] : memref<1x512xf32, #tpu.memory_space<vmem>>, vector<1x512xf32>
    %48 = vector.broadcast %47 : vector<1x512xf32> to vector<8x512xf32>
    %49 = arith.addf %46, %48 : vector<8x512xf32>
    %c0_33 = arith.constant 0 : index
    %c0_34 = arith.constant 0 : index
    %50 = vector.load %arg14[%c0_33, %c0_34] : memref<128x512xf32, #tpu.memory_space<vmem>>, vector<128x512xf32>
    %c0_35 = arith.constant 0 : index
    %c0_36 = arith.constant 0 : index
    %51 = vector.load %arg2[%c0_35, %c0_36] : memref<1x128xf32, #tpu.memory_space<vmem>>, vector<1x128xf32>
    %c0_37 = arith.constant 0 : index
    %c0_38 = arith.constant 0 : index
    %52 = vector.load %arg3[%c0_37, %c0_38] : memref<1x128xf32, #tpu.memory_space<vmem>>, vector<1x128xf32>
    %53 = vector.extract_strided_slice %49 {offsets = [0, 0], sizes = [1, 512], strides = [1, 1]} : vector<8x512xf32> to vector<1x512xf32>
    %cst_39 = arith.constant dense<0.000000e+00> : vector<1x512xf32>
    %54 = tpu.matmul %51, %50, %cst_39 {dimension_numbers = #tpu.dot_dimension_numbers<[1], [0], [0], [1], [0, 0, 1, 1], [], []>} : vector<1x128xf32>, vector<128x512xf32>, vector<1x512xf32> -> vector<1x512xf32>
    %55 = arith.addf %53, %54 : vector<1x512xf32>
    %56 = vector.extract_strided_slice %55 {offsets = [0, 0], sizes = [1, 128], strides = [1, 1]} : vector<1x512xf32> to vector<1x128xf32>
    %57 = arith.negf %56 : vector<1x128xf32>
    %58 = math.exp %57 : vector<1x128xf32>
    %cst_40 = arith.constant 1.000000e+00 : f32
    %59 = vector.broadcast %cst_40 : f32 to vector<1x128xf32>
    %60 = arith.addf %59, %58 : vector<1x128xf32>
    %61 = arith.divf %59, %60 : vector<1x128xf32>
    %62 = vector.extract_strided_slice %55 {offsets = [0, 128], sizes = [1, 128], strides = [1, 1]} : vector<1x512xf32> to vector<1x128xf32>
    %63 = arith.negf %62 : vector<1x128xf32>
    %64 = math.exp %63 : vector<1x128xf32>
    %cst_41 = arith.constant 1.000000e+00 : f32
    %65 = vector.broadcast %cst_41 : f32 to vector<1x128xf32>
    %66 = arith.addf %65, %64 : vector<1x128xf32>
    %67 = arith.divf %65, %66 : vector<1x128xf32>
    %68 = vector.extract_strided_slice %55 {offsets = [0, 256], sizes = [1, 128], strides = [1, 1]} : vector<1x512xf32> to vector<1x128xf32>
    %69 = math.tanh %68 : vector<1x128xf32>
    %70 = vector.extract_strided_slice %55 {offsets = [0, 384], sizes = [1, 128], strides = [1, 1]} : vector<1x512xf32> to vector<1x128xf32>
    %71 = arith.negf %70 : vector<1x128xf32>
    %72 = math.exp %71 : vector<1x128xf32>
    %cst_42 = arith.constant 1.000000e+00 : f32
    %73 = vector.broadcast %cst_42 : f32 to vector<1x128xf32>
    %74 = arith.addf %73, %72 : vector<1x128xf32>
    %75 = arith.divf %73, %74 : vector<1x128xf32>
    %76 = arith.mulf %67, %52 : vector<1x128xf32>
    %77 = arith.mulf %61, %69 : vector<1x128xf32>
    %78 = arith.addf %76, %77 : vector<1x128xf32>
    %79 = math.tanh %78 : vector<1x128xf32>
    %80 = arith.mulf %75, %79 : vector<1x128xf32>
    %81 = vector.extract_strided_slice %49 {offsets = [1, 0], sizes = [1, 512], strides = [1, 1]} : vector<8x512xf32> to vector<1x512xf32>
    %cst_43 = arith.constant dense<0.000000e+00> : vector<1x512xf32>
    %82 = tpu.matmul %80, %50, %cst_43 {dimension_numbers = #tpu.dot_dimension_numbers<[1], [0], [0], [1], [0, 0, 1, 1], [], []>} : vector<1x128xf32>, vector<128x512xf32>, vector<1x512xf32> -> vector<1x512xf32>
    %83 = arith.addf %81, %82 : vector<1x512xf32>
    %84 = vector.extract_strided_slice %83 {offsets = [0, 0], sizes = [1, 128], strides = [1, 1]} : vector<1x512xf32> to vector<1x128xf32>
    %85 = arith.negf %84 : vector<1x128xf32>
    %86 = math.exp %85 : vector<1x128xf32>
    %cst_44 = arith.constant 1.000000e+00 : f32
    %87 = vector.broadcast %cst_44 : f32 to vector<1x128xf32>
    %88 = arith.addf %87, %86 : vector<1x128xf32>
    %89 = arith.divf %87, %88 : vector<1x128xf32>
    %90 = vector.extract_strided_slice %83 {offsets = [0, 128], sizes = [1, 128], strides = [1, 1]} : vector<1x512xf32> to vector<1x128xf32>
    %91 = arith.negf %90 : vector<1x128xf32>
    %92 = math.exp %91 : vector<1x128xf32>
    %cst_45 = arith.constant 1.000000e+00 : f32
    %93 = vector.broadcast %cst_45 : f32 to vector<1x128xf32>
    %94 = arith.addf %93, %92 : vector<1x128xf32>
    %95 = arith.divf %93, %94 : vector<1x128xf32>
    %96 = vector.extract_strided_slice %83 {offsets = [0, 256], sizes = [1, 128], strides = [1, 1]} : vector<1x512xf32> to vector<1x128xf32>
    %97 = math.tanh %96 : vector<1x128xf32>
    %98 = vector.extract_strided_slice %83 {offsets = [0, 384], sizes = [1, 128], strides = [1, 1]} : vector<1x512xf32> to vector<1x128xf32>
    %99 = arith.negf %98 : vector<1x128xf32>
    %100 = math.exp %99 : vector<1x128xf32>
    %cst_46 = arith.constant 1.000000e+00 : f32
    %101 = vector.broadcast %cst_46 : f32 to vector<1x128xf32>
    %102 = arith.addf %101, %100 : vector<1x128xf32>
    %103 = arith.divf %101, %102 : vector<1x128xf32>
    %104 = arith.mulf %95, %78 : vector<1x128xf32>
    %105 = arith.mulf %89, %97 : vector<1x128xf32>
    %106 = arith.addf %104, %105 : vector<1x128xf32>
    %107 = math.tanh %106 : vector<1x128xf32>
    %108 = arith.mulf %103, %107 : vector<1x128xf32>
    %109 = vector.extract_strided_slice %49 {offsets = [2, 0], sizes = [1, 512], strides = [1, 1]} : vector<8x512xf32> to vector<1x512xf32>
    %cst_47 = arith.constant dense<0.000000e+00> : vector<1x512xf32>
    %110 = tpu.matmul %108, %50, %cst_47 {dimension_numbers = #tpu.dot_dimension_numbers<[1], [0], [0], [1], [0, 0, 1, 1], [], []>} : vector<1x128xf32>, vector<128x512xf32>, vector<1x512xf32> -> vector<1x512xf32>
    %111 = arith.addf %109, %110 : vector<1x512xf32>
    %112 = vector.extract_strided_slice %111 {offsets = [0, 0], sizes = [1, 128], strides = [1, 1]} : vector<1x512xf32> to vector<1x128xf32>
    %113 = arith.negf %112 : vector<1x128xf32>
    %114 = math.exp %113 : vector<1x128xf32>
    %cst_48 = arith.constant 1.000000e+00 : f32
    %115 = vector.broadcast %cst_48 : f32 to vector<1x128xf32>
    %116 = arith.addf %115, %114 : vector<1x128xf32>
    %117 = arith.divf %115, %116 : vector<1x128xf32>
    %118 = vector.extract_strided_slice %111 {offsets = [0, 128], sizes = [1, 128], strides = [1, 1]} : vector<1x512xf32> to vector<1x128xf32>
    %119 = arith.negf %118 : vector<1x128xf32>
    %120 = math.exp %119 : vector<1x128xf32>
    %cst_49 = arith.constant 1.000000e+00 : f32
    %121 = vector.broadcast %cst_49 : f32 to vector<1x128xf32>
    %122 = arith.addf %121, %120 : vector<1x128xf32>
    %123 = arith.divf %121, %122 : vector<1x128xf32>
    %124 = vector.extract_strided_slice %111 {offsets = [0, 256], sizes = [1, 128], strides = [1, 1]} : vector<1x512xf32> to vector<1x128xf32>
    %125 = math.tanh %124 : vector<1x128xf32>
    %126 = vector.extract_strided_slice %111 {offsets = [0, 384], sizes = [1, 128], strides = [1, 1]} : vector<1x512xf32> to vector<1x128xf32>
    %127 = arith.negf %126 : vector<1x128xf32>
    %128 = math.exp %127 : vector<1x128xf32>
    %cst_50 = arith.constant 1.000000e+00 : f32
    %129 = vector.broadcast %cst_50 : f32 to vector<1x128xf32>
    %130 = arith.addf %129, %128 : vector<1x128xf32>
    %131 = arith.divf %129, %130 : vector<1x128xf32>
    %132 = arith.mulf %123, %106 : vector<1x128xf32>
    %133 = arith.mulf %117, %125 : vector<1x128xf32>
    %134 = arith.addf %132, %133 : vector<1x128xf32>
    %135 = math.tanh %134 : vector<1x128xf32>
    %136 = arith.mulf %131, %135 : vector<1x128xf32>
    %137 = vector.extract_strided_slice %49 {offsets = [3, 0], sizes = [1, 512], strides = [1, 1]} : vector<8x512xf32> to vector<1x512xf32>
    %cst_51 = arith.constant dense<0.000000e+00> : vector<1x512xf32>
    %138 = tpu.matmul %136, %50, %cst_51 {dimension_numbers = #tpu.dot_dimension_numbers<[1], [0], [0], [1], [0, 0, 1, 1], [], []>} : vector<1x128xf32>, vector<128x512xf32>, vector<1x512xf32> -> vector<1x512xf32>
    %139 = arith.addf %137, %138 : vector<1x512xf32>
    %140 = vector.extract_strided_slice %139 {offsets = [0, 0], sizes = [1, 128], strides = [1, 1]} : vector<1x512xf32> to vector<1x128xf32>
    %141 = arith.negf %140 : vector<1x128xf32>
    %142 = math.exp %141 : vector<1x128xf32>
    %cst_52 = arith.constant 1.000000e+00 : f32
    %143 = vector.broadcast %cst_52 : f32 to vector<1x128xf32>
    %144 = arith.addf %143, %142 : vector<1x128xf32>
    %145 = arith.divf %143, %144 : vector<1x128xf32>
    %146 = vector.extract_strided_slice %139 {offsets = [0, 128], sizes = [1, 128], strides = [1, 1]} : vector<1x512xf32> to vector<1x128xf32>
    %147 = arith.negf %146 : vector<1x128xf32>
    %148 = math.exp %147 : vector<1x128xf32>
    %cst_53 = arith.constant 1.000000e+00 : f32
    %149 = vector.broadcast %cst_53 : f32 to vector<1x128xf32>
    %150 = arith.addf %149, %148 : vector<1x128xf32>
    %151 = arith.divf %149, %150 : vector<1x128xf32>
    %152 = vector.extract_strided_slice %139 {offsets = [0, 256], sizes = [1, 128], strides = [1, 1]} : vector<1x512xf32> to vector<1x128xf32>
    %153 = math.tanh %152 : vector<1x128xf32>
    %154 = vector.extract_strided_slice %139 {offsets = [0, 384], sizes = [1, 128], strides = [1, 1]} : vector<1x512xf32> to vector<1x128xf32>
    %155 = arith.negf %154 : vector<1x128xf32>
    %156 = math.exp %155 : vector<1x128xf32>
    %cst_54 = arith.constant 1.000000e+00 : f32
    %157 = vector.broadcast %cst_54 : f32 to vector<1x128xf32>
    %158 = arith.addf %157, %156 : vector<1x128xf32>
    %159 = arith.divf %157, %158 : vector<1x128xf32>
    %160 = arith.mulf %151, %134 : vector<1x128xf32>
    %161 = arith.mulf %145, %153 : vector<1x128xf32>
    %162 = arith.addf %160, %161 : vector<1x128xf32>
    %163 = math.tanh %162 : vector<1x128xf32>
    %164 = arith.mulf %159, %163 : vector<1x128xf32>
    %165 = vector.extract_strided_slice %49 {offsets = [4, 0], sizes = [1, 512], strides = [1, 1]} : vector<8x512xf32> to vector<1x512xf32>
    %cst_55 = arith.constant dense<0.000000e+00> : vector<1x512xf32>
    %166 = tpu.matmul %164, %50, %cst_55 {dimension_numbers = #tpu.dot_dimension_numbers<[1], [0], [0], [1], [0, 0, 1, 1], [], []>} : vector<1x128xf32>, vector<128x512xf32>, vector<1x512xf32> -> vector<1x512xf32>
    %167 = arith.addf %165, %166 : vector<1x512xf32>
    %168 = vector.extract_strided_slice %167 {offsets = [0, 0], sizes = [1, 128], strides = [1, 1]} : vector<1x512xf32> to vector<1x128xf32>
    %169 = arith.negf %168 : vector<1x128xf32>
    %170 = math.exp %169 : vector<1x128xf32>
    %cst_56 = arith.constant 1.000000e+00 : f32
    %171 = vector.broadcast %cst_56 : f32 to vector<1x128xf32>
    %172 = arith.addf %171, %170 : vector<1x128xf32>
    %173 = arith.divf %171, %172 : vector<1x128xf32>
    %174 = vector.extract_strided_slice %167 {offsets = [0, 128], sizes = [1, 128], strides = [1, 1]} : vector<1x512xf32> to vector<1x128xf32>
    %175 = arith.negf %174 : vector<1x128xf32>
    %176 = math.exp %175 : vector<1x128xf32>
    %cst_57 = arith.constant 1.000000e+00 : f32
    %177 = vector.broadcast %cst_57 : f32 to vector<1x128xf32>
    %178 = arith.addf %177, %176 : vector<1x128xf32>
    %179 = arith.divf %177, %178 : vector<1x128xf32>
    %180 = vector.extract_strided_slice %167 {offsets = [0, 256], sizes = [1, 128], strides = [1, 1]} : vector<1x512xf32> to vector<1x128xf32>
    %181 = math.tanh %180 : vector<1x128xf32>
    %182 = vector.extract_strided_slice %167 {offsets = [0, 384], sizes = [1, 128], strides = [1, 1]} : vector<1x512xf32> to vector<1x128xf32>
    %183 = arith.negf %182 : vector<1x128xf32>
    %184 = math.exp %183 : vector<1x128xf32>
    %cst_58 = arith.constant 1.000000e+00 : f32
    %185 = vector.broadcast %cst_58 : f32 to vector<1x128xf32>
    %186 = arith.addf %185, %184 : vector<1x128xf32>
    %187 = arith.divf %185, %186 : vector<1x128xf32>
    %188 = arith.mulf %179, %162 : vector<1x128xf32>
    %189 = arith.mulf %173, %181 : vector<1x128xf32>
    %190 = arith.addf %188, %189 : vector<1x128xf32>
    %191 = math.tanh %190 : vector<1x128xf32>
    %192 = arith.mulf %187, %191 : vector<1x128xf32>
    %193 = vector.extract_strided_slice %49 {offsets = [5, 0], sizes = [1, 512], strides = [1, 1]} : vector<8x512xf32> to vector<1x512xf32>
    %cst_59 = arith.constant dense<0.000000e+00> : vector<1x512xf32>
    %194 = tpu.matmul %192, %50, %cst_59 {dimension_numbers = #tpu.dot_dimension_numbers<[1], [0], [0], [1], [0, 0, 1, 1], [], []>} : vector<1x128xf32>, vector<128x512xf32>, vector<1x512xf32> -> vector<1x512xf32>
    %195 = arith.addf %193, %194 : vector<1x512xf32>
    %196 = vector.extract_strided_slice %195 {offsets = [0, 0], sizes = [1, 128], strides = [1, 1]} : vector<1x512xf32> to vector<1x128xf32>
    %197 = arith.negf %196 : vector<1x128xf32>
    %198 = math.exp %197 : vector<1x128xf32>
    %cst_60 = arith.constant 1.000000e+00 : f32
    %199 = vector.broadcast %cst_60 : f32 to vector<1x128xf32>
    %200 = arith.addf %199, %198 : vector<1x128xf32>
    %201 = arith.divf %199, %200 : vector<1x128xf32>
    %202 = vector.extract_strided_slice %195 {offsets = [0, 128], sizes = [1, 128], strides = [1, 1]} : vector<1x512xf32> to vector<1x128xf32>
    %203 = arith.negf %202 : vector<1x128xf32>
    %204 = math.exp %203 : vector<1x128xf32>
    %cst_61 = arith.constant 1.000000e+00 : f32
    %205 = vector.broadcast %cst_61 : f32 to vector<1x128xf32>
    %206 = arith.addf %205, %204 : vector<1x128xf32>
    %207 = arith.divf %205, %206 : vector<1x128xf32>
    %208 = vector.extract_strided_slice %195 {offsets = [0, 256], sizes = [1, 128], strides = [1, 1]} : vector<1x512xf32> to vector<1x128xf32>
    %209 = math.tanh %208 : vector<1x128xf32>
    %210 = vector.extract_strided_slice %195 {offsets = [0, 384], sizes = [1, 128], strides = [1, 1]} : vector<1x512xf32> to vector<1x128xf32>
    %211 = arith.negf %210 : vector<1x128xf32>
    %212 = math.exp %211 : vector<1x128xf32>
    %cst_62 = arith.constant 1.000000e+00 : f32
    %213 = vector.broadcast %cst_62 : f32 to vector<1x128xf32>
    %214 = arith.addf %213, %212 : vector<1x128xf32>
    %215 = arith.divf %213, %214 : vector<1x128xf32>
    %216 = arith.mulf %207, %190 : vector<1x128xf32>
    %217 = arith.mulf %201, %209 : vector<1x128xf32>
    %218 = arith.addf %216, %217 : vector<1x128xf32>
    %219 = math.tanh %218 : vector<1x128xf32>
    %220 = arith.mulf %215, %219 : vector<1x128xf32>
    %221 = vector.extract_strided_slice %49 {offsets = [6, 0], sizes = [1, 512], strides = [1, 1]} : vector<8x512xf32> to vector<1x512xf32>
    %cst_63 = arith.constant dense<0.000000e+00> : vector<1x512xf32>
    %222 = tpu.matmul %220, %50, %cst_63 {dimension_numbers = #tpu.dot_dimension_numbers<[1], [0], [0], [1], [0, 0, 1, 1], [], []>} : vector<1x128xf32>, vector<128x512xf32>, vector<1x512xf32> -> vector<1x512xf32>
    %223 = arith.addf %221, %222 : vector<1x512xf32>
    %224 = vector.extract_strided_slice %223 {offsets = [0, 0], sizes = [1, 128], strides = [1, 1]} : vector<1x512xf32> to vector<1x128xf32>
    %225 = arith.negf %224 : vector<1x128xf32>
    %226 = math.exp %225 : vector<1x128xf32>
    %cst_64 = arith.constant 1.000000e+00 : f32
    %227 = vector.broadcast %cst_64 : f32 to vector<1x128xf32>
    %228 = arith.addf %227, %226 : vector<1x128xf32>
    %229 = arith.divf %227, %228 : vector<1x128xf32>
    %230 = vector.extract_strided_slice %223 {offsets = [0, 128], sizes = [1, 128], strides = [1, 1]} : vector<1x512xf32> to vector<1x128xf32>
    %231 = arith.negf %230 : vector<1x128xf32>
    %232 = math.exp %231 : vector<1x128xf32>
    %cst_65 = arith.constant 1.000000e+00 : f32
    %233 = vector.broadcast %cst_65 : f32 to vector<1x128xf32>
    %234 = arith.addf %233, %232 : vector<1x128xf32>
    %235 = arith.divf %233, %234 : vector<1x128xf32>
    %236 = vector.extract_strided_slice %223 {offsets = [0, 256], sizes = [1, 128], strides = [1, 1]} : vector<1x512xf32> to vector<1x128xf32>
    %237 = math.tanh %236 : vector<1x128xf32>
    %238 = vector.extract_strided_slice %223 {offsets = [0, 384], sizes = [1, 128], strides = [1, 1]} : vector<1x512xf32> to vector<1x128xf32>
    %239 = arith.negf %238 : vector<1x128xf32>
    %240 = math.exp %239 : vector<1x128xf32>
    %cst_66 = arith.constant 1.000000e+00 : f32
    %241 = vector.broadcast %cst_66 : f32 to vector<1x128xf32>
    %242 = arith.addf %241, %240 : vector<1x128xf32>
    %243 = arith.divf %241, %242 : vector<1x128xf32>
    %244 = arith.mulf %235, %218 : vector<1x128xf32>
    %245 = arith.mulf %229, %237 : vector<1x128xf32>
    %246 = arith.addf %244, %245 : vector<1x128xf32>
    %247 = math.tanh %246 : vector<1x128xf32>
    %248 = arith.mulf %243, %247 : vector<1x128xf32>
    %249 = vector.extract_strided_slice %49 {offsets = [7, 0], sizes = [1, 512], strides = [1, 1]} : vector<8x512xf32> to vector<1x512xf32>
    %cst_67 = arith.constant dense<0.000000e+00> : vector<1x512xf32>
    %250 = tpu.matmul %248, %50, %cst_67 {dimension_numbers = #tpu.dot_dimension_numbers<[1], [0], [0], [1], [0, 0, 1, 1], [], []>} : vector<1x128xf32>, vector<128x512xf32>, vector<1x512xf32> -> vector<1x512xf32>
    %251 = arith.addf %249, %250 : vector<1x512xf32>
    %252 = vector.extract_strided_slice %251 {offsets = [0, 0], sizes = [1, 128], strides = [1, 1]} : vector<1x512xf32> to vector<1x128xf32>
    %253 = arith.negf %252 : vector<1x128xf32>
    %254 = math.exp %253 : vector<1x128xf32>
    %cst_68 = arith.constant 1.000000e+00 : f32
    %255 = vector.broadcast %cst_68 : f32 to vector<1x128xf32>
    %256 = arith.addf %255, %254 : vector<1x128xf32>
    %257 = arith.divf %255, %256 : vector<1x128xf32>
    %258 = vector.extract_strided_slice %251 {offsets = [0, 128], sizes = [1, 128], strides = [1, 1]} : vector<1x512xf32> to vector<1x128xf32>
    %259 = arith.negf %258 : vector<1x128xf32>
    %260 = math.exp %259 : vector<1x128xf32>
    %cst_69 = arith.constant 1.000000e+00 : f32
    %261 = vector.broadcast %cst_69 : f32 to vector<1x128xf32>
    %262 = arith.addf %261, %260 : vector<1x128xf32>
    %263 = arith.divf %261, %262 : vector<1x128xf32>
    %264 = vector.extract_strided_slice %251 {offsets = [0, 256], sizes = [1, 128], strides = [1, 1]} : vector<1x512xf32> to vector<1x128xf32>
    %265 = math.tanh %264 : vector<1x128xf32>
    %266 = vector.extract_strided_slice %251 {offsets = [0, 384], sizes = [1, 128], strides = [1, 1]} : vector<1x512xf32> to vector<1x128xf32>
    %267 = arith.negf %266 : vector<1x128xf32>
    %268 = math.exp %267 : vector<1x128xf32>
    %cst_70 = arith.constant 1.000000e+00 : f32
    %269 = vector.broadcast %cst_70 : f32 to vector<1x128xf32>
    %270 = arith.addf %269, %268 : vector<1x128xf32>
    %271 = arith.divf %269, %270 : vector<1x128xf32>
    %272 = arith.mulf %263, %246 : vector<1x128xf32>
    %273 = arith.mulf %257, %265 : vector<1x128xf32>
    %274 = arith.addf %272, %273 : vector<1x128xf32>
    %275 = math.tanh %274 : vector<1x128xf32>
    %276 = arith.mulf %271, %275 : vector<1x128xf32>
    %c0_71 = arith.constant 0 : index
    %c0_72 = arith.constant 0 : index
    %277 = vector.load %arg16[%c0_71, %c0_72] : memref<128x1xf32, #tpu.memory_space<vmem>>, vector<128x1xf32>
    %cst_73 = arith.constant dense<0.000000e+00> : vector<1x1xf32>
    %278 = tpu.matmul %276, %277, %cst_73 {dimension_numbers = #tpu.dot_dimension_numbers<[1], [0], [0], [1], [0, 0, 1, 1], [], []>} : vector<1x128xf32>, vector<128x1xf32>, vector<1x1xf32> -> vector<1x1xf32>
    %c0_74 = arith.constant 0 : index
    %c0_75 = arith.constant 0 : index
    %279 = vector.load %arg17[%c0_74, %c0_75] : memref<1x1xf32, #tpu.memory_space<vmem>>, vector<1x1xf32>
    %280 = arith.addf %278, %279 : vector<1x1xf32>
    %cst_76 = arith.constant dense<0xFF800000> : vector<1xf32>
    %281 = vector.multi_reduction <maximumf>, %280, %cst_76 [1] : vector<1x1xf32> to vector<1xf32>
    %282 = vector.shape_cast %281 : vector<1xf32> to vector<1x1xf32>
    %283 = arith.subf %280, %282 : vector<1x1xf32>
    %284 = math.exp %283 : vector<1x1xf32>
    %cst_77 = arith.constant dense<0.000000e+00> : vector<1xf32>
    %285 = vector.multi_reduction <add>, %284, %cst_77 [1] : vector<1x1xf32> to vector<1xf32>
    %286 = vector.shape_cast %285 : vector<1xf32> to vector<1x1xf32>
    %287 = arith.divf %284, %286 : vector<1x1xf32>
    %c0_78 = arith.constant 0 : index
    %c0_79 = arith.constant 0 : index
    %288 = vector.load %arg18[%c0_78, %c0_79] : memref<1x1xf32, #tpu.memory_space<vmem>>, vector<1x1xf32>
    tpu.vector_store %arg18[%c0_78, %c0_79], %287 {strides = array<i32>} : memref<1x1xf32, #tpu.memory_space<vmem>>, vector<1x1xf32>,
    %289 = vector.extract_strided_slice %276 {offsets = [0, 0], sizes = [1, 64], strides = [1, 1]} : vector<1x128xf32> to vector<1x64xf32>
    %c0_80 = arith.constant 0 : index
    %c0_81 = arith.constant 0 : index
    %290 = vector.load %arg19[%c0_80, %c0_81] : memref<1x64xf32, #tpu.memory_space<vmem>>, vector<1x64xf32>
    tpu.vector_store %arg19[%c0_80, %c0_81], %289 {strides = array<i32>} : memref<1x64xf32, #tpu.memory_space<vmem>>, vector<1x64xf32>,
    %291 = vector.extract_strided_slice %274 {offsets = [0, 0], sizes = [1, 64], strides = [1, 1]} : vector<1x128xf32> to vector<1x64xf32>
    %c0_82 = arith.constant 0 : index
    %c0_83 = arith.constant 0 : index
    %292 = vector.load %arg20[%c0_82, %c0_83] : memref<1x64xf32, #tpu.memory_space<vmem>>, vector<1x64xf32>
    tpu.vector_store %arg20[%c0_82, %c0_83], %291 {strides = array<i32>} : memref<1x64xf32, #tpu.memory_space<vmem>>, vector<1x64xf32>,
    return
  }
}

</mosaic_0001>

<bundles_post_ra>
// kernel: elo_guesser_forward.1
= control target key start
LH: loop header
LB: loop body
LE: loop exit
PB: predicated region body
PF: predicated region fallthrough
CT: control target
= control target key end

     0   :  { %s7300_s0 = inlined_call_operand.vmem [shape: f32[8,64], index: 0, kind: input, shape index: {}]   ;;  %s7301_s1 = inlined_call_operand.hbm [shape: f32[8,8], index: 1, kind: input, shape index: {}]   ;;  %s7302_s2 = inlined_call_operand.vmem [shape: f32[1,128], index: 2, kind: input, shape index: {}, may-alias: {2,3}]   ;;  %s7303_s3 = inlined_call_operand.vmem [shape: f32[1,128], index: 3, kind: input, shape index: {}, may-alias: {2,3}]   ;;  %s7304_s4 = inlined_call_operand.hbm [shape: f32[64,2048], index: 4, kind: input, shape index: {}]   ;;  %s7305_s5 = inlined_call_operand.hbm [shape: f32[1,2048], index: 5, kind: input, shape index: {}]   ;;  %s7306_s6 = inlined_call_operand.hbm [shape: f32[512,1024], index: 6, kind: input, shape index: {}]   ;;  %s7307_s7 = inlined_call_operand.hbm [shape: f32[1,1024], index: 7, kind: input, shape index: {}]   ;;  %s7308_s8 = inlined_call_operand.hbm [shape: f32[8,32], index: 8, kind: input, shape index: {}]   ;;  %s7309_s9 = inlined_call_operand.hbm [shape: f32[1,32], index: 9, kind: input, shape index: {}]   ;;  %s7310_s10 = inlined_call_operand.hbm [shape: f32[256,128], index: 10, kind: input, shape index: {}]   ;;  %s7311_s11 = inlined_call_operand.hbm [shape: f32[32,128], index: 11, kind: input, shape index: {}]   ;;  %s7312_s12 = inlined_call_operand.hbm [shape: f32[1,128], index: 12, kind: input, shape index: {}]   ;;  %s7313_s13 = inlined_call_operand.hbm [shape: f32[128,512], index: 13, kind: input, shape index: {}]   ;;  %s7314_s14 = inlined_call_operand.hbm [shape: f32[128,512], index: 14, kind: input, shape index: {}]   ;;  %s7315_s15 = inlined_call_operand.hbm [shape: f32[1,512], index: 15, kind: input, shape index: {}]   ;;  %s7316_s16 = inlined_call_operand.hbm [shape: f32[128,1], index: 16, kind: input, shape index: {}]   ;;  %s7317_s17 = inlined_call_operand.<no memory space> [shape: f32[1,1], index: 17, kind: input, shape index: {}]   ;;  %s7318_s18 = inlined_call_operand.hbm [shape: f32[1,1], index: 18, kind: output, shape index: {0}]   ;;  %s7319_s19 = inlined_call_operand.hbm [shape: f32[1,64], index: 19, kind: output, shape index: {1}]   ;;  %s7320_s20 = inlined_call_operand.hbm [shape: f32[1,64], index: 20, kind: output, shape index: {2}]  }
   0x1   :  { %7325 = sst [smem:[#allocation40_spill]] %s7300_s0  ;;  %v26_v0 = vstv %s7317_s17 }
   0x2   :  { %7326 = sst [smem:[#allocation41_spill]] %s7301_s1  ;;  %27 = vst [vmem:[#allocation2] sm:$0x1] %v26_v0 }
   0x3   :  { %7327 = sst [smem:[#allocation42_spill]] %s7302_s2 }
   0x4   :  { %7328 = sst [smem:[#allocation43_spill]] %s7303_s3 }
   0x5   :  { %7329 = sst [smem:[#allocation44_spill]] %s7304_s4 }
   0x6   :  { %28 = vsyncpa [#allocation4], 0 }
   0x7   :  { %29 = vsyncpa [#allocation7], 0 }
   0x8   :  { %30 = vsyncpa [#allocation10], 0 }
   0x9   :  { %31 = vsyncpa [#allocation13], 0 }
   0xa   :  { %32 = vsyncpa [#allocation16], 0 }
   0xb   :  { %33 = vsyncpa [#allocation19], 0 }
   0xc   :  { %34 = vsyncpa [#allocation22], 0 }
   0xd   :  { %35 = vsyncpa [#allocation25], 0 }
   0xe   :  { %36 = vsyncpa [#allocation5], 0 }
   0xf   :  { %37 = vsyncpa [#allocation28], 0  ;;  %s6383_s23 = smov [#allocation6]   ;;  %s7330_s3 = sld [smem:[#allocation44_spill]] }
  0x10   :  { %s59_s24 = sshll.u32 %s6383_s23, 4  ;;  %s60_s24 = int_to_ptr.vmem [resolvable:$true] %s59_s24 }
  0x15   :  { %s5989_s26 = scalar_lea.hbm %s7330_s3, 16384 }
  0x16   :  { %p5990_p0 = scmp.ne.s32.totalorder %s7330_s3, %s5989_s26  ;;  %p5993_p1 = scmp.lt.u32.totalorder %s5989_s26, %s7330_s3 }
  0x18   :  { %p5995_p2 = pnand %p5993_p1, %p5990_p0 }
  0x1a   :  { %5998 = shalt.err (!%p5995_p2)
}
  0x1b   :  { %s5999_s29 = scalar_lea.vmem %s60_s24, 16384  ;;  %p6004_p4 = scmp.lt.s32.totalorder %s60_s24, %s60_s24 }
  0x1c   :  { %p6000_p3 = scmp.ne.s32.totalorder %s60_s24, %s5999_s29  ;;  %p6005_p5 = scmp.lt.s32.totalorder %s5999_s29, %s5999_s29 }
  0x1e   :  { %p6006_p6 = por %p6005_p5, %p6004_p4 }
  0x20   :  { %p6007_p7 = pnand %p6006_p6, %p6000_p3 }
  0x22   :  { %6010 = shalt.err (!%p6007_p7)
}
  0x23   :  { %s6384_s30 = smov 2048   ;;  %s7323_s0 = smov 128  }
  0x24   :  { %65 = dma.hbm_to_vmem [thread:$0]  %s7330_s3, 16384, %s60_s24, [#allocation7], %s6384_s30, %s6384_s30, %s7323_s0  }
  0x25   :  { %s6386_s22 = smov [#allocation9]   ;;  %s6011_s26 = scalar_lea.hbm %s7306_s6, 65536 }
  0x26   :  { %s81_s23 = sshll.u32 %s6386_s22, 4  ;;  %p6012_p8 = scmp.ne.s32.totalorder %s7306_s6, %s6011_s26  ;;  %s82_s23 = int_to_ptr.vmem [resolvable:$true] %s81_s23 }
  0x27   :  { %p6015_p9 = scmp.lt.u32.totalorder %s6011_s26, %s7306_s6 }
  0x29   :  { %p6017_p10 = pnand %p6015_p9, %p6012_p8 }
  0x2b   :  { %6020 = shalt.err (!%p6017_p10)
}
  0x2c   :  { %s6021_s29 = scalar_lea.vmem %s82_s23, 65536  ;;  %p6026_p12 = scmp.lt.s32.totalorder %s82_s23, %s82_s23 }
  0x2d   :  { %p6022_p11 = scmp.ne.s32.totalorder %s82_s23, %s6021_s29  ;;  %p6027_p13 = scmp.lt.s32.totalorder %s6021_s29, %s6021_s29 }
  0x2f   :  { %p6028_p0 = por %p6027_p13, %p6026_p12 }
  0x31   :  { %p6029_p1 = pnand %p6028_p0, %p6022_p11 }
  0x33   :  { %6032 = shalt.err (!%p6029_p1)
}
  0x34   :  { %s6387_s24 = smov 1024   ;;  %s6388_s3 = smov 64  }
  0x35   :  { %87 = dma.hbm_to_vmem [thread:$0]  %s7306_s6, 65536, %s82_s23, [#allocation10], %s6387_s24, %s6387_s24, %s6388_s3  }
  0x36   :  { %s6389_s1 = smov [#allocation12]   ;;  %s6390_s2 = smov [#allocation15]  }
  0x37   :  { %s104_s22 = sshll.u32 %s6389_s1, 4  ;;  %s123_s25 = sshll.u32 %s6390_s2, 4  ;;  %s105_s22 = int_to_ptr.vmem [resolvable:$true] %s104_s22  ;;  %s6543_s25 = int_to_ptr.vmem [resolvable:$true] %s123_s25 }
  0x38   :  { %s6033_s17 = scalar_lea.hbm %s7308_s8, 128 }
  0x39   :  { %p6034_p2 = scmp.ne.s32.totalorder %s7308_s8, %s6033_s17  ;;  %p6037_p3 = scmp.lt.u32.totalorder %s6033_s17, %s7308_s8 }
  0x3b   :  { %p6039_p4 = pnand %p6037_p3, %p6034_p2 }
  0x3d   :  { %6042 = shalt.err (!%p6039_p4)
}
  0x3e   :  { %s6043_s6 = scalar_lea.vmem %s105_s22, 128  ;;  %p6048_p6 = scmp.lt.s32.totalorder %s105_s22, %s105_s22 }
  0x3f   :  { %p6044_p5 = scmp.ne.s32.totalorder %s105_s22, %s6043_s6  ;;  %p6049_p7 = scmp.lt.s32.totalorder %s6043_s6, %s6043_s6 }
  0x41   :  { %p6050_p8 = por %p6049_p7, %p6048_p6 }
  0x43   :  { %p6051_p9 = pnand %p6050_p8, %p6044_p5 }
  0x45   :  { %6054 = shalt.err (!%p6051_p9)
}
  0x46   :  { %107 = dma.hbm_to_vmem [thread:$0]  %s7308_s8, 128, %s105_s22, [#allocation13]  }
  0x47   :  { %s6055_s21 = scalar_lea.hbm %s7310_s10, 4096 }
  0x48   :  { %p6056_p10 = scmp.ne.s32.totalorder %s7310_s10, %s6055_s21  ;;  %p6059_p11 = scmp.lt.u32.totalorder %s6055_s21, %s7310_s10 }
  0x4a   :  { %p6061_p12 = pnand %p6059_p11, %p6056_p10 }
  0x4c   :  { %6064 = shalt.err (!%p6061_p12)
}
  0x4d   :  { %s6065_s27 = scalar_lea.vmem %s6543_s25, 4096  ;;  %p6070_p0 = scmp.lt.s32.totalorder %s6543_s25, %s6543_s25 }
  0x4e   :  { %p6066_p13 = scmp.ne.s32.totalorder %s6543_s25, %s6065_s27  ;;  %p6071_p1 = scmp.lt.s32.totalorder %s6065_s27, %s6065_s27 }
  0x50   :  { %p6072_p2 = por %p6071_p1, %p6070_p0 }
  0x52   :  { %p6073_p3 = pnand %p6072_p2, %p6066_p13 }
  0x54   :  { %6076 = shalt.err (!%p6073_p3)
}
  0x55   :  { %s6391_s8 = smov 8   ;;  %s7331_s22 = smov 128  }
  0x56   :  { %129 = dma.hbm_to_vmem [thread:$0]  %s7310_s10, 4096, %s6543_s25, [#allocation16], %s7331_s22, %s7331_s22, %s6391_s8  }
  0x57   :  { %s6392_s4 = smov [#allocation18]   ;;  %s6077_s24 = scalar_lea.hbm %s7312_s12, 16 }
  0x58   :  { %s148_s29 = sshll.u32 %s6392_s4, 4  ;;  %p6078_p4 = scmp.ne.s32.totalorder %s7312_s12, %s6077_s24  ;;  %s149_s29 = int_to_ptr.vmem [resolvable:$true] %s148_s29 }
  0x59   :  { %p6081_p5 = scmp.lt.u32.totalorder %s6077_s24, %s7312_s12 }
  0x5b   :  { %p6083_p6 = pnand %p6081_p5, %p6078_p4 }
  0x5d   :  { %6086 = shalt.err (!%p6083_p6)
}
  0x5e   :  { %s6087_s0 = scalar_lea.vmem %s149_s29, 16  ;;  %s6091_s10 = scalar_lea.vmem %s149_s29, 32 }
  0x5f   :  { %p6088_p7 = scmp.ne.s32.totalorder %s149_s29, %s6087_s0  ;;  %p6092_p8 = scmp.lt.s32.totalorder %s149_s29, %s149_s29 }
  0x60   :  { %p6093_p9 = scmp.lt.s32.totalorder %s6091_s10, %s6087_s0 }
  0x62   :  { %p6094_p10 = por %p6093_p9, %p6092_p8 }
  0x64   :  { %p6095_p11 = pnand %p6094_p10, %p6088_p7 }
  0x66   :  { %6098 = shalt.err (!%p6095_p11)
}
  0x67   :  { %151 = dma.hbm_to_vmem [thread:$0]  %s7312_s12, 16, %s149_s29, [#allocation19]  }
  0x68   :  { %s6393_s26 = smov [#allocation21]   ;;  %s6394_s17 = smov [#allocation3]  }
  0x69   :  { %s169_s27 = sshll.u32 %s6393_s26, 4  ;;  %s46_s28 = sshll.u32 %s6394_s17, 4  ;;  %s170_s27 = int_to_ptr.vmem [resolvable:$true] %s169_s27  ;;  %s47_s28 = int_to_ptr.vmem [resolvable:$true] %s46_s28 }
  0x6a   :  { %s6099_s23 = scalar_lea.hbm %s7314_s14, 8192 }
  0x6b   :  { %p6100_p12 = scmp.ne.s32.totalorder %s7314_s14, %s6099_s23  ;;  %p6103_p13 = scmp.lt.u32.totalorder %s6099_s23, %s7314_s14 }
  0x6d   :  { %p6105_p0 = pnand %p6103_p13, %p6100_p12 }
  0x6f   :  { %6108 = shalt.err (!%p6105_p0)
}
  0x70   :  { %s6109_s12 = scalar_lea.vmem %s170_s27, 8192  ;;  %p6114_p2 = scmp.lt.s32.totalorder %s170_s27, %s170_s27 }
  0x71   :  { %p6110_p1 = scmp.ne.s32.totalorder %s170_s27, %s6109_s12  ;;  %p6115_p3 = scmp.lt.s32.totalorder %s6109_s12, %s6109_s12 }
  0x73   :  { %p6116_p4 = por %p6115_p3, %p6114_p2 }
  0x75   :  { %p6117_p5 = pnand %p6116_p4, %p6110_p1 }
  0x77   :  { %6120 = shalt.err (!%p6117_p5)
}
  0x78   :  { %s6395_s29 = smov 512   ;;  %s6396_s1 = smov 32  }
  0x79   :  { %175 = dma.hbm_to_vmem [thread:$0]  %s7314_s14, 8192, %s170_s27, [#allocation22], %s6395_s29, %s6395_s29, %s6396_s1  }
  0x7a   :  { %s7332_s26 = sld [smem:[#allocation41_spill]] }
  0x80   :  { %s6121_s17 = scalar_lea.hbm %s7332_s26, 128 }
  0x81   :  { %p6122_p6 = scmp.ne.s32.totalorder %s7332_s26, %s6121_s17  ;;  %p6125_p7 = scmp.lt.u32.totalorder %s6121_s17, %s7332_s26 }
  0x83   :  { %p6127_p8 = pnand %p6125_p7, %p6122_p6 }
  0x85   :  { %6130 = shalt.err (!%p6127_p8)
}
  0x86   :  { %s6131_s3 = scalar_lea.vmem %s47_s28, 128  ;;  %p6136_p10 = scmp.lt.s32.totalorder %s47_s28, %s47_s28 }
  0x87   :  { %p6132_p9 = scmp.ne.s32.totalorder %s47_s28, %s6131_s3  ;;  %p6137_p11 = scmp.lt.s32.totalorder %s6131_s3, %s6131_s3 }
  0x89   :  { %p6138_p12 = por %p6137_p11, %p6136_p10 }
  0x8b   :  { %p6139_p13 = pnand %p6138_p12, %p6132_p9 }
  0x8d   :  { %6142 = shalt.err (!%p6139_p13)
}
  0x8e   :  { %49 = dma.hbm_to_vmem [thread:$0]  %s7332_s26, 128, %s47_s28, [#allocation4]  }
  0x8f   :  { %s6397_s30 = smov [#allocation8]   ;;  %s6398_s12 = smov [#allocation11]  }
  0x90   :  { %s72_s21 = sshll.u32 %s6397_s30, 4  ;;  %s94_s0 = sshll.u32 %s6398_s12, 4  ;;  %s73_s21 = int_to_ptr.vmem [resolvable:$true] %s72_s21  ;;  %s95_s0 = int_to_ptr.vmem [resolvable:$true] %s94_s0 }
  0x91   :  { %s6143_s2 = scalar_lea.hbm %s7305_s5, 256 }
  0x92   :  { %p6144_p0 = scmp.ne.s32.totalorder %s7305_s5, %s6143_s2  ;;  %p6147_p1 = scmp.lt.u32.totalorder %s6143_s2, %s7305_s5 }
  0x94   :  { %p6149_p2 = pnand %p6147_p1, %p6144_p0 }
  0x96   :  { %6152 = shalt.err (!%p6149_p2)
}
  0x97   :  { %s6153_s28 = scalar_lea.vmem %s73_s21, 256  ;;  %p6158_p4 = scmp.lt.s32.totalorder %s73_s21, %s73_s21 }
  0x98   :  { %p6154_p3 = scmp.ne.s32.totalorder %s73_s21, %s6153_s28  ;;  %p6159_p5 = scmp.lt.s32.totalorder %s6153_s28, %s6153_s28 }
  0x9a   :  { %p6160_p6 = por %p6159_p5, %p6158_p4 }
  0x9c   :  { %p6161_p7 = pnand %p6160_p6, %p6154_p3 }
  0x9e   :  { %6164 = shalt.err (!%p6161_p7)
}
  0x9f   :  { %75 = dma.hbm_to_vmem [thread:$0]  %s7305_s5, 256, %s73_s21, [#allocation7]  }
  0xa0   :  { %s6165_s27 = scalar_lea.hbm %s7307_s7, 128 }
  0xa1   :  { %p6166_p8 = scmp.ne.s32.totalorder %s7307_s7, %s6165_s27  ;;  %p6169_p9 = scmp.lt.u32.totalorder %s6165_s27, %s7307_s7 }
  0xa3   :  { %p6171_p10 = pnand %p6169_p9, %p6166_p8 }
  0xa5   :  { %6174 = shalt.err (!%p6171_p10)
}
  0xa6   :  { %s6175_s2 = scalar_lea.vmem %s95_s0, 128  ;;  %p6180_p12 = scmp.lt.s32.totalorder %s95_s0, %s95_s0 }
  0xa7   :  { %p6176_p11 = scmp.ne.s32.totalorder %s95_s0, %s6175_s2  ;;  %p6181_p13 = scmp.lt.s32.totalorder %s6175_s2, %s6175_s2 }
  0xa9   :  { %p6182_p0 = por %p6181_p13, %p6180_p12 }
  0xab   :  { %p6183_p1 = pnand %p6182_p0, %p6176_p11 }
  0xad   :  { %6186 = shalt.err (!%p6183_p1)
}
  0xae   :  { %97 = dma.hbm_to_vmem [thread:$0]  %s7307_s7, 128, %s95_s0, [#allocation10]  }
  0xaf   :  { %s6399_s17 = smov [#allocation14]   ;;  %s6400_s6 = smov [#allocation17]  }
  0xb0   :  { %s114_s4 = sshll.u32 %s6399_s17, 4  ;;  %s135_s23 = sshll.u32 %s6400_s6, 4  ;;  %s115_s4 = int_to_ptr.vmem [resolvable:$true] %s114_s4  ;;  %s6640_s23 = int_to_ptr.vmem [resolvable:$true] %s135_s23 }
  0xb1   :  { %s6187_s24 = scalar_lea.hbm %s7309_s9, 16 }
  0xb2   :  { %p6188_p2 = scmp.ne.s32.totalorder %s7309_s9, %s6187_s24  ;;  %p6191_p3 = scmp.lt.u32.totalorder %s6187_s24, %s7309_s9 }
  0xb4   :  { %p6193_p4 = pnand %p6191_p3, %p6188_p2 }
  0xb6   :  { %6196 = shalt.err (!%p6193_p4)
}
  0xb7   :  { %s6197_s7 = scalar_lea.vmem %s115_s4, 16  ;;  %s6201_s0 = scalar_lea.vmem %s115_s4, 32 }
  0xb8   :  { %p6198_p5 = scmp.ne.s32.totalorder %s115_s4, %s6197_s7  ;;  %p6202_p6 = scmp.lt.s32.totalorder %s115_s4, %s115_s4 }
  0xb9   :  { %p6203_p7 = scmp.lt.s32.totalorder %s6201_s0, %s6197_s7 }
  0xbb   :  { %p6204_p8 = por %p6203_p7, %p6202_p6 }
  0xbd   :  { %p6205_p9 = pnand %p6204_p8, %p6198_p5 }
  0xbf   :  { %6208 = shalt.err (!%p6205_p9)
}
  0xc0   :  { %117 = dma.hbm_to_vmem [thread:$0]  %s7309_s9, 16, %s115_s4, [#allocation13]  }
  0xc1   :  { %s6209_s5 = scalar_lea.hbm %s7311_s11, 512 }
  0xc2   :  { %p6210_p10 = scmp.ne.s32.totalorder %s7311_s11, %s6209_s5  ;;  %p6213_p11 = scmp.lt.u32.totalorder %s6209_s5, %s7311_s11 }
  0xc4   :  { %p6215_p12 = pnand %p6213_p11, %p6210_p10 }
  0xc6   :  { %6218 = shalt.err (!%p6215_p12)
}
  0xc7   :  { %s6219_s26 = scalar_lea.vmem %s6640_s23, 512  ;;  %p6224_p0 = scmp.lt.s32.totalorder %s6640_s23, %s6640_s23 }
  0xc8   :  { %p6220_p13 = scmp.ne.s32.totalorder %s6640_s23, %s6219_s26  ;;  %p6225_p1 = scmp.lt.s32.totalorder %s6219_s26, %s6219_s26 }
  0xca   :  { %p6226_p2 = por %p6225_p1, %p6224_p0 }
  0xcc   :  { %p6227_p3 = pnand %p6226_p2, %p6220_p13 }
  0xce   :  { %6230 = shalt.err (!%p6227_p3)
}
  0xcf   :  { %141 = dma.hbm_to_vmem [thread:$0]  %s7311_s11, 512, %s6640_s23, [#allocation16], %s7331_s22, %s7331_s22, %s6391_s8  }
  0xd0   :  { %s6401_s24 = smov [#allocation20]   ;;  %s6402_s14 = smov [#allocation23]  }
  0xd1   :  { %s157_s3 = sshll.u32 %s6401_s24, 4  ;;  %s182_s27 = sshll.u32 %s6402_s14, 4  ;;  %s158_s3 = int_to_ptr.vmem [resolvable:$true] %s157_s3  ;;  %s183_s27 = int_to_ptr.vmem [resolvable:$true] %s182_s27 }
  0xd2   :  { %s6231_s0 = scalar_lea.hbm %s7313_s13, 8192 }
  0xd3   :  { %p6232_p4 = scmp.ne.s32.totalorder %s7313_s13, %s6231_s0  ;;  %p6235_p5 = scmp.lt.u32.totalorder %s6231_s0, %s7313_s13 }
  0xd5   :  { %p6237_p6 = pnand %p6235_p5, %p6232_p4 }
  0xd7   :  { %6240 = shalt.err (!%p6237_p6)
}
  0xd8   :  { %s6241_s11 = scalar_lea.vmem %s158_s3, 8192  ;;  %p6246_p8 = scmp.lt.s32.totalorder %s158_s3, %s158_s3 }
  0xd9   :  { %p6242_p7 = scmp.ne.s32.totalorder %s158_s3, %s6241_s11  ;;  %p6247_p9 = scmp.lt.s32.totalorder %s6241_s11, %s6241_s11 }
  0xdb   :  { %p6248_p10 = por %p6247_p9, %p6246_p8 }
  0xdd   :  { %p6249_p11 = pnand %p6248_p10, %p6242_p7 }
  0xdf   :  { %6252 = shalt.err (!%p6249_p11)
}
  0xe0   :  { %163 = dma.hbm_to_vmem [thread:$0]  %s7313_s13, 8192, %s158_s3, [#allocation19], %s6395_s29, %s6395_s29, %s6396_s1  }
  0xe1   :  { %s6253_s6 = scalar_lea.hbm %s7315_s15, 64 }
  0xe2   :  { %p6254_p12 = scmp.ne.s32.totalorder %s7315_s15, %s6253_s6  ;;  %p6257_p13 = scmp.lt.u32.totalorder %s6253_s6, %s7315_s15 }
  0xe4   :  { %p6259_p0 = pnand %p6257_p13, %p6254_p12 }
  0xe6   :  { %6262 = shalt.err (!%p6259_p0)
}
  0xe7   :  { %s6263_s24 = scalar_lea.vmem %s183_s27, 64  ;;  %p6268_p2 = scmp.lt.s32.totalorder %s183_s27, %s183_s27 }
  0xe8   :  { %p6264_p1 = scmp.ne.s32.totalorder %s183_s27, %s6263_s24  ;;  %p6269_p3 = scmp.lt.s32.totalorder %s6263_s24, %s6263_s24 }
  0xea   :  { %p6270_p4 = por %p6269_p3, %p6268_p2 }
  0xec   :  { %p6271_p5 = pnand %p6270_p4, %p6264_p1 }
  0xee   :  { %6274 = shalt.err (!%p6271_p5)
}
  0xef   :  { %185 = dma.hbm_to_vmem [thread:$0]  %s7315_s15, 64, %s183_s27, [#allocation22]  }
  0xf0   :  { %s6403_s1 = smov [#allocation24]   ;;  %s6275_s7 = scalar_lea.hbm %s7316_s16, 2048 }
  0xf1   :  { %s191_s3 = sshll.u32 %s6403_s1, 4  ;;  %p6276_p6 = scmp.ne.s32.totalorder %s7316_s16, %s6275_s7  ;;  %s192_s3 = int_to_ptr.vmem [resolvable:$true] %s191_s3 }
  0xf2   :  { %p6279_p7 = scmp.lt.u32.totalorder %s6275_s7, %s7316_s16 }
  0xf4   :  { %p6281_p8 = pnand %p6279_p7, %p6276_p6 }
  0xf6   :  { %6284 = shalt.err (!%p6281_p8)
}
  0xf7   :  { %s6285_s2 = scalar_lea.vmem %s192_s3, 2048  ;;  %p6290_p10 = scmp.lt.s32.totalorder %s192_s3, %s192_s3 }
  0xf8   :  { %p6286_p9 = scmp.ne.s32.totalorder %s192_s3, %s6285_s2  ;;  %p6291_p11 = scmp.lt.s32.totalorder %s6285_s2, %s6285_s2 }
  0xfa   :  { %p6292_p12 = por %p6291_p11, %p6290_p10 }
  0xfc   :  { %p6293_p13 = pnand %p6292_p12, %p6286_p9 }
  0xfe   :  { %6296 = shalt.err (!%p6293_p13)
}
  0xff   :  { %197 = dma.hbm_to_vmem [thread:$0]  %s7316_s16, 2048, %s192_s3, [#allocation25], %s7331_s22, %s7331_s22, %s6391_s8  }
 0x100   :  { %6363 = dma.done.wait [#allocation4], 128  }
 0x101   :  { %6364 = vsyncadd [#allocation4], 4294967168 }
 0x102   :  { %6365 = dma.done.wait [#allocation7], 16640  }
 0x103   :  { %6366 = vsyncadd [#allocation7], 4294950656 }
 0x104   :  { %6367 = dma.done.wait [#allocation10], 65664  }
 0x105   :  { %6368 = vsyncadd [#allocation10], 4294901632 }
 0x106   :  { %6369 = dma.done.wait [#allocation13], 144  }
 0x107   :  { %6370 = vsyncadd [#allocation13], 4294967152 }
 0x108   :  { %6371 = dma.done.wait [#allocation16], 4608  }
 0x109   :  { %6372 = vsyncadd [#allocation16], 4294962688 }
 0x10a   :  { %6373 = dma.done.wait [#allocation19], 8208  }
 0x10b   :  { %6374 = vsyncadd [#allocation19], 4294959088 }
 0x10c   :  { %6375 = dma.done.wait [#allocation22], 8256  }
 0x10d   :  { %6376 = vsyncadd [#allocation22], 4294959040 }
 0x10e   :  { %6377 = dma.done.wait [#allocation25], 2048  }
 0x10f   :  { %6378 = vsyncadd [#allocation25], 4294965248  ;;  %v6404_v1 = vmov 0.0   ;;  %v244_v2 = vld [vmem:[#allocation6 + $0x8] sm:$0xff]  ;;  %v243_v4 = vld [vmem:[#allocation6] sm:$0xff]  ;;  %s7333_s22 = sld [smem:[#allocation40_spill]] }
 0x110   :  { %523 = vmatprep.mubr.f32.mxu0 %v6404_v1  ;;  %594 = vmatprep.mubr.f32.mxu1 %v6404_v1  ;;  %v260_v3 = vld [vmem:[#allocation6 + $0x88] sm:$0xff]  ;;  %v259_v6 = vld [vmem:[#allocation6 + $0x80] sm:$0xff]  ;;  %v246_v19 = vld [vmem:[#allocation6 + $0x18] sm:$0xff]  ;;  %vm455_vm0 = vcmask 523264   ;;  %vm2200_vm1 = vcmask 64512   ;;  %vm6405_vm2 = vmmov 0  }
 0x111   :  { %v4536_v5 = vpack.c.bf16 %v260_v3, %v244_v2  ;;  %v276_v7 = vld [vmem:[#allocation6 + $0x108] sm:$0xff]  ;;  %v4538_v9 = vpack.c.bf16 %v259_v6, %v243_v4  ;;  %v275_v11 = vld [vmem:[#allocation6 + $0x100] sm:$0xff]  ;;  %v262_v22 = vld [vmem:[#allocation6 + $0x98] sm:$0xff]  ;;  %vm2311_vm3 = vcmask 261120   ;;  %s7334_s5 = sld [smem:[#allocation42_spill]]  ;;  %s7335_s6 = sld [smem:[#allocation43_spill]] }
 0x112   :  { %v292_v8 = vld [vmem:[#allocation6 + $0x188] sm:$0xff]  ;;  %v291_v12 = vld [vmem:[#allocation6 + $0x180] sm:$0xff]  ;;  %v4552_v23 = vpack.c.bf16 %v262_v22, %v246_v19  ;;  %v245_v24 = vld [vmem:[#allocation6 + $0x10] sm:$0xff]  ;;  %vm4338_vm4 = vcmask 523271   ;;  %s6407_s28 = smov [#allocation27]  }
 0x113   :  { %v4540_v10 = vpack.c.bf16 %v292_v8, %v276_v7  ;;  %v308_v13 = vld [vmem:[#allocation6 + $0x208] sm:$0xff]  ;;  %4537 = vmatprep.subr.bf16.mxu0 %v4536_v5  ;;  %v4542_v15 = vpack.c.bf16 %v291_v12, %v275_v11  ;;  %v307_v17 = vld [vmem:[#allocation6 + $0x200] sm:$0xff]  ;;  %v261_v25 = vld [vmem:[#allocation6 + $0x90] sm:$0xff]  ;;  %s4357_s26 = sshll.u32 %s6407_s28, 4  ;;  %s4358_s26 = int_to_ptr.vmem [resolvable:$true] %s4357_s26 }
 0x114   :  { %v324_v14 = vld [vmem:[#allocation6 + $0x288] sm:$0xff]  ;;  %4539 = vmatpush1.bf16.msra.mxu0 %v4538_v9  ;;  %v323_v18 = vld [vmem:[#allocation6 + $0x280] sm:$0xff]  ;;  %v4554_v27 = vpack.c.bf16 %v261_v25, %v245_v24  ;;  %v278_v28 = vld [vmem:[#allocation6 + $0x118] sm:$0xff]  ;;  %4553 = vmatprep.subr.bf16.mxu1 %v4552_v23  ;;  %s6297_s9 = scalar_lea.vmem %s4358_s26, 16  ;;  %s6301_s4 = scalar_lea.vmem %s4358_s26, 32 }
 0x115   :  { %4541 = vmatprep.subr.bf16.mxu0 %v4540_v10  ;;  %v4544_v16 = vpack.c.bf16 %v324_v14, %v308_v13  ;;  %v340_v20 = vld [vmem:[#allocation6 + $0x308] sm:$0xff]  ;;  %v4546_v26 = vpack.c.bf16 %v323_v18, %v307_v17  ;;  %v294_v29 = vld [vmem:[#allocation6 + $0x198] sm:$0xff]  ;;  %v339_v31 = vld [vmem:[#allocation6 + $0x300] sm:$0xff]  ;;  %p6298_p0 = scmp.ne.s32.totalorder %s4358_s26, %s6297_s9  ;;  %p6302_p1 = scmp.lt.s32.totalorder %s4358_s26, %s4358_s26 }
 0x116   :  { %v356_v21 = vld [vmem:[#allocation6 + $0x388] sm:$0xff]  ;;  %v355_v32 = vld [vmem:[#allocation6 + $0x380] sm:$0xff]  ;;  %v4556_v33 = vpack.c.bf16 %v294_v29, %v278_v28  ;;  %v277_v34 = vld [vmem:[#allocation6 + $0x110] sm:$0xff]  ;;  %4555 = vmatpush1.bf16.msra.mxu1 %v4554_v27  ;;  %p6303_p2 = scmp.lt.s32.totalorder %s6301_s4, %s6297_s9 }
 0x117   :  { %v4548_v30 = vpack.c.bf16 %v356_v21, %v340_v20  ;;  %v248_v35 = vld [vmem:[#allocation6 + $0x28] sm:$0xff]  ;;  %v293_v37 = vld [vmem:[#allocation6 + $0x190] sm:$0xff]  ;;  %v310_v39 = vld [vmem:[#allocation6 + $0x218] sm:$0xff]  ;;  %v4550_v41 = vpack.c.bf16 %v355_v32, %v339_v31 }
 0x118   :  { %4543 = vmatpush1.bf16.msra.mxu0 %v4542_v15  ;;  %v264_v36 = vld [vmem:[#allocation6 + $0xa8] sm:$0xff]  ;;  %4557 = vmatprep.subr.bf16.mxu1 %v4556_v33  ;;  %v4558_v38 = vpack.c.bf16 %v293_v37, %v277_v34  ;;  %v326_v40 = vld [vmem:[#allocation6 + $0x298] sm:$0xff]  ;;  %v309_v43 = vld [vmem:[#allocation6 + $0x210] sm:$0xff]  ;;  %p6304_p3 = por %p6303_p2, %p6302_p1 }
 0x119   :  { %4545 = vmatprep.subr.bf16.mxu0 %v4544_v16  ;;  %v4560_v42 = vpack.c.bf16 %v326_v40, %v310_v39  ;;  %v325_v44 = vld [vmem:[#allocation6 + $0x290] sm:$0xff]  ;;  %v4568_v45 = vpack.c.bf16 %v264_v36, %v248_v35  ;;  %v247_v46 = vld [vmem:[#allocation6 + $0x20] sm:$0xff]  ;;  %v342_v48 = vld [vmem:[#allocation6 + $0x318] sm:$0xff] }
 0x11a   :  { %v263_v47 = vld [vmem:[#allocation6 + $0xa0] sm:$0xff]  ;;  %v280_v49 = vld [vmem:[#allocation6 + $0x128] sm:$0xff]  ;;  %4559 = vmatpush1.bf16.msra.mxu1 %v4558_v38  ;;  %v4562_v51 = vpack.c.bf16 %v325_v44, %v309_v43  ;;  %v358_v52 = vld [vmem:[#allocation6 + $0x398] sm:$0xff]  ;;  %p6305_p4 = pnand %p6304_p3, %p6298_p0 }
 0x11b   :  { %v296_v50 = vld [vmem:[#allocation6 + $0x1a8] sm:$0xff]  ;;  %4561 = vmatprep.subr.bf16.mxu1 %v4560_v42  ;;  %v4564_v53 = vpack.c.bf16 %v358_v52, %v342_v48  ;;  %v341_v54 = vld [vmem:[#allocation6 + $0x310] sm:$0xff]  ;;  %v4570_v57 = vpack.c.bf16 %v263_v47, %v247_v46  ;;  %v250_v58 = vld [vmem:[#allocation6 + $0x38] sm:$0xff] }
 0x11c   :  { %4547 = vmatpush1.bf16.msra.mxu0 %v4546_v26  ;;  %v357_v55 = vld [vmem:[#allocation6 + $0x390] sm:$0xff]  ;;  %v266_v59 = vld [vmem:[#allocation6 + $0xb8] sm:$0xff]  ;;  %v4572_v60 = vpack.c.bf16 %v296_v50, %v280_v49  ;;  %v279_v61 = vld [vmem:[#allocation6 + $0x120] sm:$0xff] }
 0x11d   :  { %4549 = vmatprep.subr.bf16.mxu0 %v4548_v30  ;;  %v6721_v56 = vld [vmem:[%s7333_s22] sm:$0xff]  ;;  %v295_v62 = vld [vmem:[#allocation6 + $0x1a0] sm:$0xff]  ;;  %v312_v63 = vld [vmem:[#allocation6 + $0x228] sm:$0xff]  ;;  %v4566_v2 = vpack.c.bf16 %v357_v55, %v341_v54  ;;  %v4584_v3 = vpack.c.bf16 %v266_v59, %v250_v58 }
 0x11e   :  { %v328_v0 = vld [vmem:[#allocation6 + $0x2a8] sm:$0xff]  ;;  %4563 = vmatpush1.bf16.msra.mxu1 %v4562_v51  ;;  %v249_v4 = vld [vmem:[#allocation6 + $0x30] sm:$0xff]  ;;  %v4574_v6 = vpack.c.bf16 %v295_v62, %v279_v61  ;;  %v282_v7 = vld [vmem:[#allocation6 + $0x138] sm:$0xff] }
 0x11f   :  { %4565 = vmatprep.subr.bf16.mxu1 %v4564_v53  ;;  %v265_v5 = vld [vmem:[#allocation6 + $0xb0] sm:$0xff]  ;;  %v298_v8 = vld [vmem:[#allocation6 + $0x1b8] sm:$0xff]  ;;  %v4576_v9 = vpack.c.bf16 %v328_v0, %v312_v63  ;;  %v311_v10 = vld [vmem:[#allocation6 + $0x220] sm:$0xff] }
 0x120   :  { %4551 = vmatpush1.bf16.msra.mxu0 %v4550_v41  ;;  %v327_v11 = vld [vmem:[#allocation6 + $0x2a0] sm:$0xff]  ;;  %v344_v12 = vld [vmem:[#allocation6 + $0x328] sm:$0xff]  ;;  %v4586_v14 = vpack.c.bf16 %v265_v5, %v249_v4  ;;  %v4588_v15 = vpack.c.bf16 %v298_v8, %v282_v7  ;;  %v281_v16 = vld [vmem:[#allocation6 + $0x130] sm:$0xff] }
 0x121   :  { %4569 = vmatprep.subr.bf16.mxu0 %v4568_v45  ;;  %v360_v13 = vld [vmem:[#allocation6 + $0x3a8] sm:$0xff]  ;;  %v297_v17 = vld [vmem:[#allocation6 + $0x1b0] sm:$0xff]  ;;  %v4578_v18 = vpack.c.bf16 %v327_v11, %v311_v10  ;;  %v314_v19 = vld [vmem:[#allocation6 + $0x238] sm:$0xff] }
 0x122   :  { %4567 = vmatpush1.bf16.msra.mxu1 %v4566_v2  ;;  %v330_v20 = vld [vmem:[#allocation6 + $0x2b8] sm:$0xff]  ;;  %v4580_v21 = vpack.c.bf16 %v360_v13, %v344_v12  ;;  %v343_v22 = vld [vmem:[#allocation6 + $0x320] sm:$0xff]  ;;  %v252_v24 = vld [vmem:[#allocation6 + $0x48] sm:$0xff]  ;;  %v4590_v26 = vpack.c.bf16 %v297_v17, %v281_v16 }
 0x123   :  { %4390 = vmatmul.mubr.msk.f32.vlgmr.msra.gmra.mrb[0].mxu0 %vm455_vm0, %v6721_v56  ;;  %4585 = vmatprep.subr.bf16.mxu1 %v4584_v3  ;;  %v359_v23 = vld [vmem:[#allocation6 + $0x3a0] sm:$0xff]  ;;  %v268_v25 = vld [vmem:[#allocation6 + $0xc8] sm:$0xff]  ;;  %v4592_v27 = vpack.c.bf16 %v330_v20, %v314_v19  ;;  %v313_v28 = vld [vmem:[#allocation6 + $0x230] sm:$0xff] }
 0x124   :  { %4571 = vmatpush1.bf16.msra.mxu0 %v4570_v57  ;;  %665 = vmatprep.mubr.f32.mxu0 %v6404_v1  ;;  %v329_v29 = vld [vmem:[#allocation6 + $0x2b0] sm:$0xff]  ;;  %v4582_v30 = vpack.c.bf16 %v359_v23, %v343_v22  ;;  %v346_v31 = vld [vmem:[#allocation6 + $0x338] sm:$0xff]  ;;  %v4600_v33 = vpack.c.bf16 %v268_v25, %v252_v24  ;;  %v251_v34 = vld [vmem:[#allocation6 + $0x40] sm:$0xff] }
 0x125   :  { %4573 = vmatprep.subr.bf16.mxu0 %v4572_v60  ;;  %4391 = vmatmul.mubr.msk.f32.vlgmr.msra.gmra.mrb[0].mxu1 %vm455_vm0, %v6721_v56  ;;  %v362_v32 = vld [vmem:[#allocation6 + $0x3b8] sm:$0xff]  ;;  %v267_v35 = vld [vmem:[#allocation6 + $0xc0] sm:$0xff]  ;;  %v284_v36 = vld [vmem:[#allocation6 + $0x148] sm:$0xff]  ;;  %v4594_v38 = vpack.c.bf16 %v329_v29, %v313_v28 }
 0x126   :  { %4587 = vmatpush1.bf16.msra.mxu1 %v4586_v14  ;;  %736 = vmatprep.mubr.f32.mxu1 %v6404_v1  ;;  %v300_v37 = vld [vmem:[#allocation6 + $0x1c8] sm:$0xff]  ;;  %v4596_v39 = vpack.c.bf16 %v362_v32, %v346_v31  ;;  %v345_v40 = vld [vmem:[#allocation6 + $0x330] sm:$0xff]  ;;  %v4602_v42 = vpack.c.bf16 %v267_v35, %v251_v34  ;;  %v254_v43 = vld [vmem:[#allocation6 + $0x58] sm:$0xff] }
 0x127   :  { %4589 = vmatprep.subr.bf16.mxu1 %v4588_v15  ;;  %v361_v41 = vld [vmem:[#allocation6 + $0x3b0] sm:$0xff]  ;;  %v270_v44 = vld [vmem:[#allocation6 + $0xd8] sm:$0xff]  ;;  %v4604_v45 = vpack.c.bf16 %v300_v37, %v284_v36  ;;  %v283_v46 = vld [vmem:[#allocation6 + $0x140] sm:$0xff] }
 0x128   :  { %4575 = vmatpush1.bf16.msra.mxu0 %v4574_v6  ;;  %v299_v47 = vld [vmem:[#allocation6 + $0x1c0] sm:$0xff]  ;;  %v316_v48 = vld [vmem:[#allocation6 + $0x248] sm:$0xff]  ;;  %v4598_v50 = vpack.c.bf16 %v361_v41, %v345_v40  ;;  %v4616_v51 = vpack.c.bf16 %v270_v44, %v254_v43  ;;  %v253_v52 = vld [vmem:[#allocation6 + $0x50] sm:$0xff] }
 0x129   :  { %4577 = vmatprep.subr.bf16.mxu0 %v4576_v9  ;;  %v332_v49 = vld [vmem:[#allocation6 + $0x2c8] sm:$0xff]  ;;  %v269_v53 = vld [vmem:[#allocation6 + $0xd0] sm:$0xff]  ;;  %v4606_v54 = vpack.c.bf16 %v299_v47, %v283_v46  ;;  %v286_v55 = vld [vmem:[#allocation6 + $0x158] sm:$0xff] }
 0x12a   :  { %4591 = vmatpush1.bf16.msra.mxu1 %v4590_v26  ;;  %v302_v57 = vld [vmem:[#allocation6 + $0x1d8] sm:$0xff]  ;;  %v4608_v58 = vpack.c.bf16 %v332_v49, %v316_v48  ;;  %v315_v59 = vld [vmem:[#allocation6 + $0x240] sm:$0xff]  ;;  %v348_v61 = vld [vmem:[#allocation6 + $0x348] sm:$0xff]  ;;  %v4618_v63 = vpack.c.bf16 %v269_v53, %v253_v52 }
 0x12b   :  { %4593 = vmatprep.subr.bf16.mxu1 %v4592_v27  ;;  %v331_v60 = vld [vmem:[#allocation6 + $0x2c0] sm:$0xff]  ;;  %v364_v62 = vld [vmem:[#allocation6 + $0x3c8] sm:$0xff]  ;;  %v4620_v0 = vpack.c.bf16 %v302_v57, %v286_v55  ;;  %v285_v2 = vld [vmem:[#allocation6 + $0x150] sm:$0xff] }
 0x12c   :  { %4579 = vmatpush1.bf16.msra.mxu0 %v4578_v18  ;;  %v301_v3 = vld [vmem:[#allocation6 + $0x1d0] sm:$0xff]  ;;  %v4610_v4 = vpack.c.bf16 %v331_v60, %v315_v59  ;;  %v318_v5 = vld [vmem:[#allocation6 + $0x258] sm:$0xff]  ;;  %v4612_v7 = vpack.c.bf16 %v364_v62, %v348_v61  ;;  %v347_v8 = vld [vmem:[#allocation6 + $0x340] sm:$0xff] }
 0x12d   :  { %4581 = vmatprep.subr.bf16.mxu0 %v4580_v21  ;;  %v334_v6 = vld [vmem:[#allocation6 + $0x2d8] sm:$0xff]  ;;  %v363_v9 = vld [vmem:[#allocation6 + $0x3c0] sm:$0xff]  ;;  %v256_v10 = vld [vmem:[#allocation6 + $0x68] sm:$0xff]  ;;  %v4622_v12 = vpack.c.bf16 %v301_v3, %v285_v2 }
 0x12e   :  { %4595 = vmatpush1.bf16.msra.mxu1 %v4594_v38  ;;  %v272_v11 = vld [vmem:[#allocation6 + $0xe8] sm:$0xff]  ;;  %v4624_v13 = vpack.c.bf16 %v334_v6, %v318_v5  ;;  %v317_v14 = vld [vmem:[#allocation6 + $0x250] sm:$0xff]  ;;  %v4614_v16 = vpack.c.bf16 %v363_v9, %v347_v8  ;;  %v350_v17 = vld [vmem:[#allocation6 + $0x358] sm:$0xff] }
 0x12f   :  { %4597 = vmatprep.subr.bf16.mxu1 %v4596_v39  ;;  %v333_v15 = vld [vmem:[#allocation6 + $0x2d0] sm:$0xff]  ;;  %v366_v18 = vld [vmem:[#allocation6 + $0x3d8] sm:$0xff]  ;;  %v4632_v19 = vpack.c.bf16 %v272_v11, %v256_v10  ;;  %v255_v20 = vld [vmem:[#allocation6 + $0x60] sm:$0xff] }
 0x130   :  { %4583 = vmatpush1.bf16.msra.mxu0 %v4582_v30  ;;  %v271_v21 = vld [vmem:[#allocation6 + $0xe0] sm:$0xff]  ;;  %v288_v22 = vld [vmem:[#allocation6 + $0x168] sm:$0xff]  ;;  %v4626_v24 = vpack.c.bf16 %v333_v15, %v317_v14  ;;  %v4628_v25 = vpack.c.bf16 %v366_v18, %v350_v17  ;;  %v349_v26 = vld [vmem:[#allocation6 + $0x350] sm:$0xff] }
 0x131   :  { %4601 = vmatprep.subr.bf16.mxu0 %v4600_v33  ;;  %v304_v23 = vld [vmem:[#allocation6 + $0x1e8] sm:$0xff]  ;;  %v365_v27 = vld [vmem:[#allocation6 + $0x3d0] sm:$0xff]  ;;  %v4634_v28 = vpack.c.bf16 %v271_v21, %v255_v20  ;;  %v258_v29 = vld [vmem:[#allocation6 + $0x78] sm:$0xff] }
 0x132   :  { %4599 = vmatpush1.bf16.msra.mxu1 %v4598_v50  ;;  %v274_v30 = vld [vmem:[#allocation6 + $0xf8] sm:$0xff]  ;;  %v4636_v31 = vpack.c.bf16 %v304_v23, %v288_v22  ;;  %v287_v32 = vld [vmem:[#allocation6 + $0x160] sm:$0xff]  ;;  %v320_v34 = vld [vmem:[#allocation6 + $0x268] sm:$0xff]  ;;  %v4630_v36 = vpack.c.bf16 %v365_v27, %v349_v26 }
 0x133   :  { %4392 = vmatmul.mubr.msk.f32.vlgmr.msra.gmra.mrb[2].mxu0 %vm455_vm0, %v6721_v56  ;;  %4617 = vmatprep.subr.bf16.mxu1 %v4616_v51  ;;  %v303_v33 = vld [vmem:[#allocation6 + $0x1e0] sm:$0xff]  ;;  %v336_v35 = vld [vmem:[#allocation6 + $0x2e8] sm:$0xff]  ;;  %v4648_v37 = vpack.c.bf16 %v274_v30, %v258_v29  ;;  %v257_v38 = vld [vmem:[#allocation6 + $0x70] sm:$0xff] }
 0x134   :  { %4603 = vmatpush1.bf16.msra.mxu0 %v4602_v42  ;;  %807 = vmatprep.mubr.f32.mxu0 %v6404_v1  ;;  %v273_v39 = vld [vmem:[#allocation6 + $0xf0] sm:$0xff]  ;;  %v4638_v40 = vpack.c.bf16 %v303_v33, %v287_v32  ;;  %v290_v41 = vld [vmem:[#allocation6 + $0x178] sm:$0xff]  ;;  %v4640_v43 = vpack.c.bf16 %v336_v35, %v320_v34  ;;  %v319_v44 = vld [vmem:[#allocation6 + $0x260] sm:$0xff] }
 0x135   :  { %4605 = vmatprep.subr.bf16.mxu0 %v4604_v45  ;;  %4393 = vmatmul.mubr.msk.f32.vlgmr.msra.gmra.mrb[2].mxu1 %vm455_vm0, %v6721_v56  ;;  %v306_v42 = vld [vmem:[#allocation6 + $0x1f8] sm:$0xff]  ;;  %v335_v45 = vld [vmem:[#allocation6 + $0x2e0] sm:$0xff]  ;;  %v352_v46 = vld [vmem:[#allocation6 + $0x368] sm:$0xff]  ;;  %v4650_v48 = vpack.c.bf16 %v273_v39, %v257_v38 }
 0x136   :  { %4619 = vmatpush1.bf16.msra.mxu1 %v4618_v63  ;;  %878 = vmatprep.mubr.f32.mxu1 %v6404_v1  ;;  %v368_v47 = vld [vmem:[#allocation6 + $0x3e8] sm:$0xff]  ;;  %v4652_v49 = vpack.c.bf16 %v306_v42, %v290_v41  ;;  %v289_v50 = vld [vmem:[#allocation6 + $0x170] sm:$0xff]  ;;  %v4642_v52 = vpack.c.bf16 %v335_v45, %v319_v44  ;;  %v322_v53 = vld [vmem:[#allocation6 + $0x278] sm:$0xff] }
 0x137   :  { %4621 = vmatprep.subr.bf16.mxu1 %v4620_v0  ;;  %v305_v51 = vld [vmem:[#allocation6 + $0x1f0] sm:$0xff]  ;;  %v4644_v55 = vpack.c.bf16 %v368_v47, %v352_v46  ;;  %v351_v57 = vld [vmem:[#allocation6 + $0x360] sm:$0xff]  ;;  %v1056_v60 = vld [vmem:[#allocation9 + $0x8] sm:$0xff] }
 0x138   :  { %4607 = vmatpush1.bf16.msra.mxu0 %v4606_v54  ;;  %v338_v54 = vld [vmem:[#allocation6 + $0x2f8] sm:$0xff]  ;;  %v4654_v59 = vpack.c.bf16 %v305_v51, %v289_v50  ;;  %v321_v63 = vld [vmem:[#allocation6 + $0x270] sm:$0xff]  ;;  %v1058_v14 = vld [vmem:[#allocation9 + $0x18] sm:$0xff] }
 0x139   :  { %4609 = vmatprep.subr.bf16.mxu0 %v4608_v58  ;;  %v367_v58 = vld [vmem:[#allocation6 + $0x3e0] sm:$0xff]  ;;  %v1064_v61 = vld [vmem:[#allocation9 + $0x48] sm:$0xff]  ;;  %v4656_v62 = vpack.c.bf16 %v338_v54, %v322_v53  ;;  %v337_v0 = vld [vmem:[#allocation6 + $0x2f0] sm:$0xff] }
 0x13a   :  { %4623 = vmatpush1.bf16.msra.mxu1 %v4622_v12  ;;  %v4646_v2 = vpack.c.bf16 %v367_v58, %v351_v57  ;;  %v354_v3 = vld [vmem:[#allocation6 + $0x378] sm:$0xff]  ;;  %v4664_v5 = vpack.c.bf16 %v1064_v61, %v1056_v60  ;;  %v1055_v6 = vld [vmem:[#allocation9] sm:$0xff]  ;;  %v4658_v8 = vpack.c.bf16 %v337_v0, %v321_v63  ;;  %v1066_v15 = vld [vmem:[#allocation9 + $0x58] sm:$0xff] }
 0x13b   :  { %4625 = vmatprep.subr.bf16.mxu1 %v4624_v13  ;;  %v1072_v9 = vld [vmem:[#allocation9 + $0x88] sm:$0xff]  ;;  %v353_v12 = vld [vmem:[#allocation6 + $0x370] sm:$0xff]  ;;  %v4792_v21 = vpack.c.bf16 %v1066_v15, %v1058_v14  ;;  %v1057_v22 = vld [vmem:[#allocation9 + $0x10] sm:$0xff] }
 0x13c   :  { %4611 = vmatpush1.bf16.msra.mxu0 %v4610_v4  ;;  %v370_v4 = vld [vmem:[#allocation6 + $0x3f8] sm:$0xff]  ;;  %v369_v13 = vld [vmem:[#allocation6 + $0x3f0] sm:$0xff]  ;;  %v1065_v23 = vld [vmem:[#allocation9 + $0x50] sm:$0xff] }
 0x13d   :  { %4613 = vmatprep.subr.bf16.mxu0 %v4612_v7  ;;  %v1063_v7 = vld [vmem:[#allocation9 + $0x40] sm:$0xff]  ;;  %v1080_v10 = vld [vmem:[#allocation9 + $0xc8] sm:$0xff]  ;;  %v4660_v11 = vpack.c.bf16 %v370_v4, %v354_v3  ;;  %v4662_v20 = vpack.c.bf16 %v369_v13, %v353_v12  ;;  %v4794_v27 = vpack.c.bf16 %v1065_v23, %v1057_v22  ;;  %v1073_v29 = vld [vmem:[#allocation9 + $0x90] sm:$0xff] }
 0x13e   :  { %4627 = vmatpush1.bf16.msra.mxu1 %v4626_v24  ;;  %v4668_v17 = vpack.c.bf16 %v1080_v10, %v1072_v9  ;;  %v1071_v18 = vld [vmem:[#allocation9 + $0x80] sm:$0xff]  ;;  %v1074_v24 = vld [vmem:[#allocation9 + $0x98] sm:$0xff]  ;;  %v1081_v30 = vld [vmem:[#allocation9 + $0xd0] sm:$0xff] }
 0x13f   :  { %4629 = vmatprep.subr.bf16.mxu1 %v4628_v25  ;;  %v1082_v25 = vld [vmem:[#allocation9 + $0xd8] sm:$0xff]  ;;  %v1088_v32 = vld [vmem:[#allocation9 + $0x108] sm:$0xff]  ;;  %v1095_v38 = vld [vmem:[#allocation9 + $0x140] sm:$0xff] }
 0x140   :  { %4615 = vmatpush1.bf16.msra.mxu0 %v4614_v16  ;;  %v4666_v16 = vpack.c.bf16 %v1063_v7, %v1055_v6  ;;  %v1096_v33 = vld [vmem:[#allocation9 + $0x148] sm:$0xff]  ;;  %v1090_v34 = vld [vmem:[#allocation9 + $0x118] sm:$0xff]  ;;  %v1089_v41 = vld [vmem:[#allocation9 + $0x110] sm:$0xff] }
 0x141   :  { %4633 = vmatprep.subr.bf16.mxu0 %v4632_v19  ;;  %v1079_v19 = vld [vmem:[#allocation9 + $0xc0] sm:$0xff]  ;;  %v4672_v35 = vpack.c.bf16 %v1096_v33, %v1088_v32  ;;  %v1097_v42 = vld [vmem:[#allocation9 + $0x150] sm:$0xff]  ;;  %v1112_v44 = vld [vmem:[#allocation9 + $0x1c8] sm:$0xff] }
 0x142   :  { %4631 = vmatpush1.bf16.msra.mxu1 %v4630_v36  ;;  %v4670_v26 = vpack.c.bf16 %v1079_v19, %v1071_v18  ;;  %v1098_v36 = vld [vmem:[#allocation9 + $0x158] sm:$0xff]  ;;  %v1113_v53 = vld [vmem:[#allocation9 + $0x1d0] sm:$0xff]  ;;  %v1120_v54 = vld [vmem:[#allocation9 + $0x208] sm:$0xff] }
 0x143   :  { %4394 = vmatmul.mubr.msk.f32.vlgmr.msra.gmra.mrb[4].mxu0 %vm455_vm0, %v6721_v56  ;;  %4649 = vmatprep.subr.bf16.mxu1 %v4648_v37  ;;  %v1087_v37 = vld [vmem:[#allocation9 + $0x100] sm:$0xff]  ;;  %v4800_v39 = vpack.c.bf16 %v1098_v36, %v1090_v34  ;;  %v1106_v45 = vld [vmem:[#allocation9 + $0x198] sm:$0xff]  ;;  %v1128_v57 = vld [vmem:[#allocation9 + $0x248] sm:$0xff] }
 0x144   :  { %4635 = vmatpush1.bf16.msra.mxu0 %v4634_v28  ;;  %949 = vmatprep.mubr.f32.mxu0 %v6404_v1  ;;  %v4796_v28 = vpack.c.bf16 %v1082_v25, %v1074_v24  ;;  %v1114_v47 = vld [vmem:[#allocation9 + $0x1d8] sm:$0xff]  ;;  %v4680_v60 = vpack.c.bf16 %v1128_v57, %v1120_v54  ;;  %v1127_v63 = vld [vmem:[#allocation9 + $0x240] sm:$0xff]  ;;  %v1121_v0 = vld [vmem:[#allocation9 + $0x210] sm:$0xff] }
 0x145   :  { %4637 = vmatprep.subr.bf16.mxu0 %v4636_v31  ;;  %4395 = vmatmul.mubr.msk.f32.vlgmr.msra.gmra.mrb[4].mxu1 %vm455_vm0, %v6721_v56  ;;  %v4798_v31 = vpack.c.bf16 %v1081_v30, %v1073_v29  ;;  %v4804_v50 = vpack.c.bf16 %v1114_v47, %v1106_v45  ;;  %v1122_v58 = vld [vmem:[#allocation9 + $0x218] sm:$0xff]  ;;  %v1129_v3 = vld [vmem:[#allocation9 + $0x250] sm:$0xff]  ;;  %v1136_v4 = vld [vmem:[#allocation9 + $0x288] sm:$0xff] }
 0x146   :  { %4651 = vmatpush1.bf16.msra.mxu1 %v4650_v48  ;;  %1020 = vmatprep.mubr.f32.mxu1 %v6404_v1  ;;  %v1103_v48 = vld [vmem:[#allocation9 + $0x180] sm:$0xff]  ;;  %v4810_v6 = vpack.c.bf16 %v1129_v3, %v1121_v0  ;;  %v1146_v9 = vld [vmem:[#allocation9 + $0x2d8] sm:$0xff]  ;;  %v1137_v13 = vld [vmem:[#allocation9 + $0x290] sm:$0xff] }
 0x147   :  { %4653 = vmatprep.subr.bf16.mxu1 %v4652_v49  ;;  %v1111_v49 = vld [vmem:[#allocation9 + $0x1c0] sm:$0xff]  ;;  %v1145_v14 = vld [vmem:[#allocation9 + $0x2d0] sm:$0xff]  ;;  %v1160_v18 = vld [vmem:[#allocation9 + $0x348] sm:$0xff] }
 0x148   :  { %4639 = vmatpush1.bf16.msra.mxu0 %v4638_v40  ;;  %v4674_v40 = vpack.c.bf16 %v1095_v38, %v1087_v37  ;;  %v4678_v51 = vpack.c.bf16 %v1111_v49, %v1103_v48  ;;  %v1135_v10 = vld [vmem:[#allocation9 + $0x280] sm:$0xff]  ;;  %v1154_v19 = vld [vmem:[#allocation9 + $0x318] sm:$0xff]  ;;  %v1168_v29 = vld [vmem:[#allocation9 + $0x388] sm:$0xff] }
 0x149   :  { %4641 = vmatprep.subr.bf16.mxu0 %v4640_v43  ;;  %v4802_v43 = vpack.c.bf16 %v1097_v42, %v1089_v41  ;;  %v1143_v12 = vld [vmem:[#allocation9 + $0x2c0] sm:$0xff]  ;;  %v1176_v30 = vld [vmem:[#allocation9 + $0x3c8] sm:$0xff]  ;;  %v1178_v33 = vld [vmem:[#allocation9 + $0x3d8] sm:$0xff] }
 0x14a   :  { %4655 = vmatpush1.bf16.msra.mxu1 %v4654_v59  ;;  %v1130_v59 = vld [vmem:[#allocation9 + $0x258] sm:$0xff]  ;;  %v4686_v15 = vpack.c.bf16 %v1143_v12, %v1135_v10  ;;  %v1151_v22 = vld [vmem:[#allocation9 + $0x300] sm:$0xff]  ;;  %v4692_v32 = vpack.c.bf16 %v1176_v30, %v1168_v29  ;;  %v1169_v38 = vld [vmem:[#allocation9 + $0x390] sm:$0xff] }
 0x14b   :  { %4657 = vmatprep.subr.bf16.mxu1 %v4656_v62  ;;  %v4808_v61 = vpack.c.bf16 %v1130_v59, %v1122_v58  ;;  %v1119_v62 = vld [vmem:[#allocation9 + $0x200] sm:$0xff]  ;;  %v1184_v41 = vld [vmem:[#allocation9 + $0x408] sm:$0xff]  ;;  %v1185_v49 = vld [vmem:[#allocation9 + $0x410] sm:$0xff] }
 0x14c   :  { %4643 = vmatpush1.bf16.msra.mxu0 %v4642_v52  ;;  %v1105_v52 = vld [vmem:[#allocation9 + $0x190] sm:$0xff]  ;;  %v1159_v23 = vld [vmem:[#allocation9 + $0x340] sm:$0xff]  ;;  %v1192_v42 = vld [vmem:[#allocation9 + $0x448] sm:$0xff] }
 0x14d   :  { %4645 = vmatprep.subr.bf16.mxu0 %v4644_v55  ;;  %v4806_v55 = vpack.c.bf16 %v1113_v53, %v1105_v52  ;;  %v4690_v25 = vpack.c.bf16 %v1159_v23, %v1151_v22  ;;  %v1167_v34 = vld [vmem:[#allocation9 + $0x380] sm:$0xff]  ;;  %v1208_v53 = vld [vmem:[#allocation9 + $0x4c8] sm:$0xff]  ;;  %v1202_v54 = vld [vmem:[#allocation9 + $0x498] sm:$0xff] }
 0x14e   :  { %4659 = vmatpush1.bf16.msra.mxu1 %v4658_v8  ;;  %v1138_v8 = vld [vmem:[#allocation9 + $0x298] sm:$0xff]  ;;  %v1183_v45 = vld [vmem:[#allocation9 + $0x400] sm:$0xff]  ;;  %v1224_v3 = vld [vmem:[#allocation9 + $0x548] sm:$0xff] }
 0x14f   :  { %4661 = vmatprep.subr.bf16.mxu1 %v4660_v11  ;;  %v4812_v11 = vpack.c.bf16 %v1146_v9, %v1138_v8  ;;  %v1199_v59 = vld [vmem:[#allocation9 + $0x480] sm:$0xff]  ;;  %v1225_v12 = vld [vmem:[#allocation9 + $0x550] sm:$0xff]  ;;  %v1258_v29 = vld [vmem:[#allocation9 + $0x658] sm:$0xff] }
 0x150   :  { %4647 = vmatpush1.bf16.msra.mxu0 %v4646_v2  ;;  %v4682_v2 = vpack.c.bf16 %v1127_v63, %v1119_v62  ;;  %v1209_v63 = vld [vmem:[#allocation9 + $0x4d0] sm:$0xff]  ;;  %v1223_v8 = vld [vmem:[#allocation9 + $0x540] sm:$0xff] }
 0x151   :  { %4665 = vmatprep.subr.bf16.mxu0 %v4664_v5  ;;  %v1144_v5 = vld [vmem:[#allocation9 + $0x2c8] sm:$0xff]  ;;  %v1233_v23 = vld [vmem:[#allocation9 + $0x590] sm:$0xff] }
 0x152   :  { %4663 = vmatpush1.bf16.msra.mxu1 %v4662_v20  ;;  %v4684_v7 = vpack.c.bf16 %v1144_v5, %v1136_v4  ;;  %v1218_v4 = vld [vmem:[#allocation9 + $0x518] sm:$0xff] }
 0x153   :  { %4396 = vmatmul.mubr.msk.f32.vlgmr.msra.gmra.mrb[6].mxu0 %vm455_vm0, %v6721_v56  ;;  %4793 = vmatprep.subr.bf16.mxu1 %v4792_v21  ;;  %v1162_v21 = vld [vmem:[#allocation9 + $0x358] sm:$0xff] }
 0x154   :  { %4667 = vmatpush1.bf16.msra.mxu0 %v4666_v16  ;;  %v4814_v16 = vpack.c.bf16 %v1145_v14, %v1137_v13  ;;  %v4816_v24 = vpack.c.bf16 %v1162_v21, %v1154_v19  ;;  %v1232_v14 = vld [vmem:[#allocation9 + $0x588] sm:$0xff]  ;;  %v1231_v19 = vld [vmem:[#allocation9 + $0x580] sm:$0xff] }
 0x155   :  { %4669 = vmatprep.subr.bf16.mxu0 %v4668_v17  ;;  %4397 = vmatmul.mubr.msk.f32.vlgmr.msra.gmra.mrb[6].mxu1 %vm455_vm0, %v6721_v56  ;;  %v1104_v56 = vld [vmem:[#allocation9 + $0x188] sm:$0xff] }
 0x156   :  { %4795 = vmatpush1.bf16.msra.mxu1 %v4794_v27  ;;  %v4676_v46 = vpack.c.bf16 %v1112_v44, %v1104_v56  ;;  %v1152_v17 = vld [vmem:[#allocation9 + $0x308] sm:$0xff]  ;;  %v1161_v27 = vld [vmem:[#allocation9 + $0x350] sm:$0xff]  ;;  %v4696_v56 = vpack.c.bf16 %v1192_v42, %v1184_v41  ;;  %v1194_v44 = vld [vmem:[#allocation9 + $0x458] sm:$0xff] }
 0x157   :  { %4797 = vmatprep.subr.bf16.mxu1 %v4796_v28  ;;  %v4688_v20 = vpack.c.bf16 %v1160_v18, %v1152_v17  ;;  %v1242_v18 = vld [vmem:[#allocation9 + $0x5d8] sm:$0xff] }
 0x158   :  { %4671 = vmatpush1.bf16.msra.mxu0 %v4670_v26  ;;  %v1153_v26 = vld [vmem:[#allocation9 + $0x310] sm:$0xff]  ;;  %v1266_v41 = vld [vmem:[#allocation9 + $0x698] sm:$0xff] }
 0x159   :  { %4673 = vmatprep.subr.bf16.mxu0 %v4672_v35  ;;  %v4818_v28 = vpack.c.bf16 %v1161_v27, %v1153_v26  ;;  %v1175_v35 = vld [vmem:[#allocation9 + $0x3c0] sm:$0xff]  ;;  %v1256_v27 = vld [vmem:[#allocation9 + $0x648] sm:$0xff]  ;;  %v1274_v42 = vld [vmem:[#allocation9 + $0x6d8] sm:$0xff] }
 0x15a   :  { %4799 = vmatpush1.bf16.msra.mxu1 %v4798_v31  ;;  %v1170_v31 = vld [vmem:[#allocation9 + $0x398] sm:$0xff]  ;;  %v4694_v37 = vpack.c.bf16 %v1175_v35, %v1167_v34  ;;  %v1249_v34 = vld [vmem:[#allocation9 + $0x610] sm:$0xff] }
 0x15b   :  { %4801 = vmatprep.subr.bf16.mxu1 %v4800_v39  ;;  %v4820_v36 = vpack.c.bf16 %v1178_v33, %v1170_v31  ;;  %v1177_v39 = vld [vmem:[#allocation9 + $0x3d0] sm:$0xff]  ;;  %v1255_v33 = vld [vmem:[#allocation9 + $0x640] sm:$0xff] }
 0x15c   :  { %4675 = vmatpush1.bf16.msra.mxu0 %v4674_v40  ;;  %v4822_v40 = vpack.c.bf16 %v1177_v39, %v1169_v38  ;;  %v1272_v38 = vld [vmem:[#allocation9 + $0x6c8] sm:$0xff] }
 0x15d   :  { %4677 = vmatprep.subr.bf16.mxu0 %v4676_v46  ;;  %v1191_v46 = vld [vmem:[#allocation9 + $0x440] sm:$0xff] }
 0x15e   :  { %4803 = vmatpush1.bf16.msra.mxu1 %v4802_v43  ;;  %v1186_v43 = vld [vmem:[#allocation9 + $0x418] sm:$0xff]  ;;  %v4698_v48 = vpack.c.bf16 %v1191_v46, %v1183_v45  ;;  %v1265_v45 = vld [vmem:[#allocation9 + $0x690] sm:$0xff] }
 0x15f   :  { %4805 = vmatprep.subr.bf16.mxu1 %v4804_v50  ;;  %v4824_v47 = vpack.c.bf16 %v1194_v44, %v1186_v43  ;;  %v1193_v50 = vld [vmem:[#allocation9 + $0x450] sm:$0xff]  ;;  %v1263_v43 = vld [vmem:[#allocation9 + $0x680] sm:$0xff] }
 0x160   :  { %4679 = vmatpush1.bf16.msra.mxu0 %v4678_v51  ;;  %v1200_v51 = vld [vmem:[#allocation9 + $0x488] sm:$0xff]  ;;  %v4826_v52 = vpack.c.bf16 %v1193_v50, %v1185_v49  ;;  %v1271_v44 = vld [vmem:[#allocation9 + $0x6c0] sm:$0xff]  ;;  %v1273_v46 = vld [vmem:[#allocation9 + $0x6d0] sm:$0xff] }
 0x161   :  { %4681 = vmatprep.subr.bf16.mxu0 %v4680_v60  ;;  %v4700_v57 = vpack.c.bf16 %v1208_v53, %v1200_v51  ;;  %v1207_v60 = vld [vmem:[#allocation9 + $0x4c0] sm:$0xff]  ;;  %v1280_v49 = vld [vmem:[#allocation9 + $0x708] sm:$0xff]  ;;  %v1282_v51 = vld [vmem:[#allocation9 + $0x718] sm:$0xff] }
 0x162   :  { %4807 = vmatpush1.bf16.msra.mxu1 %v4806_v55  ;;  %v1210_v55 = vld [vmem:[#allocation9 + $0x4d8] sm:$0xff]  ;;  %v4702_v62 = vpack.c.bf16 %v1207_v60, %v1199_v59  ;;  %v1288_v50 = vld [vmem:[#allocation9 + $0x748] sm:$0xff]  ;;  %v1281_v59 = vld [vmem:[#allocation9 + $0x710] sm:$0xff] }
 0x163   :  { %4809 = vmatprep.subr.bf16.mxu1 %v4808_v61  ;;  %v4828_v58 = vpack.c.bf16 %v1210_v55, %v1202_v54  ;;  %v1201_v61 = vld [vmem:[#allocation9 + $0x490] sm:$0xff]  ;;  %v1290_v53 = vld [vmem:[#allocation9 + $0x758] sm:$0xff]  ;;  %v1279_v54 = vld [vmem:[#allocation9 + $0x700] sm:$0xff] }
 0x164   :  { %4683 = vmatpush1.bf16.msra.mxu0 %v4682_v2  ;;  %v4830_v0 = vpack.c.bf16 %v1209_v63, %v1201_v61  ;;  %v1216_v2 = vld [vmem:[#allocation9 + $0x508] sm:$0xff]  ;;  %v1287_v55 = vld [vmem:[#allocation9 + $0x740] sm:$0xff]  ;;  %v1289_v60 = vld [vmem:[#allocation9 + $0x750] sm:$0xff] }
 0x165   :  { %4685 = vmatprep.subr.bf16.mxu0 %v4684_v7  ;;  %v4704_v5 = vpack.c.bf16 %v1224_v3, %v1216_v2  ;;  %v1215_v7 = vld [vmem:[#allocation9 + $0x500] sm:$0xff]  ;;  %v4850_v61 = vpack.c.bf16 %v1289_v60, %v1281_v59  ;;  %v1304_v63 = vld [vmem:[#allocation9 + $0x7c8] sm:$0xff]  ;;  %v1306_v3 = vld [vmem:[#allocation9 + $0x7d8] sm:$0xff] }
 0x166   :  { %4811 = vmatpush1.bf16.msra.mxu1 %v4810_v6  ;;  %v1226_v6 = vld [vmem:[#allocation9 + $0x558] sm:$0xff]  ;;  %v4706_v10 = vpack.c.bf16 %v1223_v8, %v1215_v7  ;;  %v1297_v8 = vld [vmem:[#allocation9 + $0x790] sm:$0xff] }
 0x167   :  { %4813 = vmatprep.subr.bf16.mxu1 %v4812_v11  ;;  %v4832_v9 = vpack.c.bf16 %v1226_v6, %v1218_v4  ;;  %v1217_v11 = vld [vmem:[#allocation9 + $0x510] sm:$0xff]  ;;  %v1295_v4 = vld [vmem:[#allocation9 + $0x780] sm:$0xff] }
 0x168   :  { %4687 = vmatpush1.bf16.msra.mxu0 %v4686_v15  ;;  %v4834_v13 = vpack.c.bf16 %v1225_v12, %v1217_v11  ;;  %v1240_v15 = vld [vmem:[#allocation9 + $0x5c8] sm:$0xff] }
 0x169   :  { %4689 = vmatprep.subr.bf16.mxu0 %v4688_v20  ;;  %v4708_v17 = vpack.c.bf16 %v1240_v15, %v1232_v14  ;;  %v1239_v20 = vld [vmem:[#allocation9 + $0x5c0] sm:$0xff]  ;;  %v1312_v11 = vld [vmem:[#allocation9 + $0x808] sm:$0xff]  ;;  %v1322_v15 = vld [vmem:[#allocation9 + $0x858] sm:$0xff] }
 0x16a   :  { %4815 = vmatpush1.bf16.msra.mxu1 %v4814_v16  ;;  %v1234_v16 = vld [vmem:[#allocation9 + $0x598] sm:$0xff]  ;;  %v4710_v22 = vpack.c.bf16 %v1239_v20, %v1231_v19  ;;  %v1320_v12 = vld [vmem:[#allocation9 + $0x848] sm:$0xff] }
 0x16b   :  { %4817 = vmatprep.subr.bf16.mxu1 %v4816_v24  ;;  %v4836_v21 = vpack.c.bf16 %v1242_v18, %v1234_v16  ;;  %v1241_v24 = vld [vmem:[#allocation9 + $0x5d0] sm:$0xff]  ;;  %v4728_v14 = vpack.c.bf16 %v1320_v12, %v1312_v11 }
 0x16c   :  { %4691 = vmatpush1.bf16.msra.mxu0 %v4690_v25  ;;  %v1248_v25 = vld [vmem:[#allocation9 + $0x608] sm:$0xff]  ;;  %v4838_v26 = vpack.c.bf16 %v1241_v24, %v1233_v23  ;;  %v371_v24 = vld [vmem:[#allocation8] sm:$0xff] }
 0x16d   :  { %4693 = vmatprep.subr.bf16.mxu0 %v4692_v32  ;;  %v4712_v30 = vpack.c.bf16 %v1256_v27, %v1248_v25  ;;  %v1247_v32 = vld [vmem:[#allocation9 + $0x600] sm:$0xff] }
 0x16e   :  { %4819 = vmatpush1.bf16.msra.mxu1 %v4818_v28  ;;  %v1250_v28 = vld [vmem:[#allocation9 + $0x618] sm:$0xff]  ;;  %v4714_v35 = vpack.c.bf16 %v1255_v33, %v1247_v32 }
 0x16f   :  { %4821 = vmatprep.subr.bf16.mxu1 %v4820_v36  ;;  %v4840_v31 = vpack.c.bf16 %v1258_v29, %v1250_v28  ;;  %v1257_v36 = vld [vmem:[#allocation9 + $0x650] sm:$0xff] }
 0x170   :  { %4695 = vmatpush1.bf16.msra.mxu0 %v4694_v37  ;;  %v1264_v37 = vld [vmem:[#allocation9 + $0x688] sm:$0xff]  ;;  %v4842_v39 = vpack.c.bf16 %v1257_v36, %v1249_v34 }
 0x171   :  { %4697 = vmatprep.subr.bf16.mxu0 %v4696_v56  ;;  %v4844_v56 = vpack.c.bf16 %v1274_v42, %v1266_v41 }
 0x172   :  { %4823 = vmatpush1.bf16.msra.mxu1 %v4822_v40  ;;  %v4716_v40 = vpack.c.bf16 %v1272_v38, %v1264_v37 }
 0x173   :  { %4825 = vmatprep.subr.bf16.mxu1 %v4824_v47  ;;  %v4718_v47 = vpack.c.bf16 %v1271_v44, %v1263_v43 }
 0x174   :  { %4699 = vmatpush1.bf16.msra.mxu0 %v4698_v48  ;;  %v4846_v48 = vpack.c.bf16 %v1273_v46, %v1265_v45 }
 0x175   :  { %4701 = vmatprep.subr.bf16.mxu0 %v4700_v57  ;;  %v4848_v57 = vpack.c.bf16 %v1290_v53, %v1282_v51 }
 0x176   :  { %4827 = vmatpush1.bf16.msra.mxu1 %v4826_v52  ;;  %v4720_v52 = vpack.c.bf16 %v1288_v50, %v1280_v49 }
 0x177   :  { %4829 = vmatprep.subr.bf16.mxu1 %v4828_v58  ;;  %v4722_v58 = vpack.c.bf16 %v1287_v55, %v1279_v54 }
 0x178   :  { %4703 = vmatpush1.bf16.msra.mxu0 %v4702_v62  ;;  %v1296_v62 = vld [vmem:[#allocation9 + $0x788] sm:$0xff] }
 0x179   :  { %4705 = vmatprep.subr.bf16.mxu0 %v4704_v5  ;;  %v4724_v2 = vpack.c.bf16 %v1304_v63, %v1296_v62  ;;  %v1303_v5 = vld [vmem:[#allocation9 + $0x7c0] sm:$0xff] }
 0x17a   :  { %4831 = vmatpush1.bf16.msra.mxu1 %v4830_v0  ;;  %v1298_v0 = vld [vmem:[#allocation9 + $0x798] sm:$0xff]  ;;  %v4726_v7 = vpack.c.bf16 %v1303_v5, %v1295_v4 }
 0x17b   :  { %4833 = vmatprep.subr.bf16.mxu1 %v4832_v9  ;;  %v4852_v6 = vpack.c.bf16 %v1306_v3, %v1298_v0  ;;  %v1305_v9 = vld [vmem:[#allocation9 + $0x7d0] sm:$0xff]  ;;  %v372_v3 = vld [vmem:[#allocation8 + $0x8] sm:$0xff] }
 0x17c   :  { %4707 = vmatpush1.bf16.msra.mxu0 %v4706_v10  ;;  %v4854_v10 = vpack.c.bf16 %v1305_v9, %v1297_v8 }
 0x17d   :  { %4709 = vmatprep.subr.bf16.mxu0 %v4708_v17  ;;  %v375_v17 = vlaneseq }
 0x17e   :  { %4835 = vmatpush1.bf16.msra.mxu1 %v4834_v13  ;;  %v1314_v13 = vld [vmem:[#allocation9 + $0x818] sm:$0xff] }
 0x17f   :  { %4837 = vmatprep.subr.bf16.mxu1 %v4836_v21  ;;  %v4856_v16 = vpack.c.bf16 %v1322_v15, %v1314_v13  ;;  %v376_v20 = vshrl.u32 %v375_v17, 7 }
 0x180   :  { %4711 = vmatpush1.bf16.msra.mxu0 %v4710_v22 }
 0x181   :  { %4713 = vmatprep.subr.bf16.mxu0 %v4712_v30  ;;  %v6745_v22 = vsub.s32 0, %v376_v20  ;;  %v6747_v25 = vsub.s32 1, %v376_v20  ;;  %v6751_v27 = vsub.s32 5, %v376_v20  ;;  %v6754_v29 = vsub.s32 2, %v376_v20 }
 0x182   :  { %4839 = vmatpush1.bf16.msra.mxu1 %v4838_v26  ;;  %v6749_v26 = vsub.s32 4, %v376_v20  ;;  %v6762_v36 = vsub.s32 6, %v376_v20 }
 0x183   :  { %4841 = vmatprep.subr.bf16.mxu1 %v4840_v31  ;;  %v378_v28 = vrot.slane %v371_v24, %v6745_v22  ;;  %v382_v30 = vrot.slane %v371_v24, %v6747_v25  ;;  %v6757_v31 = vsub.s32 3, %v376_v20  ;;  %v398_v33 = vrot.slane %v371_v24, %v6751_v27 }
 0x184   :  { %4715 = vmatpush1.bf16.msra.mxu0 %v4714_v35  ;;  %v394_v32 = vrot.slane %v371_v24, %v6749_v26  ;;  %v386_v35 = vrot.slane %v371_v24, %v6754_v29  ;;  %v402_v46 = vrot.slane %v371_v24, %v6762_v36  ;;  %v418_v4 = vrot.slane %v372_v3, %v6754_v29 }
 0x185   :  { %4717 = vmatprep.subr.bf16.mxu0 %v4716_v40  ;;  %v6765_v40 = vsub.s32 7, %v376_v20  ;;  %v410_v8 = vrot.slane %v372_v3, %v6745_v22  ;;  %v414_v9 = vrot.slane %v372_v3, %v6747_v25  ;;  %v430_v11 = vrot.slane %v372_v3, %v6751_v27 }
 0x186   :  { %4843 = vmatpush1.bf16.msra.mxu1 %v4842_v39  ;;  %v390_v39 = vrot.slane %v371_v24, %v6757_v31  ;;  %v422_v15 = vrot.slane %v372_v3, %v6757_v31 }
 0x187   :  { %4845 = vmatprep.subr.bf16.mxu1 %v4844_v56  ;;  %v406_v50 = vrot.slane %v371_v24, %v6765_v40 }
 0x188   :  { %4719 = vmatpush1.bf16.msra.mxu0 %v4718_v47 }
 0x189   :  { %4721 = vmatprep.subr.bf16.mxu0 %v4720_v52 }
 0x18a   :  { %4847 = vmatpush1.bf16.msra.mxu1 %v4846_v48 }
 0x18b   :  { %4849 = vmatprep.subr.bf16.mxu1 %v4848_v57 }
 0x18c   :  { %4723 = vmatpush1.bf16.msra.mxu0 %v4722_v58 }
 0x18d   :  { %4725 = vmatprep.subr.bf16.mxu0 %v4724_v2 }
 0x18e   :  { %4851 = vmatpush1.bf16.msra.mxu1 %v4850_v61 }
 0x18f   :  { %4853 = vmatprep.subr.bf16.mxu1 %v4852_v6 }
 0x190   :  { %4727 = vmatpush1.bf16.msra.mxu0 %v4726_v7 }
 0x191   :  { %4729 = vmatprep.subr.bf16.mxu0 %v4728_v14 }
 0x192   :  { %4855 = vmatpush1.bf16.msra.mxu1 %v4854_v10  ;;  %v426_v10 = vrot.slane %v372_v3, %v6749_v26 }
 0x193   :  { %4857 = vmatprep.subr.bf16.mxu1 %v4856_v16 }
 0x1f6   :  { %v525_v18 = vpop.f32.mrb[0].mxu0 }
 0x1f7   :  { %v527_v19 = vpop.f32.mrb[1].mxu0  ;;  %v526_v34 = vadd.f32 %v525_v18, %v378_v28  ;;  %v1311_v28 = vld [vmem:[#allocation9 + $0x800] sm:$0xff] }
 0x1f8   :  { %v596_v21 = vpop.f32.mrb[0].mxu1  ;;  %v528_v37 = vadd.f32 %v527_v19, %v382_v30  ;;  %v1319_v30 = vld [vmem:[#allocation9 + $0x840] sm:$0xff] }
 0x1f9   :  { %v598_v23 = vpop.f32.mrb[1].mxu1  ;;  %v1027_v56 = vmax.f32 %v526_v34, 0.0  ;;  %v597_v45 = vadd.f32 %v596_v21, %v386_v35  ;;  %v434_v21 = vrot.slane %v372_v3, %v6762_v36  ;;  %v1313_v35 = vld [vmem:[#allocation9 + $0x810] sm:$0xff] }
 0x1fa   :  { %v1028_v47 = vmax.f32 %v528_v37, 0.0  ;;  %v599_v49 = vadd.f32 %v598_v23, %v390_v39  ;;  %v1321_v37 = vld [vmem:[#allocation9 + $0x850] sm:$0xff] }
 0x1fb   :  { %v1029_v54 = vmax.f32 %v597_v45, 0.0  ;;  %v4730_v45 = vpack.c.bf16 %v1319_v30, %v1311_v28  ;;  %v1367_v28 = vld [vmem:[#allocation9 + $0x9c0] sm:$0xff] }
 0x1fc   :  { %v1030_v58 = vmax.f32 %v599_v49, 0.0 }
 0x206   :  { %v667_v38 = vpop.f32.mrb[2].mxu0 }
 0x207   :  { %v668_v41 = vadd.f32 %v667_v38, %v394_v32  ;;  %v669_v42 = vpop.f32.mrb[3].mxu0  ;;  %v1328_v38 = vld [vmem:[#allocation9 + $0x888] sm:$0xff] }
 0x208   :  { %v670_v43 = vadd.f32 %v669_v42, %v398_v33  ;;  %v738_v53 = vpop.f32.mrb[2].mxu1  ;;  %v438_v33 = vrot.slane %v372_v3, %v6765_v40  ;;  %v1330_v42 = vld [vmem:[#allocation9 + $0x898] sm:$0xff]  ;;  %v1352_v3 = vld [vmem:[#allocation9 + $0x948] sm:$0xff] }
 0x209   :  { %v1031_v44 = vmax.f32 %v668_v41, 0.0  ;;  %v739_v55 = vadd.f32 %v738_v53, %v402_v46  ;;  %v740_v57 = vpop.f32.mrb[3].mxu1  ;;  %v1336_v41 = vld [vmem:[#allocation9 + $0x8c8] sm:$0xff] }
 0x20a   :  { %v1032_v48 = vmax.f32 %v670_v43, 0.0  ;;  %v741_v59 = vadd.f32 %v740_v57, %v406_v50  ;;  %v1338_v43 = vld [vmem:[#allocation9 + $0x8d8] sm:$0xff]  ;;  %v4858_v50 = vpack.c.bf16 %v1321_v37, %v1313_v35  ;;  %v1384_v35 = vld [vmem:[#allocation9 + $0xa48] sm:$0xff] }
 0x20b   :  { %v1043_v51 = vmax.f32 %v1027_v56, %v1031_v44  ;;  %v1033_v60 = vmax.f32 %v739_v55, 0.0  ;;  %v1335_v55 = vld [vmem:[#allocation9 + $0x8c0] sm:$0xff]  ;;  %v1386_v37 = vld [vmem:[#allocation9 + $0xa58] sm:$0xff] }
 0x20c   :  { %v1044_v52 = vmax.f32 %v1028_v47, %v1032_v48  ;;  %v1034_v61 = vmax.f32 %v741_v59, 0.0  ;;  %v4860_v59 = vpack.c.bf16 %v1338_v43, %v1330_v42  ;;  %v1383_v42 = vld [vmem:[#allocation9 + $0xa40] sm:$0xff] }
 0x20d   :  { %v6769_v62 = vmax.f32 %v1029_v54, %v1033_v60  ;;  %v1327_v54 = vld [vmem:[#allocation9 + $0x880] sm:$0xff]  ;;  %v1329_v60 = vld [vmem:[#allocation9 + $0x890] sm:$0xff] }
 0x20e   :  { %v6771_v63 = vmax.f32 %v1030_v58, %v1034_v61  ;;  %v4732_v58 = vpack.c.bf16 %v1336_v41, %v1328_v38  ;;  %v1337_v61 = vld [vmem:[#allocation9 + $0x8d0] sm:$0xff]  ;;  %v1375_v41 = vld [vmem:[#allocation9 + $0xa00] sm:$0xff] }
 0x216   :  { %v809_v0 = vpop.f32.mrb[4].mxu0 }
 0x217   :  { %v811_v2 = vpop.f32.mrb[5].mxu0  ;;  %v810_v12 = vadd.f32 %v809_v0, %v410_v8 }
 0x218   :  { %v880_v5 = vpop.f32.mrb[4].mxu1  ;;  %v812_v13 = vadd.f32 %v811_v2, %v414_v9  ;;  %v1344_v2 = vld [vmem:[#allocation9 + $0x908] sm:$0xff]  ;;  %v1343_v9 = vld [vmem:[#allocation9 + $0x900] sm:$0xff] }
 0x219   :  { %v881_v6 = vadd.f32 %v880_v5, %v418_v4  ;;  %v882_v7 = vpop.f32.mrb[5].mxu1  ;;  %v1035_v19 = vmax.f32 %v810_v12, 0.0  ;;  %v1346_v4 = vld [vmem:[#allocation9 + $0x918] sm:$0xff]  ;;  %v4736_v12 = vpack.c.bf16 %v1352_v3, %v1344_v2  ;;  %v1408_v2 = vld [vmem:[#allocation9 + $0xb08] sm:$0xff] }
 0x21a   :  { %v1036_v23 = vmax.f32 %v812_v13, 0.0  ;;  %v883_v32 = vadd.f32 %v882_v7, %v422_v15  ;;  %v4862_v7 = vpack.c.bf16 %v1337_v61, %v1329_v60  ;;  %v1353_v15 = vld [vmem:[#allocation9 + $0x950] sm:$0xff]  ;;  %v1410_v3 = vld [vmem:[#allocation9 + $0xb18] sm:$0xff] }
 0x21b   :  { %v1037_v46 = vmax.f32 %v881_v6, 0.0  ;;  %v4734_v6 = vpack.c.bf16 %v1335_v55, %v1327_v54  ;;  %v4746_v54 = vpack.c.bf16 %v1383_v42, %v1375_v41  ;;  %v1393_v61 = vld [vmem:[#allocation9 + $0xa90] sm:$0xff] }
 0x21c   :  { %v1038_v53 = vmax.f32 %v883_v32, 0.0  ;;  %v1361_v32 = vld [vmem:[#allocation9 + $0x990] sm:$0xff] }
 0x21d   :  { %v1441_v42 = vld [vmem:[#allocation9 + $0xc10] sm:$0xff] }
 0x226   :  { %v951_v14 = vpop.f32.mrb[6].mxu0 }
 0x227   :  { %v952_v16 = vadd.f32 %v951_v14, %v426_v10  ;;  %v953_v17 = vpop.f32.mrb[7].mxu0  ;;  %v1351_v10 = vld [vmem:[#allocation9 + $0x940] sm:$0xff]  ;;  %v1345_v14 = vld [vmem:[#allocation9 + $0x910] sm:$0xff] }
 0x228   :  { %v954_v18 = vadd.f32 %v953_v17, %v430_v11  ;;  %v1022_v56 = vpop.f32.mrb[6].mxu1 }
 0x229   :  { %v1039_v20 = vmax.f32 %v952_v16, 0.0  ;;  %v1023_v47 = vadd.f32 %v1022_v56, %v434_v21  ;;  %v1024_v48 = vpop.f32.mrb[7].mxu1  ;;  %v1360_v16 = vld [vmem:[#allocation9 + $0x988] sm:$0xff]  ;;  %v4738_v21 = vpack.c.bf16 %v1351_v10, %v1343_v9  ;;  %v1409_v10 = vld [vmem:[#allocation9 + $0xb10] sm:$0xff] }
 0x22a   :  { %v1040_v24 = vmax.f32 %v954_v18, 0.0  ;;  %v1025_v57 = vadd.f32 %v1024_v48, %v438_v33  ;;  %v1368_v18 = vld [vmem:[#allocation9 + $0x9c8] sm:$0xff]  ;;  %v1369_v33 = vld [vmem:[#allocation9 + $0x9d0] sm:$0xff] }
 0x22b   :  { %v1047_v34 = vmax.f32 %v1035_v19, %v1039_v20  ;;  %v1041_v0 = vmax.f32 %v1023_v47, 0.0  ;;  %v1362_v19 = vld [vmem:[#allocation9 + $0x998] sm:$0xff]  ;;  %v1392_v47 = vld [vmem:[#allocation9 + $0xa88] sm:$0xff] }
 0x22c   :  { %v1048_v39 = vmax.f32 %v1036_v23, %v1040_v24  ;;  %v1370_v20 = vld [vmem:[#allocation9 + $0x9d8] sm:$0xff]  ;;  %v4866_v23 = vpack.c.bf16 %v1353_v15, %v1345_v14  ;;  %v1359_v24 = vld [vmem:[#allocation9 + $0x980] sm:$0xff]  ;;  %v1400_v48 = vld [vmem:[#allocation9 + $0xac8] sm:$0xff] }
 0x22d   :  { %v6781_v44 = vmax.f32 %v1043_v51, %v1047_v34  ;;  %v1042_v51 = vmax.f32 %v1025_v57, 0.0  ;;  %v1049_v5 = vmax.f32 %v1037_v46, %v1041_v0  ;;  %v4868_v30 = vpack.c.bf16 %v1370_v20, %v1362_v19  ;;  %v1376_v34 = vld [vmem:[#allocation9 + $0xa08] sm:$0xff]  ;;  %v1385_v46 = vld [vmem:[#allocation9 + $0xa50] sm:$0xff]  ;;  %v1391_v57 = vld [vmem:[#allocation9 + $0xa80] sm:$0xff] }
 0x22e   :  { %v6783_v49 = vmax.f32 %v1044_v52, %v1048_v39  ;;  %v1354_v52 = vld [vmem:[#allocation9 + $0x958] sm:$0xff]  ;;  %v4742_v38 = vpack.c.bf16 %v1367_v28, %v1359_v24  ;;  %v4870_v39 = vpack.c.bf16 %v1369_v33, %v1361_v32  ;;  %v4744_v43 = vpack.c.bf16 %v1384_v35, %v1376_v34  ;;  %v1401_v0 = vld [vmem:[#allocation9 + $0xad0] sm:$0xff]  ;;  %v1432_v14 = vld [vmem:[#allocation9 + $0xbc8] sm:$0xff] }
 0x22f   :  { %v1050_v8 = vmax.f32 %v1038_v53, %v1042_v51  ;;  %v6790_v11 = vmax.f32 %v6769_v62, %v1049_v5  ;;  %v4864_v13 = vpack.c.bf16 %v1354_v52, %v1346_v4  ;;  %v4740_v62 = vpack.c.bf16 %v1368_v18, %v1360_v16  ;;  %v1402_v53 = vld [vmem:[#allocation9 + $0xad8] sm:$0xff]  ;;  %v1416_v51 = vld [vmem:[#allocation9 + $0xb48] sm:$0xff]  ;;  %v1423_v20 = vld [vmem:[#allocation9 + $0xb80] sm:$0xff] }
 0x230   :  { %1673 = vmatprep.mubr.f32.mxu0 %v6783_v49  ;;  %1815 = vmatprep.mubr.f32.mxu1 %v6783_v49  ;;  %v1418_v4 = vld [vmem:[#allocation9 + $0xb58] sm:$0xff]  ;;  %v4878_v5 = vpack.c.bf16 %v1401_v0, %v1393_v61  ;;  %v1425_v28 = vld [vmem:[#allocation9 + $0xb90] sm:$0xff]  ;;  %v1448_v32 = vld [vmem:[#allocation9 + $0xc48] sm:$0xff] }
 0x231   :  { %1674 = vmatmul.mubr.f32.vlgmr.msra.gmra.mrb[8].mxu0 %v6781_v44  ;;  %1816 = vmatmul.mubr.f32.vlgmr.msra.gmra.mrb[8].mxu1 %v6781_v44  ;;  %v6793_v17 = vmax.f32 %v6771_v63, %v1050_v8  ;;  %v1378_v63 = vld [vmem:[#allocation9 + $0xa18] sm:$0xff]  ;;  %v4752_v8 = vpack.c.bf16 %v1416_v51, %v1408_v2  ;;  %v4880_v9 = vpack.c.bf16 %v1418_v4, %v1410_v3  ;;  %v1480_v61 = vld [vmem:[#allocation9 + $0xd48] sm:$0xff]  ;;  %v1471_v4 = vld [vmem:[#allocation9 + $0xd00] sm:$0xff] }
 0x232   :  { %4731 = vmatpush1.bf16.msra.mxu0 %v4730_v45  ;;  %4859 = vmatpush1.bf16.msra.mxu1 %v4858_v50  ;;  %v4872_v56 = vpack.c.bf16 %v1386_v37, %v1378_v63  ;;  %v1377_v45 = vld [vmem:[#allocation9 + $0xa10] sm:$0xff]  ;;  %v1394_v50 = vld [vmem:[#allocation9 + $0xa98] sm:$0xff]  ;;  %v1439_v37 = vld [vmem:[#allocation9 + $0xc00] sm:$0xff] }
 0x233   :  { %4733 = vmatprep.subr.bf16.mxu0 %v4732_v58  ;;  %4861 = vmatprep.subr.bf16.mxu1 %v4860_v59  ;;  %v4874_v55 = vpack.c.bf16 %v1385_v46, %v1377_v45  ;;  %v1399_v58 = vld [vmem:[#allocation9 + $0xac0] sm:$0xff]  ;;  %v4748_v59 = vpack.c.bf16 %v1400_v48, %v1392_v47  ;;  %v4876_v60 = vpack.c.bf16 %v1402_v53, %v1394_v50  ;;  %v1426_v15 = vld [vmem:[#allocation9 + $0xb98] sm:$0xff]  ;;  %v1464_v45 = vld [vmem:[#allocation9 + $0xcc8] sm:$0xff] }
 0x234   :  { %1744 = vmatprep.mubr.f32.mxu0 %v6793_v17  ;;  %1886 = vmatprep.mubr.f32.mxu1 %v6793_v17  ;;  %v4750_v52 = vpack.c.bf16 %v1399_v58, %v1391_v57  ;;  %v1434_v16 = vld [vmem:[#allocation9 + $0xbd8] sm:$0xff]  ;;  %v1455_v53 = vld [vmem:[#allocation9 + $0xc80] sm:$0xff]  ;;  %v1457_v58 = vld [vmem:[#allocation9 + $0xc90] sm:$0xff] }
 0x235   :  { %v4884_v24 = vpack.c.bf16 %v1434_v16, %v1426_v15  ;;  %v1442_v33 = vld [vmem:[#allocation9 + $0xc18] sm:$0xff]  ;;  %v1487_v16 = vld [vmem:[#allocation9 + $0xd80] sm:$0xff] }
 0x236   :  { %4735 = vmatpush1.bf16.msra.mxu0 %v4734_v6  ;;  %4863 = vmatpush1.bf16.msra.mxu1 %v4862_v7  ;;  %v1407_v6 = vld [vmem:[#allocation9 + $0xb00] sm:$0xff]  ;;  %v1450_v34 = vld [vmem:[#allocation9 + $0xc58] sm:$0xff] }
 0x237   :  { %4737 = vmatprep.subr.bf16.mxu0 %v4736_v12  ;;  %4865 = vmatprep.subr.bf16.mxu1 %v4864_v13  ;;  %v1415_v7 = vld [vmem:[#allocation9 + $0xb40] sm:$0xff]  ;;  %v1417_v12 = vld [vmem:[#allocation9 + $0xb50] sm:$0xff]  ;;  %v1424_v13 = vld [vmem:[#allocation9 + $0xb88] sm:$0xff]  ;;  %v4888_v41 = vpack.c.bf16 %v1450_v34, %v1442_v33 }
 0x238   :  { %v4754_v18 = vpack.c.bf16 %v1415_v7, %v1407_v6  ;;  %v4882_v19 = vpack.c.bf16 %v1417_v12, %v1409_v10  ;;  %v1458_v46 = vld [vmem:[#allocation9 + $0xc98] sm:$0xff]  ;;  %v1473_v7 = vld [vmem:[#allocation9 + $0xd10] sm:$0xff]  ;;  %v1496_v10 = vld [vmem:[#allocation9 + $0xdc8] sm:$0xff] }
 0x239   :  { %v1466_v47 = vld [vmem:[#allocation9 + $0xcd8] sm:$0xff]  ;;  %v1503_v34 = vld [vmem:[#allocation9 + $0xe00] sm:$0xff] }
 0x23a   :  { %4739 = vmatpush1.bf16.msra.mxu0 %v4738_v21  ;;  %4867 = vmatpush1.bf16.msra.mxu1 %v4866_v23  ;;  %v1431_v21 = vld [vmem:[#allocation9 + $0xbc0] sm:$0xff]  ;;  %v4756_v23 = vpack.c.bf16 %v1432_v14, %v1424_v13  ;;  %v4892_v57 = vpack.c.bf16 %v1466_v47, %v1458_v46  ;;  %v1474_v0 = vld [vmem:[#allocation9 + $0xd18] sm:$0xff] }
 0x23b   :  { %4741 = vmatprep.subr.bf16.mxu0 %v4740_v62  ;;  %4869 = vmatprep.subr.bf16.mxu1 %v4868_v30  ;;  %v1433_v62 = vld [vmem:[#allocation9 + $0xbd0] sm:$0xff]  ;;  %v1440_v30 = vld [vmem:[#allocation9 + $0xc08] sm:$0xff]  ;;  %v4758_v35 = vpack.c.bf16 %v1431_v21, %v1423_v20  ;;  %v1482_v2 = vld [vmem:[#allocation9 + $0xd58] sm:$0xff] }
 0x23c   :  { %v4886_v63 = vpack.c.bf16 %v1433_v62, %v1425_v28  ;;  %v4896_v6 = vpack.c.bf16 %v1482_v2, %v1474_v0  ;;  %v1490_v12 = vld [vmem:[#allocation9 + $0xd98] sm:$0xff]  ;;  %v1489_v21 = vld [vmem:[#allocation9 + $0xd90] sm:$0xff]  ;;  %v1512_v28 = vld [vmem:[#allocation9 + $0xe48] sm:$0xff] }
 0x23d   :  { %v1498_v13 = vld [vmem:[#allocation9 + $0xdd8] sm:$0xff]  ;;  %v1519_v47 = vld [vmem:[#allocation9 + $0xe80] sm:$0xff] }
 0x23e   :  { %4743 = vmatpush1.bf16.msra.mxu0 %v4742_v38  ;;  %4871 = vmatpush1.bf16.msra.mxu1 %v4870_v39  ;;  %v1447_v38 = vld [vmem:[#allocation9 + $0xc40] sm:$0xff]  ;;  %v4760_v39 = vpack.c.bf16 %v1448_v32, %v1440_v30  ;;  %v4900_v20 = vpack.c.bf16 %v1498_v13, %v1490_v12  ;;  %v1506_v62 = vld [vmem:[#allocation9 + $0xe18] sm:$0xff] }
 0x23f   :  { %4745 = vmatprep.subr.bf16.mxu0 %v4744_v43  ;;  %4873 = vmatprep.subr.bf16.mxu1 %v4872_v56  ;;  %v1449_v43 = vld [vmem:[#allocation9 + $0xc50] sm:$0xff]  ;;  %v1456_v56 = vld [vmem:[#allocation9 + $0xc88] sm:$0xff]  ;;  %v4762_v48 = vpack.c.bf16 %v1447_v38, %v1439_v37  ;;  %v1514_v30 = vld [vmem:[#allocation9 + $0xe58] sm:$0xff] }
 0x240   :  { %v4890_v50 = vpack.c.bf16 %v1449_v43, %v1441_v42  ;;  %v4904_v37 = vpack.c.bf16 %v1514_v30, %v1506_v62  ;;  %v1505_v38 = vld [vmem:[#allocation9 + $0xe10] sm:$0xff]  ;;  %v1528_v42 = vld [vmem:[#allocation9 + $0xec8] sm:$0xff]  ;;  %v1522_v43 = vld [vmem:[#allocation9 + $0xe98] sm:$0xff] }
 0x241   :  { %v1535_v2 = vld [vmem:[#allocation9 + $0xf00] sm:$0xff] }
 0x242   :  { %4747 = vmatpush1.bf16.msra.mxu0 %v4746_v54  ;;  %4875 = vmatpush1.bf16.msra.mxu1 %v4874_v55  ;;  %v1463_v54 = vld [vmem:[#allocation9 + $0xcc0] sm:$0xff]  ;;  %v4764_v55 = vpack.c.bf16 %v1464_v45, %v1456_v56  ;;  %v1530_v56 = vld [vmem:[#allocation9 + $0xed8] sm:$0xff] }
 0x243   :  { %4749 = vmatprep.subr.bf16.mxu0 %v4748_v59  ;;  %4877 = vmatprep.subr.bf16.mxu1 %v4876_v60  ;;  %v1465_v59 = vld [vmem:[#allocation9 + $0xcd0] sm:$0xff]  ;;  %v1472_v60 = vld [vmem:[#allocation9 + $0xd08] sm:$0xff]  ;;  %v4766_v51 = vpack.c.bf16 %v1463_v54, %v1455_v53  ;;  %v4908_v53 = vpack.c.bf16 %v1530_v56, %v1522_v43  ;;  %v1551_v13 = vld [vmem:[#allocation9 + $0xf80] sm:$0xff] }
 0x244   :  { %v4894_v3 = vpack.c.bf16 %v1465_v59, %v1457_v58  ;;  %v1521_v54 = vld [vmem:[#allocation9 + $0xe90] sm:$0xff]  ;;  %v1544_v58 = vld [vmem:[#allocation9 + $0xf48] sm:$0xff]  ;;  %v1538_v59 = vld [vmem:[#allocation9 + $0xf18] sm:$0xff] }
 0x245   :  { %v1075_v56 = vld [vmem:[#allocation9 + $0xa0] sm:$0xff] }
 0x246   :  { %4751 = vmatpush1.bf16.msra.mxu0 %v4750_v52  ;;  %4879 = vmatpush1.bf16.msra.mxu1 %v4878_v5  ;;  %v1479_v52 = vld [vmem:[#allocation9 + $0xd40] sm:$0xff]  ;;  %v4768_v5 = vpack.c.bf16 %v1480_v61, %v1472_v60  ;;  %v1546_v60 = vld [vmem:[#allocation9 + $0xf58] sm:$0xff] }
 0x247   :  { %4753 = vmatprep.subr.bf16.mxu0 %v4752_v8  ;;  %4881 = vmatprep.subr.bf16.mxu1 %v4880_v9  ;;  %v1481_v8 = vld [vmem:[#allocation9 + $0xd50] sm:$0xff]  ;;  %v1488_v9 = vld [vmem:[#allocation9 + $0xd88] sm:$0xff]  ;;  %v4770_v14 = vpack.c.bf16 %v1479_v52, %v1471_v4  ;;  %v4912_v4 = vpack.c.bf16 %v1546_v60, %v1538_v59 }
 0x248   :  { %v4898_v15 = vpack.c.bf16 %v1481_v8, %v1473_v7  ;;  %v1537_v52 = vld [vmem:[#allocation9 + $0xf10] sm:$0xff]  ;;  %v1560_v7 = vld [vmem:[#allocation9 + $0xfc8] sm:$0xff]  ;;  %v1554_v8 = vld [vmem:[#allocation9 + $0xf98] sm:$0xff] }
 0x24a   :  { %4755 = vmatpush1.bf16.msra.mxu0 %v4754_v18  ;;  %4883 = vmatpush1.bf16.msra.mxu1 %v4882_v19  ;;  %v1495_v18 = vld [vmem:[#allocation9 + $0xdc0] sm:$0xff]  ;;  %v4772_v19 = vpack.c.bf16 %v1496_v10, %v1488_v9  ;;  %v1562_v9 = vld [vmem:[#allocation9 + $0xfd8] sm:$0xff] }
 0x24b   :  { %4757 = vmatprep.subr.bf16.mxu0 %v4756_v23  ;;  %4885 = vmatprep.subr.bf16.mxu1 %v4884_v24  ;;  %v1497_v23 = vld [vmem:[#allocation9 + $0xdd0] sm:$0xff]  ;;  %v1504_v24 = vld [vmem:[#allocation9 + $0xe08] sm:$0xff]  ;;  %v4774_v32 = vpack.c.bf16 %v1495_v18, %v1487_v16  ;;  %v4916_v16 = vpack.c.bf16 %v1562_v9, %v1554_v8 }
 0x24c   :  { %v4902_v33 = vpack.c.bf16 %v1497_v23, %v1489_v21  ;;  %v1553_v18 = vld [vmem:[#allocation9 + $0xf90] sm:$0xff]  ;;  %v1068_v21 = vld [vmem:[#allocation9 + $0x68] sm:$0xff]  ;;  %v1062_v23 = vld [vmem:[#allocation9 + $0x38] sm:$0xff] }
 0x24e   :  { %4759 = vmatpush1.bf16.msra.mxu0 %v4758_v35  ;;  %4887 = vmatpush1.bf16.msra.mxu1 %v4886_v63  ;;  %v1511_v35 = vld [vmem:[#allocation9 + $0xe40] sm:$0xff]  ;;  %v4776_v63 = vpack.c.bf16 %v1512_v28, %v1504_v24  ;;  %v1070_v24 = vld [vmem:[#allocation9 + $0x78] sm:$0xff] }
 0x24f   :  { %4761 = vmatprep.subr.bf16.mxu0 %v4760_v39  ;;  %4889 = vmatprep.subr.bf16.mxu1 %v4888_v41  ;;  %v1513_v39 = vld [vmem:[#allocation9 + $0xe50] sm:$0xff]  ;;  %v1520_v41 = vld [vmem:[#allocation9 + $0xe88] sm:$0xff]  ;;  %v4778_v45 = vpack.c.bf16 %v1511_v35, %v1503_v34  ;;  %v1067_v34 = vld [vmem:[#allocation9 + $0x60] sm:$0xff] }
 0x250   :  { %v4906_v46 = vpack.c.bf16 %v1513_v39, %v1505_v38  ;;  %v1061_v35 = vld [vmem:[#allocation9 + $0x30] sm:$0xff]  ;;  %v1084_v38 = vld [vmem:[#allocation9 + $0xe8] sm:$0xff]  ;;  %v1078_v39 = vld [vmem:[#allocation9 + $0xb8] sm:$0xff] }
 0x252   :  { %4763 = vmatpush1.bf16.msra.mxu0 %v4762_v48  ;;  %4891 = vmatpush1.bf16.msra.mxu1 %v4890_v50  ;;  %v1527_v48 = vld [vmem:[#allocation9 + $0xec0] sm:$0xff]  ;;  %v4780_v50 = vpack.c.bf16 %v1528_v42, %v1520_v41  ;;  %v1086_v41 = vld [vmem:[#allocation9 + $0xf8] sm:$0xff] }
 0x253   :  { %4765 = vmatprep.subr.bf16.mxu0 %v4764_v55  ;;  %4893 = vmatprep.subr.bf16.mxu1 %v4892_v57  ;;  %v1529_v55 = vld [vmem:[#allocation9 + $0xed0] sm:$0xff]  ;;  %v1536_v57 = vld [vmem:[#allocation9 + $0xf08] sm:$0xff]  ;;  %v4782_v61 = vpack.c.bf16 %v1527_v48, %v1519_v47  ;;  %v5052_v48 = vpack.c.bf16 %v1086_v41, %v1078_v39  ;;  %v1139_v41 = vld [vmem:[#allocation9 + $0x2a0] sm:$0xff] }
 0x254   :  { %v4910_v0 = vpack.c.bf16 %v1529_v55, %v1521_v54  ;;  %v1100_v54 = vld [vmem:[#allocation9 + $0x168] sm:$0xff]  ;;  %v1094_v55 = vld [vmem:[#allocation9 + $0x138] sm:$0xff] }
 0x256   :  { %4767 = vmatpush1.bf16.msra.mxu0 %v4766_v51  ;;  %4895 = vmatpush1.bf16.msra.mxu1 %v4894_v3  ;;  %v1543_v51 = vld [vmem:[#allocation9 + $0xf40] sm:$0xff]  ;;  %v4784_v3 = vpack.c.bf16 %v1544_v58, %v1536_v57  ;;  %v1102_v57 = vld [vmem:[#allocation9 + $0x178] sm:$0xff] }
 0x257   :  { %4769 = vmatprep.subr.bf16.mxu0 %v4768_v5  ;;  %4897 = vmatprep.subr.bf16.mxu1 %v4896_v6  ;;  %v1545_v5 = vld [vmem:[#allocation9 + $0xf50] sm:$0xff]  ;;  %v1552_v6 = vld [vmem:[#allocation9 + $0xf88] sm:$0xff]  ;;  %v4786_v10 = vpack.c.bf16 %v1543_v51, %v1535_v2  ;;  %v5056_v51 = vpack.c.bf16 %v1102_v57, %v1094_v55  ;;  %v1155_v57 = vld [vmem:[#allocation9 + $0x320] sm:$0xff] }
 0x258   :  { %v4914_v12 = vpack.c.bf16 %v1545_v5, %v1537_v52  ;;  %v1093_v2 = vld [vmem:[#allocation9 + $0x130] sm:$0xff]  ;;  %v1116_v52 = vld [vmem:[#allocation9 + $0x1e8] sm:$0xff]  ;;  %v1110_v5 = vld [vmem:[#allocation9 + $0x1b8] sm:$0xff] }
 0x25a   :  { %4771 = vmatpush1.bf16.msra.mxu0 %v4770_v14  ;;  %4899 = vmatpush1.bf16.msra.mxu1 %v4898_v15  ;;  %v1559_v14 = vld [vmem:[#allocation9 + $0xfc0] sm:$0xff]  ;;  %v4788_v15 = vpack.c.bf16 %v1560_v7, %v1552_v6  ;;  %v1118_v6 = vld [vmem:[#allocation9 + $0x1f8] sm:$0xff] }
 0x25b   :  { %4773 = vmatprep.subr.bf16.mxu0 %v4772_v19  ;;  %4901 = vmatprep.subr.bf16.mxu1 %v4900_v20  ;;  %v1561_v19 = vld [vmem:[#allocation9 + $0xfd0] sm:$0xff]  ;;  %v1060_v20 = vld [vmem:[#allocation9 + $0x28] sm:$0xff]  ;;  %v4790_v28 = vpack.c.bf16 %v1559_v14, %v1551_v13  ;;  %v5060_v13 = vpack.c.bf16 %v1118_v6, %v1110_v5  ;;  %v1171_v6 = vld [vmem:[#allocation9 + $0x3a0] sm:$0xff] }
 0x25c   :  { %v4918_v62 = vpack.c.bf16 %v1561_v19, %v1553_v18  ;;  %v4920_v30 = vpack.c.bf16 %v1068_v21, %v1060_v20  ;;  %v1117_v14 = vld [vmem:[#allocation9 + $0x1f0] sm:$0xff]  ;;  %v1126_v18 = vld [vmem:[#allocation9 + $0x238] sm:$0xff] }
 0x25d   :  { %v1134_v19 = vld [vmem:[#allocation9 + $0x278] sm:$0xff] }
 0x25e   :  { %4775 = vmatpush1.bf16.msra.mxu0 %v4774_v32  ;;  %4903 = vmatpush1.bf16.msra.mxu1 %v4902_v33  ;;  %v5048_v32 = vpack.c.bf16 %v1070_v24, %v1062_v23  ;;  %v1059_v33 = vld [vmem:[#allocation9 + $0x20] sm:$0xff] }
 0x25f   :  { %4777 = vmatprep.subr.bf16.mxu0 %v4776_v63  ;;  %4905 = vmatprep.subr.bf16.mxu1 %v4904_v37  ;;  %v1069_v63 = vld [vmem:[#allocation9 + $0x70] sm:$0xff]  ;;  %v1076_v37 = vld [vmem:[#allocation9 + $0xa8] sm:$0xff]  ;;  %v4922_v42 = vpack.c.bf16 %v1067_v34, %v1059_v33  ;;  %v1123_v24 = vld [vmem:[#allocation9 + $0x220] sm:$0xff] }
 0x260   :  { %v5050_v43 = vpack.c.bf16 %v1069_v63, %v1061_v35  ;;  %v4924_v47 = vpack.c.bf16 %v1084_v38, %v1076_v37  ;;  %v1140_v33 = vld [vmem:[#allocation9 + $0x2a8] sm:$0xff]  ;;  %v1142_v35 = vld [vmem:[#allocation9 + $0x2b8] sm:$0xff] }
 0x261   :  { %v1148_v34 = vld [vmem:[#allocation9 + $0x2e8] sm:$0xff]  ;;  %v1150_v63 = vld [vmem:[#allocation9 + $0x2f8] sm:$0xff] }
 0x262   :  { %4779 = vmatpush1.bf16.msra.mxu0 %v4778_v45  ;;  %4907 = vmatpush1.bf16.msra.mxu1 %v4906_v46  ;;  %v1083_v45 = vld [vmem:[#allocation9 + $0xe0] sm:$0xff]  ;;  %v1077_v46 = vld [vmem:[#allocation9 + $0xb0] sm:$0xff]  ;;  %v4940_v39 = vpack.c.bf16 %v1148_v34, %v1140_v33 }
 0x263   :  { %4781 = vmatprep.subr.bf16.mxu0 %v4780_v50  ;;  %4909 = vmatprep.subr.bf16.mxu1 %v4908_v53  ;;  %v1085_v50 = vld [vmem:[#allocation9 + $0xf0] sm:$0xff]  ;;  %v1092_v53 = vld [vmem:[#allocation9 + $0x128] sm:$0xff]  ;;  %v4926_v58 = vpack.c.bf16 %v1083_v45, %v1075_v56  ;;  %v5068_v56 = vpack.c.bf16 %v1150_v63, %v1142_v35  ;;  %v1203_v63 = vld [vmem:[#allocation9 + $0x4a0] sm:$0xff] }
 0x264   :  { %v5054_v59 = vpack.c.bf16 %v1085_v50, %v1077_v46  ;;  %v4928_v60 = vpack.c.bf16 %v1100_v54, %v1092_v53  ;;  %v1149_v45 = vld [vmem:[#allocation9 + $0x2f0] sm:$0xff]  ;;  %v1156_v46 = vld [vmem:[#allocation9 + $0x328] sm:$0xff]  ;;  %v1166_v50 = vld [vmem:[#allocation9 + $0x378] sm:$0xff] }
 0x266   :  { %4783 = vmatpush1.bf16.msra.mxu0 %v4782_v61  ;;  %4911 = vmatpush1.bf16.msra.mxu1 %v4910_v0  ;;  %v1091_v61 = vld [vmem:[#allocation9 + $0x120] sm:$0xff] }
 0x267   :  { %4785 = vmatprep.subr.bf16.mxu0 %v4784_v3  ;;  %4913 = vmatprep.subr.bf16.mxu1 %v4912_v4  ;;  %v1099_v0 = vld [vmem:[#allocation9 + $0x160] sm:$0xff]  ;;  %v1101_v3 = vld [vmem:[#allocation9 + $0x170] sm:$0xff]  ;;  %v1108_v4 = vld [vmem:[#allocation9 + $0x1a8] sm:$0xff] }
 0x268   :  { %v4930_v7 = vpack.c.bf16 %v1099_v0, %v1091_v61  ;;  %v5058_v8 = vpack.c.bf16 %v1101_v3, %v1093_v2  ;;  %v4932_v9 = vpack.c.bf16 %v1116_v52, %v1108_v4  ;;  %v1165_v61 = vld [vmem:[#allocation9 + $0x370] sm:$0xff]  ;;  %v1172_v0 = vld [vmem:[#allocation9 + $0x3a8] sm:$0xff]  ;;  %v1182_v3 = vld [vmem:[#allocation9 + $0x3f8] sm:$0xff] }
 0x269   :  { %v1180_v2 = vld [vmem:[#allocation9 + $0x3e8] sm:$0xff] }
 0x26a   :  { %4787 = vmatpush1.bf16.msra.mxu0 %v4786_v10  ;;  %4915 = vmatpush1.bf16.msra.mxu1 %v4914_v12  ;;  %v1115_v10 = vld [vmem:[#allocation9 + $0x1e0] sm:$0xff]  ;;  %v1109_v12 = vld [vmem:[#allocation9 + $0x1b0] sm:$0xff]  ;;  %v4948_v5 = vpack.c.bf16 %v1180_v2, %v1172_v0 }
 0x26b   :  { %4789 = vmatprep.subr.bf16.mxu0 %v4788_v15  ;;  %4917 = vmatprep.subr.bf16.mxu1 %v4916_v16  ;;  %v1124_v15 = vld [vmem:[#allocation9 + $0x228] sm:$0xff]  ;;  %v5062_v21 = vpack.c.bf16 %v1117_v14, %v1109_v12  ;;  %v1198_v14 = vld [vmem:[#allocation9 + $0x478] sm:$0xff] }
 0x26c   :  { %v1132_v16 = vld [vmem:[#allocation9 + $0x268] sm:$0xff] }
 0x26d   :  { %v4936_v23 = vpack.c.bf16 %v1132_v16, %v1124_v15  ;;  %v1196_v12 = vld [vmem:[#allocation9 + $0x468] sm:$0xff] }
 0x26e   :  { %4791 = vmatpush1.bf16.msra.mxu0 %v4790_v28  ;;  %4919 = vmatpush1.bf16.msra.mxu1 %v4918_v62  ;;  %v1131_v28 = vld [vmem:[#allocation9 + $0x260] sm:$0xff]  ;;  %v1125_v62 = vld [vmem:[#allocation9 + $0x230] sm:$0xff] }
 0x26f   :  { %4921 = vmatprep.subr.bf16.mxu0 %v4920_v30  ;;  %5049 = vmatprep.subr.bf16.mxu1 %v5048_v32  ;;  %v5064_v30 = vpack.c.bf16 %v1134_v19, %v1126_v18  ;;  %v1133_v32 = vld [vmem:[#allocation9 + $0x270] sm:$0xff]  ;;  %v4938_v37 = vpack.c.bf16 %v1131_v28, %v1123_v24  ;;  %v1187_v19 = vld [vmem:[#allocation9 + $0x420] sm:$0xff]  ;;  %v1204_v28 = vld [vmem:[#allocation9 + $0x4a8] sm:$0xff] }
 0x270   :  { %v5066_v38 = vpack.c.bf16 %v1133_v32, %v1125_v62  ;;  %v1197_v24 = vld [vmem:[#allocation9 + $0x470] sm:$0xff]  ;;  %v1212_v62 = vld [vmem:[#allocation9 + $0x4e8] sm:$0xff]  ;;  %v1214_v32 = vld [vmem:[#allocation9 + $0x4f8] sm:$0xff] }
 0x271   :  { %1745 = vmatmul.mubr.f32.vlgmr.msra.gmra.mrb[8].mxu0 %v6790_v11  ;;  %1887 = vmatmul.mubr.f32.vlgmr.msra.gmra.mrb[8].mxu1 %v6790_v11  ;;  %v4956_v35 = vpack.c.bf16 %v1212_v62, %v1204_v28 }
 0x272   :  { %4923 = vmatpush1.bf16.msra.mxu0 %v4922_v42  ;;  %1957 = vmatprep.mubr.f32.mxu0 %v6783_v49  ;;  %v1147_v42 = vld [vmem:[#allocation9 + $0x2e0] sm:$0xff] }
 0x273   :  { %5051 = vmatpush1.bf16.msra.mxu1 %v5050_v43  ;;  %2099 = vmatprep.mubr.f32.mxu1 %v6783_v49  ;;  %v1107_v49 = vld [vmem:[#allocation9 + $0x1a0] sm:$0xff]  ;;  %v1141_v43 = vld [vmem:[#allocation9 + $0x2b0] sm:$0xff]  ;;  %v4942_v53 = vpack.c.bf16 %v1147_v42, %v1139_v41  ;;  %v1220_v42 = vld [vmem:[#allocation9 + $0x528] sm:$0xff] }
 0x274   :  { %4925 = vmatprep.subr.bf16.mxu0 %v4924_v47  ;;  %5053 = vmatprep.subr.bf16.mxu1 %v5052_v48  ;;  %v4934_v20 = vpack.c.bf16 %v1115_v10, %v1107_v49  ;;  %v1164_v47 = vld [vmem:[#allocation9 + $0x368] sm:$0xff]  ;;  %v1158_v48 = vld [vmem:[#allocation9 + $0x338] sm:$0xff]  ;;  %v5070_v54 = vpack.c.bf16 %v1149_v45, %v1141_v43  ;;  %v1181_v49 = vld [vmem:[#allocation9 + $0x3f0] sm:$0xff] }
 0x275   :  { %v4944_v55 = vpack.c.bf16 %v1164_v47, %v1156_v46  ;;  %v1188_v10 = vld [vmem:[#allocation9 + $0x428] sm:$0xff]  ;;  %v1213_v41 = vld [vmem:[#allocation9 + $0x4f0] sm:$0xff]  ;;  %v1230_v45 = vld [vmem:[#allocation9 + $0x578] sm:$0xff] }
 0x276   :  { %4927 = vmatpush1.bf16.msra.mxu0 %v4926_v58  ;;  %v1163_v58 = vld [vmem:[#allocation9 + $0x360] sm:$0xff]  ;;  %v4952_v18 = vpack.c.bf16 %v1196_v12, %v1188_v10  ;;  %v1228_v43 = vld [vmem:[#allocation9 + $0x568] sm:$0xff] }
 0x277   :  { %5055 = vmatpush1.bf16.msra.mxu1 %v5054_v59  ;;  %4929 = vmatprep.subr.bf16.mxu0 %v4928_v60  ;;  %v1157_v59 = vld [vmem:[#allocation9 + $0x330] sm:$0xff]  ;;  %v5072_v60 = vpack.c.bf16 %v1166_v50, %v1158_v48  ;;  %v4946_v4 = vpack.c.bf16 %v1163_v58, %v1155_v57  ;;  %v4960_v48 = vpack.c.bf16 %v1228_v43, %v1220_v42  ;;  %v1219_v50 = vld [vmem:[#allocation9 + $0x520] sm:$0xff]  ;;  %v1236_v58 = vld [vmem:[#allocation9 + $0x5a8] sm:$0xff] }
 0x278   :  { %5057 = vmatprep.subr.bf16.mxu1 %v5056_v51  ;;  %v1174_v51 = vld [vmem:[#allocation9 + $0x3b8] sm:$0xff]  ;;  %v5074_v52 = vpack.c.bf16 %v1165_v61, %v1157_v59  ;;  %v1229_v57 = vld [vmem:[#allocation9 + $0x570] sm:$0xff]  ;;  %v1244_v59 = vld [vmem:[#allocation9 + $0x5e8] sm:$0xff] }
 0x279   :  { %v1246_v61 = vld [vmem:[#allocation9 + $0x5f8] sm:$0xff] }
 0x27a   :  { %4931 = vmatpush1.bf16.msra.mxu0 %v4930_v7  ;;  %v1179_v7 = vld [vmem:[#allocation9 + $0x3e0] sm:$0xff] }
 0x27b   :  { %5059 = vmatpush1.bf16.msra.mxu1 %v5058_v8  ;;  %4933 = vmatprep.subr.bf16.mxu0 %v4932_v9  ;;  %v1173_v8 = vld [vmem:[#allocation9 + $0x3b0] sm:$0xff]  ;;  %v5076_v9 = vpack.c.bf16 %v1182_v3, %v1174_v51  ;;  %v4950_v15 = vpack.c.bf16 %v1179_v7, %v1171_v6  ;;  %v4964_v51 = vpack.c.bf16 %v1244_v59, %v1236_v58  ;;  %v1235_v3 = vld [vmem:[#allocation9 + $0x5a0] sm:$0xff]  ;;  %v1252_v7 = vld [vmem:[#allocation9 + $0x628] sm:$0xff] }
 0x27c   :  { %5061 = vmatprep.subr.bf16.mxu1 %v5060_v13  ;;  %v1190_v13 = vld [vmem:[#allocation9 + $0x438] sm:$0xff]  ;;  %v5078_v16 = vpack.c.bf16 %v1181_v49, %v1173_v8  ;;  %v1245_v6 = vld [vmem:[#allocation9 + $0x5f0] sm:$0xff]  ;;  %v1260_v8 = vld [vmem:[#allocation9 + $0x668] sm:$0xff] }
 0x27d   :  { %v1262_v49 = vld [vmem:[#allocation9 + $0x678] sm:$0xff] }
 0x27e   :  { %4935 = vmatpush1.bf16.msra.mxu0 %v4934_v20  ;;  %v1195_v20 = vld [vmem:[#allocation9 + $0x460] sm:$0xff] }
 0x27f   :  { %5063 = vmatpush1.bf16.msra.mxu1 %v5062_v21  ;;  %4937 = vmatprep.subr.bf16.mxu0 %v4936_v23  ;;  %v1189_v21 = vld [vmem:[#allocation9 + $0x430] sm:$0xff]  ;;  %v5080_v23 = vpack.c.bf16 %v1198_v14, %v1190_v13  ;;  %v4954_v33 = vpack.c.bf16 %v1195_v20, %v1187_v19  ;;  %v4968_v13 = vpack.c.bf16 %v1260_v8, %v1252_v7  ;;  %v1251_v14 = vld [vmem:[#allocation9 + $0x620] sm:$0xff]  ;;  %v1268_v20 = vld [vmem:[#allocation9 + $0x6a8] sm:$0xff] }
 0x280   :  { %5065 = vmatprep.subr.bf16.mxu1 %v5064_v30  ;;  %v1206_v30 = vld [vmem:[#allocation9 + $0x4b8] sm:$0xff]  ;;  %v5082_v34 = vpack.c.bf16 %v1197_v24, %v1189_v21  ;;  %v1261_v19 = vld [vmem:[#allocation9 + $0x670] sm:$0xff]  ;;  %v1276_v21 = vld [vmem:[#allocation9 + $0x6e8] sm:$0xff] }
 0x281   :  { %v1278_v24 = vld [vmem:[#allocation9 + $0x6f8] sm:$0xff] }
 0x282   :  { %4939 = vmatpush1.bf16.msra.mxu0 %v4938_v37  ;;  %v1211_v37 = vld [vmem:[#allocation9 + $0x4e0] sm:$0xff] }
 0x283   :  { %5067 = vmatpush1.bf16.msra.mxu1 %v5066_v38  ;;  %4941 = vmatprep.subr.bf16.mxu0 %v4940_v39  ;;  %v1205_v38 = vld [vmem:[#allocation9 + $0x4b0] sm:$0xff]  ;;  %v5084_v39 = vpack.c.bf16 %v1214_v32, %v1206_v30  ;;  %v4958_v46 = vpack.c.bf16 %v1211_v37, %v1203_v63  ;;  %v4972_v30 = vpack.c.bf16 %v1276_v21, %v1268_v20  ;;  %v1267_v32 = vld [vmem:[#allocation9 + $0x6a0] sm:$0xff]  ;;  %v1284_v37 = vld [vmem:[#allocation9 + $0x728] sm:$0xff] }
 0x284   :  { %5069 = vmatprep.subr.bf16.mxu1 %v5068_v56  ;;  %v1222_v56 = vld [vmem:[#allocation9 + $0x538] sm:$0xff]  ;;  %v5086_v47 = vpack.c.bf16 %v1213_v41, %v1205_v38  ;;  %v1277_v63 = vld [vmem:[#allocation9 + $0x6f0] sm:$0xff]  ;;  %v1292_v38 = vld [vmem:[#allocation9 + $0x768] sm:$0xff] }
 0x285   :  { %v1294_v41 = vld [vmem:[#allocation9 + $0x778] sm:$0xff] }
 0x286   :  { %4943 = vmatpush1.bf16.msra.mxu0 %v4942_v53  ;;  %v1227_v53 = vld [vmem:[#allocation9 + $0x560] sm:$0xff]  ;;  %v1342_v20 = vld [vmem:[#allocation9 + $0x8f8] sm:$0xff] }
 0x287   :  { %5071 = vmatpush1.bf16.msra.mxu1 %v5070_v54  ;;  %4945 = vmatprep.subr.bf16.mxu0 %v4944_v55  ;;  %v1221_v54 = vld [vmem:[#allocation9 + $0x530] sm:$0xff]  ;;  %v5088_v55 = vpack.c.bf16 %v1230_v45, %v1222_v56  ;;  %v4962_v0 = vpack.c.bf16 %v1227_v53, %v1219_v50  ;;  %v4976_v56 = vpack.c.bf16 %v1292_v38, %v1284_v37  ;;  %v1283_v45 = vld [vmem:[#allocation9 + $0x720] sm:$0xff]  ;;  %v1300_v53 = vld [vmem:[#allocation9 + $0x7a8] sm:$0xff] }
 0x288   :  { %5073 = vmatprep.subr.bf16.mxu1 %v5072_v60  ;;  %v1238_v60 = vld [vmem:[#allocation9 + $0x5b8] sm:$0xff]  ;;  %v5090_v2 = vpack.c.bf16 %v1229_v57, %v1221_v54  ;;  %v1293_v50 = vld [vmem:[#allocation9 + $0x770] sm:$0xff]  ;;  %v1308_v54 = vld [vmem:[#allocation9 + $0x7e8] sm:$0xff] }
 0x289   :  { %v1310_v57 = vld [vmem:[#allocation9 + $0x7f8] sm:$0xff] }
 0x28a   :  { %4947 = vmatpush1.bf16.msra.mxu0 %v4946_v4  ;;  %v1243_v4 = vld [vmem:[#allocation9 + $0x5e0] sm:$0xff] }
 0x28b   :  { %5075 = vmatpush1.bf16.msra.mxu1 %v5074_v52  ;;  %4949 = vmatprep.subr.bf16.mxu0 %v4948_v5  ;;  %v1237_v52 = vld [vmem:[#allocation9 + $0x5b0] sm:$0xff]  ;;  %v5092_v5 = vpack.c.bf16 %v1246_v61, %v1238_v60  ;;  %v4966_v10 = vpack.c.bf16 %v1243_v4, %v1235_v3  ;;  %v4980_v60 = vpack.c.bf16 %v1308_v54, %v1300_v53  ;;  %v1299_v61 = vld [vmem:[#allocation9 + $0x7a0] sm:$0xff]  ;;  %v1316_v4 = vld [vmem:[#allocation9 + $0x828] sm:$0xff] }
 0x28c   :  { %5077 = vmatprep.subr.bf16.mxu1 %v5076_v9  ;;  %v1254_v9 = vld [vmem:[#allocation9 + $0x638] sm:$0xff]  ;;  %v5094_v12 = vpack.c.bf16 %v1245_v6, %v1237_v52  ;;  %v1309_v3 = vld [vmem:[#allocation9 + $0x7f0] sm:$0xff]  ;;  %v1324_v52 = vld [vmem:[#allocation9 + $0x868] sm:$0xff] }
 0x28d   :  { %v1326_v6 = vld [vmem:[#allocation9 + $0x878] sm:$0xff] }
 0x28e   :  { %4951 = vmatpush1.bf16.msra.mxu0 %v4950_v15  ;;  %v1259_v15 = vld [vmem:[#allocation9 + $0x660] sm:$0xff] }
 0x28f   :  { %5079 = vmatpush1.bf16.msra.mxu1 %v5078_v16  ;;  %4953 = vmatprep.subr.bf16.mxu0 %v4952_v18  ;;  %v1253_v16 = vld [vmem:[#allocation9 + $0x630] sm:$0xff]  ;;  %v5096_v18 = vpack.c.bf16 %v1262_v49, %v1254_v9  ;;  %v4970_v28 = vpack.c.bf16 %v1259_v15, %v1251_v14  ;;  %v4984_v9 = vpack.c.bf16 %v1324_v52, %v1316_v4  ;;  %v1315_v49 = vld [vmem:[#allocation9 + $0x820] sm:$0xff]  ;;  %v1332_v15 = vld [vmem:[#allocation9 + $0x8a8] sm:$0xff] }
 0x290   :  { %5081 = vmatprep.subr.bf16.mxu1 %v5080_v23  ;;  %v1270_v23 = vld [vmem:[#allocation9 + $0x6b8] sm:$0xff]  ;;  %v5098_v62 = vpack.c.bf16 %v1261_v19, %v1253_v16  ;;  %v1325_v14 = vld [vmem:[#allocation9 + $0x870] sm:$0xff]  ;;  %v1340_v16 = vld [vmem:[#allocation9 + $0x8e8] sm:$0xff] }
 0x291   :  { %v1334_v19 = vld [vmem:[#allocation9 + $0x8b8] sm:$0xff]  ;;  %v1379_v52 = vld [vmem:[#allocation9 + $0xa20] sm:$0xff] }
 0x292   :  { %4955 = vmatpush1.bf16.msra.mxu0 %v4954_v33  ;;  %v1275_v33 = vld [vmem:[#allocation9 + $0x6e0] sm:$0xff] }
 0x293   :  { %5083 = vmatpush1.bf16.msra.mxu1 %v5082_v34  ;;  %4957 = vmatprep.subr.bf16.mxu0 %v4956_v35  ;;  %v1269_v34 = vld [vmem:[#allocation9 + $0x6b0] sm:$0xff]  ;;  %v5100_v35 = vpack.c.bf16 %v1278_v24, %v1270_v23  ;;  %v4974_v42 = vpack.c.bf16 %v1275_v33, %v1267_v32  ;;  %v1331_v23 = vld [vmem:[#allocation9 + $0x8a0] sm:$0xff]  ;;  %v1348_v32 = vld [vmem:[#allocation9 + $0x928] sm:$0xff] }
 0x294   :  { %5085 = vmatprep.subr.bf16.mxu1 %v5084_v39  ;;  %v1286_v39 = vld [vmem:[#allocation9 + $0x738] sm:$0xff]  ;;  %v5102_v43 = vpack.c.bf16 %v1277_v63, %v1269_v34  ;;  %v1339_v24 = vld [vmem:[#allocation9 + $0x8e0] sm:$0xff]  ;;  %v1356_v33 = vld [vmem:[#allocation9 + $0x968] sm:$0xff]  ;;  %v5116_v34 = vpack.c.bf16 %v1342_v20, %v1334_v19 }
 0x295   :  { %v1358_v63 = vld [vmem:[#allocation9 + $0x978] sm:$0xff]  ;;  %v4990_v37 = vpack.c.bf16 %v1339_v24, %v1331_v23  ;;  %v1397_v19 = vld [vmem:[#allocation9 + $0xab0] sm:$0xff]  ;;  %v1412_v23 = vld [vmem:[#allocation9 + $0xb28] sm:$0xff] }
 0x296   :  { %4959 = vmatpush1.bf16.msra.mxu0 %v4958_v46  ;;  %v1291_v46 = vld [vmem:[#allocation9 + $0x760] sm:$0xff]  ;;  %v1420_v24 = vld [vmem:[#allocation9 + $0xb68] sm:$0xff] }
 0x297   :  { %5087 = vmatpush1.bf16.msra.mxu1 %v5086_v47  ;;  %4961 = vmatprep.subr.bf16.mxu0 %v4960_v48  ;;  %v1285_v47 = vld [vmem:[#allocation9 + $0x730] sm:$0xff]  ;;  %v5104_v48 = vpack.c.bf16 %v1294_v41, %v1286_v39  ;;  %v4978_v58 = vpack.c.bf16 %v1291_v46, %v1283_v45  ;;  %v4992_v39 = vpack.c.bf16 %v1356_v33, %v1348_v32  ;;  %v1347_v41 = vld [vmem:[#allocation9 + $0x920] sm:$0xff]  ;;  %v1364_v46 = vld [vmem:[#allocation9 + $0x9a8] sm:$0xff] }
 0x298   :  { %5089 = vmatprep.subr.bf16.mxu1 %v5088_v55  ;;  %v1302_v55 = vld [vmem:[#allocation9 + $0x7b8] sm:$0xff]  ;;  %v5106_v59 = vpack.c.bf16 %v1293_v50, %v1285_v47  ;;  %v1357_v45 = vld [vmem:[#allocation9 + $0x970] sm:$0xff]  ;;  %v1372_v47 = vld [vmem:[#allocation9 + $0x9e8] sm:$0xff]  ;;  %v5008_v33 = vpack.c.bf16 %v1420_v24, %v1412_v23 }
 0x299   :  { %v4996_v54 = vpack.c.bf16 %v1372_v47, %v1364_v46  ;;  %v1427_v47 = vld [vmem:[#allocation9 + $0xba0] sm:$0xff] }
 0x29a   :  { %4963 = vmatpush1.bf16.msra.mxu0 %v4962_v0  ;;  %v1307_v0 = vld [vmem:[#allocation9 + $0x7e0] sm:$0xff] }
 0x29b   :  { %5091 = vmatpush1.bf16.msra.mxu1 %v5090_v2  ;;  %4965 = vmatprep.subr.bf16.mxu0 %v4964_v51  ;;  %v1301_v2 = vld [vmem:[#allocation9 + $0x7b0] sm:$0xff]  ;;  %v5108_v51 = vpack.c.bf16 %v1310_v57, %v1302_v55  ;;  %v4982_v7 = vpack.c.bf16 %v1307_v0, %v1299_v61  ;;  %v1363_v55 = vld [vmem:[#allocation9 + $0x9a0] sm:$0xff]  ;;  %v1388_v61 = vld [vmem:[#allocation9 + $0xa68] sm:$0xff] }
 0x29c   :  { %5093 = vmatprep.subr.bf16.mxu1 %v5092_v5  ;;  %v1318_v5 = vld [vmem:[#allocation9 + $0x838] sm:$0xff]  ;;  %v5110_v8 = vpack.c.bf16 %v1309_v3, %v1301_v2  ;;  %v1371_v57 = vld [vmem:[#allocation9 + $0x9e0] sm:$0xff] }
 0x29d   :  { %v1382_v0 = vld [vmem:[#allocation9 + $0xa38] sm:$0xff]  ;;  %v1475_v24 = vld [vmem:[#allocation9 + $0xd20] sm:$0xff] }
 0x29e   :  { %4967 = vmatpush1.bf16.msra.mxu0 %v4966_v10  ;;  %v1323_v10 = vld [vmem:[#allocation9 + $0x860] sm:$0xff]  ;;  %v1390_v2 = vld [vmem:[#allocation9 + $0xa78] sm:$0xff] }
 0x29f   :  { %5095 = vmatpush1.bf16.msra.mxu1 %v5094_v12  ;;  %4969 = vmatprep.subr.bf16.mxu0 %v4968_v13  ;;  %v5112_v12 = vpack.c.bf16 %v1326_v6, %v1318_v5  ;;  %v1317_v13 = vld [vmem:[#allocation9 + $0x830] sm:$0xff]  ;;  %v1387_v5 = vld [vmem:[#allocation9 + $0xa60] sm:$0xff] }
 0x2a0   :  { %5097 = vmatprep.subr.bf16.mxu1 %v5096_v18  ;;  %v4986_v18 = vpack.c.bf16 %v1323_v10, %v1315_v49  ;;  %v5114_v21 = vpack.c.bf16 %v1325_v14, %v1317_v13  ;;  %v1381_v6 = vld [vmem:[#allocation9 + $0xa30] sm:$0xff]  ;;  %v1404_v49 = vld [vmem:[#allocation9 + $0xae8] sm:$0xff]  ;;  %v1398_v10 = vld [vmem:[#allocation9 + $0xab8] sm:$0xff]  ;;  %v5002_v13 = vpack.c.bf16 %v1387_v5, %v1379_v52 }
 0x2a1   :  { %v1468_v52 = vld [vmem:[#allocation9 + $0xce8] sm:$0xff]  ;;  %v1462_v5 = vld [vmem:[#allocation9 + $0xcb8] sm:$0xff] }
 0x2a2   :  { %4971 = vmatpush1.bf16.msra.mxu0 %v4970_v28  ;;  %v1333_v28 = vld [vmem:[#allocation9 + $0x8b0] sm:$0xff] }
 0x2a3   :  { %5099 = vmatpush1.bf16.msra.mxu1 %v5098_v62  ;;  %4973 = vmatprep.subr.bf16.mxu0 %v4972_v30  ;;  %v4988_v62 = vpack.c.bf16 %v1340_v16, %v1332_v15  ;;  %v1341_v30 = vld [vmem:[#allocation9 + $0x8f0] sm:$0xff]  ;;  %v1395_v16 = vld [vmem:[#allocation9 + $0xaa0] sm:$0xff] }
 0x2a4   :  { %5101 = vmatprep.subr.bf16.mxu1 %v5100_v35  ;;  %v1350_v35 = vld [vmem:[#allocation9 + $0x938] sm:$0xff]  ;;  %v5118_v38 = vpack.c.bf16 %v1341_v30, %v1333_v28 }
 0x2a5   :  { %v1414_v28 = vld [vmem:[#allocation9 + $0xb38] sm:$0xff] }
 0x2a6   :  { %4975 = vmatpush1.bf16.msra.mxu0 %v4974_v42  ;;  %v1355_v42 = vld [vmem:[#allocation9 + $0x960] sm:$0xff] }
 0x2a7   :  { %5103 = vmatpush1.bf16.msra.mxu1 %v5102_v43  ;;  %4977 = vmatprep.subr.bf16.mxu0 %v4976_v56  ;;  %v1349_v43 = vld [vmem:[#allocation9 + $0x930] sm:$0xff]  ;;  %v5120_v56 = vpack.c.bf16 %v1358_v63, %v1350_v35  ;;  %v4994_v50 = vpack.c.bf16 %v1355_v42, %v1347_v41  ;;  %v1419_v35 = vld [vmem:[#allocation9 + $0xb60] sm:$0xff]  ;;  %v1436_v41 = vld [vmem:[#allocation9 + $0xbe8] sm:$0xff] }
 0x2a8   :  { %5105 = vmatprep.subr.bf16.mxu1 %v5104_v48  ;;  %v1366_v48 = vld [vmem:[#allocation9 + $0x9b8] sm:$0xff]  ;;  %v5122_v53 = vpack.c.bf16 %v1357_v45, %v1349_v43  ;;  %v1413_v63 = vld [vmem:[#allocation9 + $0xb30] sm:$0xff] }
 0x2a9   :  { %v1430_v42 = vld [vmem:[#allocation9 + $0xbb8] sm:$0xff] }
 0x2aa   :  { %4979 = vmatpush1.bf16.msra.mxu0 %v4978_v58  ;;  %v1365_v58 = vld [vmem:[#allocation9 + $0x9b0] sm:$0xff]  ;;  %v1438_v43 = vld [vmem:[#allocation9 + $0xbf8] sm:$0xff] }
 0x2ab   :  { %5107 = vmatpush1.bf16.msra.mxu1 %v5106_v59  ;;  %4981 = vmatprep.subr.bf16.mxu0 %v4980_v60  ;;  %v1380_v60 = vld [vmem:[#allocation9 + $0xa28] sm:$0xff] }
 0x2ac   :  { %5109 = vmatprep.subr.bf16.mxu1 %v5108_v51  ;;  %v4998_v51 = vpack.c.bf16 %v1371_v57, %v1363_v55  ;;  %v5000_v4 = vpack.c.bf16 %v1388_v61, %v1380_v60  ;;  %v1452_v55 = vld [vmem:[#allocation9 + $0xc68] sm:$0xff]  ;;  %v1446_v57 = vld [vmem:[#allocation9 + $0xc38] sm:$0xff]  ;;  %v1443_v61 = vld [vmem:[#allocation9 + $0xc20] sm:$0xff] }
 0x2ae   :  { %4983 = vmatpush1.bf16.msra.mxu0 %v4982_v7  ;;  %v5128_v7 = vpack.c.bf16 %v1390_v2, %v1382_v0  ;;  %v1451_v0 = vld [vmem:[#allocation9 + $0xc60] sm:$0xff]  ;;  %v1445_v2 = vld [vmem:[#allocation9 + $0xc30] sm:$0xff] }
 0x2af   :  { %5111 = vmatpush1.bf16.msra.mxu1 %v5110_v8  ;;  %4985 = vmatprep.subr.bf16.mxu0 %v4984_v9  ;;  %v1389_v8 = vld [vmem:[#allocation9 + $0xa70] sm:$0xff]  ;;  %v1396_v9 = vld [vmem:[#allocation9 + $0xaa8] sm:$0xff] }
 0x2b0   :  { %5113 = vmatprep.subr.bf16.mxu1 %v5112_v12  ;;  %v1406_v12 = vld [vmem:[#allocation9 + $0xaf8] sm:$0xff]  ;;  %v5130_v14 = vpack.c.bf16 %v1389_v8, %v1381_v6  ;;  %v5004_v15 = vpack.c.bf16 %v1404_v49, %v1396_v9  ;;  %v1459_v49 = vld [vmem:[#allocation9 + $0xca0] sm:$0xff] }
 0x2b1   :  { %1958 = vmatmul.mubr.f32.vlgmr.msra.gmra.mrb[10].mxu0 %v6781_v44  ;;  %v5132_v20 = vpack.c.bf16 %v1406_v12, %v1398_v10  ;;  %v1470_v6 = vld [vmem:[#allocation9 + $0xcf8] sm:$0xff]  ;;  %v1467_v10 = vld [vmem:[#allocation9 + $0xce0] sm:$0xff]  ;;  %v1461_v12 = vld [vmem:[#allocation9 + $0xcb0] sm:$0xff] }
 0x2b2   :  { %2100 = vmatmul.mubr.f32.vlgmr.msra.gmra.mrb[10].mxu1 %v6781_v44  ;;  %4987 = vmatpush1.bf16.msra.mxu0 %v4986_v18  ;;  %v1374_v44 = vld [vmem:[#allocation9 + $0x9f8] sm:$0xff]  ;;  %v1403_v18 = vld [vmem:[#allocation9 + $0xae0] sm:$0xff] }
 0x2b3   :  { %2028 = vmatprep.mubr.f32.mxu0 %v6793_v17  ;;  %5115 = vmatpush1.bf16.msra.mxu1 %v5114_v21  ;;  %v5124_v59 = vpack.c.bf16 %v1374_v44, %v1366_v48  ;;  %v1405_v21 = vld [vmem:[#allocation9 + $0xaf0] sm:$0xff]  ;;  %v5006_v30 = vpack.c.bf16 %v1403_v18, %v1395_v16  ;;  %v1435_v48 = vld [vmem:[#allocation9 + $0xbe0] sm:$0xff]  ;;  %v1484_v16 = vld [vmem:[#allocation9 + $0xd68] sm:$0xff] }
 0x2b4   :  { %2170 = vmatprep.mubr.f32.mxu1 %v6793_v17  ;;  %4989 = vmatprep.subr.bf16.mxu0 %v4988_v62  ;;  %v1373_v17 = vld [vmem:[#allocation9 + $0x9f0] sm:$0xff]  ;;  %v1422_v62 = vld [vmem:[#allocation9 + $0xb78] sm:$0xff]  ;;  %v5134_v32 = vpack.c.bf16 %v1405_v21, %v1397_v19 }
 0x2b5   :  { %5117 = vmatprep.subr.bf16.mxu1 %v5116_v34  ;;  %v5126_v3 = vpack.c.bf16 %v1373_v17, %v1365_v58  ;;  %v1411_v34 = vld [vmem:[#allocation9 + $0xb20] sm:$0xff]  ;;  %v1429_v44 = vld [vmem:[#allocation9 + $0xbb0] sm:$0xff]  ;;  %v1454_v58 = vld [vmem:[#allocation9 + $0xc78] sm:$0xff] }
 0x2b6   :  { %4991 = vmatpush1.bf16.msra.mxu0 %v4990_v37  ;;  %v5136_v37 = vpack.c.bf16 %v1422_v62, %v1414_v28  ;;  %v1478_v18 = vld [vmem:[#allocation9 + $0xd38] sm:$0xff]  ;;  %v1483_v28 = vld [vmem:[#allocation9 + $0xd60] sm:$0xff]  ;;  %v1477_v62 = vld [vmem:[#allocation9 + $0xd30] sm:$0xff] }
 0x2b7   :  { %5119 = vmatpush1.bf16.msra.mxu1 %v5118_v38  ;;  %4993 = vmatprep.subr.bf16.mxu0 %v4992_v39  ;;  %v1421_v38 = vld [vmem:[#allocation9 + $0xb70] sm:$0xff]  ;;  %v1428_v39 = vld [vmem:[#allocation9 + $0xba8] sm:$0xff]  ;;  %v1486_v19 = vld [vmem:[#allocation9 + $0xd78] sm:$0xff] }
 0x2b8   :  { %5121 = vmatprep.subr.bf16.mxu1 %v5120_v56  ;;  %v5010_v56 = vpack.c.bf16 %v1419_v35, %v1411_v34  ;;  %v5138_v45 = vpack.c.bf16 %v1421_v38, %v1413_v63  ;;  %v5012_v46 = vpack.c.bf16 %v1436_v41, %v1428_v39  ;;  %v1500_v34 = vld [vmem:[#allocation9 + $0xde8] sm:$0xff]  ;;  %v1494_v35 = vld [vmem:[#allocation9 + $0xdb8] sm:$0xff]  ;;  %v1491_v41 = vld [vmem:[#allocation9 + $0xda0] sm:$0xff] }
 0x2b9   :  { %v1502_v63 = vld [vmem:[#allocation9 + $0xdf8] sm:$0xff] }
 0x2ba   :  { %4995 = vmatpush1.bf16.msra.mxu0 %v4994_v50  ;;  %v5140_v50 = vpack.c.bf16 %v1438_v43, %v1430_v42  ;;  %v1499_v42 = vld [vmem:[#allocation9 + $0xde0] sm:$0xff]  ;;  %v1493_v43 = vld [vmem:[#allocation9 + $0xdb0] sm:$0xff] }
 0x2bb   :  { %5123 = vmatpush1.bf16.msra.mxu1 %v5122_v53  ;;  %4997 = vmatprep.subr.bf16.mxu0 %v4996_v54  ;;  %v1437_v53 = vld [vmem:[#allocation9 + $0xbf0] sm:$0xff]  ;;  %v1444_v54 = vld [vmem:[#allocation9 + $0xc28] sm:$0xff] }
 0x2bc   :  { %5125 = vmatprep.subr.bf16.mxu1 %v5124_v59  ;;  %v5014_v59 = vpack.c.bf16 %v1435_v48, %v1427_v47  ;;  %v5142_v17 = vpack.c.bf16 %v1437_v53, %v1429_v44  ;;  %v5016_v60 = vpack.c.bf16 %v1452_v55, %v1444_v54  ;;  %v1516_v47 = vld [vmem:[#allocation9 + $0xe68] sm:$0xff]  ;;  %v1510_v48 = vld [vmem:[#allocation9 + $0xe38] sm:$0xff]  ;;  %v1507_v55 = vld [vmem:[#allocation9 + $0xe20] sm:$0xff] }
 0x2bd   :  { %v1518_v44 = vld [vmem:[#allocation9 + $0xe78] sm:$0xff] }
 0x2be   :  { %4999 = vmatpush1.bf16.msra.mxu0 %v4998_v51  ;;  %v5144_v51 = vpack.c.bf16 %v1454_v58, %v1446_v57  ;;  %v1515_v57 = vld [vmem:[#allocation9 + $0xe60] sm:$0xff]  ;;  %v1509_v58 = vld [vmem:[#allocation9 + $0xe30] sm:$0xff] }
 0x2bf   :  { %5127 = vmatpush1.bf16.msra.mxu1 %v5126_v3  ;;  %5001 = vmatprep.subr.bf16.mxu0 %v5000_v4  ;;  %v1453_v3 = vld [vmem:[#allocation9 + $0xc70] sm:$0xff]  ;;  %v1460_v4 = vld [vmem:[#allocation9 + $0xca8] sm:$0xff] }
 0x2c0   :  { %5129 = vmatprep.subr.bf16.mxu1 %v5128_v7  ;;  %v5018_v7 = vpack.c.bf16 %v1451_v0, %v1443_v61  ;;  %v5146_v8 = vpack.c.bf16 %v1453_v3, %v1445_v2  ;;  %v5020_v9 = vpack.c.bf16 %v1468_v52, %v1460_v4  ;;  %v1532_v61 = vld [vmem:[#allocation9 + $0xee8] sm:$0xff]  ;;  %v1526_v0 = vld [vmem:[#allocation9 + $0xeb8] sm:$0xff]  ;;  %v1523_v52 = vld [vmem:[#allocation9 + $0xea0] sm:$0xff] }
 0x2c1   :  { %v1534_v2 = vld [vmem:[#allocation9 + $0xef8] sm:$0xff] }
 0x2c2   :  { %5003 = vmatpush1.bf16.msra.mxu0 %v5002_v13  ;;  %v5148_v13 = vpack.c.bf16 %v1470_v6, %v1462_v5  ;;  %v1531_v5 = vld [vmem:[#allocation9 + $0xee0] sm:$0xff]  ;;  %v1525_v6 = vld [vmem:[#allocation9 + $0xeb0] sm:$0xff] }
 0x2c3   :  { %5131 = vmatpush1.bf16.msra.mxu1 %v5130_v14  ;;  %5005 = vmatprep.subr.bf16.mxu0 %v5004_v15  ;;  %v1469_v14 = vld [vmem:[#allocation9 + $0xcf0] sm:$0xff]  ;;  %v1476_v15 = vld [vmem:[#allocation9 + $0xd28] sm:$0xff] }
 0x2c4   :  { %5133 = vmatprep.subr.bf16.mxu1 %v5132_v20  ;;  %v5022_v20 = vpack.c.bf16 %v1467_v10, %v1459_v49  ;;  %v5150_v21 = vpack.c.bf16 %v1469_v14, %v1461_v12  ;;  %v5024_v23 = vpack.c.bf16 %v1484_v16, %v1476_v15  ;;  %v1548_v49 = vld [vmem:[#allocation9 + $0xf68] sm:$0xff]  ;;  %v1542_v10 = vld [vmem:[#allocation9 + $0xf38] sm:$0xff]  ;;  %v1539_v16 = vld [vmem:[#allocation9 + $0xf20] sm:$0xff] }
 0x2c5   :  { %v1550_v12 = vld [vmem:[#allocation9 + $0xf78] sm:$0xff] }
 0x2c6   :  { %5007 = vmatpush1.bf16.msra.mxu0 %v5006_v30  ;;  %v5152_v30 = vpack.c.bf16 %v1486_v19, %v1478_v18  ;;  %v1547_v18 = vld [vmem:[#allocation9 + $0xf60] sm:$0xff]  ;;  %v1541_v19 = vld [vmem:[#allocation9 + $0xf30] sm:$0xff] }
 0x2c7   :  { %5135 = vmatpush1.bf16.msra.mxu1 %v5134_v32  ;;  %5009 = vmatprep.subr.bf16.mxu0 %v5008_v33  ;;  %v1485_v32 = vld [vmem:[#allocation9 + $0xd70] sm:$0xff]  ;;  %v1492_v33 = vld [vmem:[#allocation9 + $0xda8] sm:$0xff] }
 0x2c8   :  { %5137 = vmatprep.subr.bf16.mxu1 %v5136_v37  ;;  %v5026_v37 = vpack.c.bf16 %v1483_v28, %v1475_v24  ;;  %v5154_v38 = vpack.c.bf16 %v1485_v32, %v1477_v62  ;;  %v5028_v39 = vpack.c.bf16 %v1500_v34, %v1492_v33  ;;  %v1564_v24 = vld [vmem:[#allocation9 + $0xfe8] sm:$0xff]  ;;  %v1558_v28 = vld [vmem:[#allocation9 + $0xfb8] sm:$0xff]  ;;  %v1555_v34 = vld [vmem:[#allocation9 + $0xfa0] sm:$0xff] }
 0x2c9   :  { %v1566_v62 = vld [vmem:[#allocation9 + $0xff8] sm:$0xff] }
 0x2ca   :  { %5011 = vmatpush1.bf16.msra.mxu0 %v5010_v56  ;;  %v5156_v56 = vpack.c.bf16 %v1502_v63, %v1494_v35  ;;  %v1563_v35 = vld [vmem:[#allocation9 + $0xfe0] sm:$0xff]  ;;  %v5172_v63 = vpack.c.bf16 %v1566_v62, %v1558_v28 }
 0x2cb   :  { %5139 = vmatpush1.bf16.msra.mxu1 %v5138_v45  ;;  %5013 = vmatprep.subr.bf16.mxu0 %v5012_v46  ;;  %v1501_v45 = vld [vmem:[#allocation9 + $0xdf0] sm:$0xff]  ;;  %v1508_v46 = vld [vmem:[#allocation9 + $0xe28] sm:$0xff] }
 0x2cc   :  { %5141 = vmatprep.subr.bf16.mxu1 %v5140_v50  ;;  %v5030_v50 = vpack.c.bf16 %v1499_v42, %v1491_v41  ;;  %v5158_v53 = vpack.c.bf16 %v1501_v45, %v1493_v43  ;;  %v5032_v54 = vpack.c.bf16 %v1516_v47, %v1508_v46  ;;  %v2291_v42 = vld [vmem:[#allocation15 + $0x80] sm:$0xff]  ;;  %v2292_v43 = vld [vmem:[#allocation15 + $0x88] sm:$0xff] }
 0x2cd   :  { %v5182_v45 = vpack.c.bf16 %v2292_v43, %v2291_v42  ;;  %v2275_v46 = vld [vmem:[#allocation15] sm:$0xff]  ;;  %v2276_v47 = vld [vmem:[#allocation15 + $0x8] sm:$0xff] }
 0x2ce   :  { %5015 = vmatpush1.bf16.msra.mxu0 %v5014_v59  ;;  %v5160_v59 = vpack.c.bf16 %v1518_v44, %v1510_v48  ;;  %v2293_v48 = vld [vmem:[#allocation15 + $0x90] sm:$0xff]  ;;  %v2294_v44 = vld [vmem:[#allocation15 + $0x98] sm:$0xff]  ;;  %v2287_v43 = vld [vmem:[#allocation15 + $0x60] sm:$0xff] }
 0x2cf   :  { %5143 = vmatpush1.bf16.msra.mxu1 %v5142_v17  ;;  %5017 = vmatprep.subr.bf16.mxu0 %v5016_v60  ;;  %v1517_v17 = vld [vmem:[#allocation9 + $0xe70] sm:$0xff]  ;;  %v1524_v60 = vld [vmem:[#allocation9 + $0xea8] sm:$0xff] }
 0x2d0   :  { %5145 = vmatprep.subr.bf16.mxu1 %v5144_v51  ;;  %v5034_v51 = vpack.c.bf16 %v1515_v57, %v1507_v55  ;;  %v5162_v3 = vpack.c.bf16 %v1517_v17, %v1509_v58  ;;  %v5036_v4 = vpack.c.bf16 %v1532_v61, %v1524_v60  ;;  %v2277_v55 = vld [vmem:[#allocation15 + $0x10] sm:$0xff]  ;;  %v2278_v57 = vld [vmem:[#allocation15 + $0x18] sm:$0xff]  ;;  %v2295_v58 = vld [vmem:[#allocation15 + $0xa0] sm:$0xff] }
 0x2d1   :  { %v2279_v60 = vld [vmem:[#allocation15 + $0x20] sm:$0xff]  ;;  %v2280_v61 = vld [vmem:[#allocation15 + $0x28] sm:$0xff] }
 0x2d2   :  { %5019 = vmatpush1.bf16.msra.mxu0 %v5018_v7  ;;  %v5164_v7 = vpack.c.bf16 %v1534_v2, %v1526_v0  ;;  %v2297_v0 = vld [vmem:[#allocation15 + $0xb0] sm:$0xff]  ;;  %v2298_v2 = vld [vmem:[#allocation15 + $0xb8] sm:$0xff] }
 0x2d3   :  { %5147 = vmatpush1.bf16.msra.mxu1 %v5146_v8  ;;  %5021 = vmatprep.subr.bf16.mxu0 %v5020_v9  ;;  %v1533_v8 = vld [vmem:[#allocation9 + $0xef0] sm:$0xff]  ;;  %v1540_v9 = vld [vmem:[#allocation9 + $0xf28] sm:$0xff] }
 0x2d4   :  { %5149 = vmatprep.subr.bf16.mxu1 %v5148_v13  ;;  %v5038_v13 = vpack.c.bf16 %v1531_v5, %v1523_v52  ;;  %v5166_v14 = vpack.c.bf16 %v1533_v8, %v1525_v6  ;;  %v5040_v15 = vpack.c.bf16 %v1548_v49, %v1540_v9  ;;  %v2282_v52 = vld [vmem:[#allocation15 + $0x38] sm:$0xff]  ;;  %v2299_v5 = vld [vmem:[#allocation15 + $0xc0] sm:$0xff]  ;;  %v2300_v6 = vld [vmem:[#allocation15 + $0xc8] sm:$0xff] }
 0x2d5   :  { %v5198_v8 = vpack.c.bf16 %v2300_v6, %v2299_v5  ;;  %v2283_v9 = vld [vmem:[#allocation15 + $0x40] sm:$0xff]  ;;  %v2284_v49 = vld [vmem:[#allocation15 + $0x48] sm:$0xff] }
 0x2d6   :  { %5023 = vmatpush1.bf16.msra.mxu0 %v5022_v20  ;;  %v5168_v20 = vpack.c.bf16 %v1550_v12, %v1542_v10  ;;  %v2301_v10 = vld [vmem:[#allocation15 + $0xd0] sm:$0xff]  ;;  %v2302_v12 = vld [vmem:[#allocation15 + $0xd8] sm:$0xff] }
 0x2d7   :  { %5151 = vmatpush1.bf16.msra.mxu1 %v5150_v21  ;;  %5025 = vmatprep.subr.bf16.mxu0 %v5024_v23  ;;  %v1549_v21 = vld [vmem:[#allocation9 + $0xf70] sm:$0xff]  ;;  %v1556_v23 = vld [vmem:[#allocation9 + $0xfa8] sm:$0xff] }
 0x2d8   :  { %5153 = vmatprep.subr.bf16.mxu1 %v5152_v30  ;;  %v5042_v30 = vpack.c.bf16 %v1547_v18, %v1539_v16  ;;  %v5170_v32 = vpack.c.bf16 %v1549_v21, %v1541_v19  ;;  %v5044_v33 = vpack.c.bf16 %v1564_v24, %v1556_v23  ;;  %v2285_v21 = vld [vmem:[#allocation15 + $0x50] sm:$0xff]  ;;  %v2286_v23 = vld [vmem:[#allocation15 + $0x58] sm:$0xff] }
 0x2d9   :  { %v5204_v62 = vpack.c.bf16 %v2286_v23, %v2285_v21  ;;  %v2470_v5 = vld [vmem:[#allocation20 + $0x38] sm:$0xff] }
 0x2da   :  { %5027 = vmatpush1.bf16.msra.mxu0 %v5026_v37  ;;  %v1557_v37 = vld [vmem:[#allocation9 + $0xfb0] sm:$0xff] }
 0x2db   :  { %5155 = vmatpush1.bf16.msra.mxu1 %v5154_v38  ;;  %5029 = vmatprep.subr.bf16.mxu0 %v5028_v39  ;;  %v1565_v38 = vld [vmem:[#allocation9 + $0xff0] sm:$0xff]  ;;  %v5046_v39 = vpack.c.bf16 %v1563_v35, %v1555_v34 }
 0x2dc   :  { %5157 = vmatprep.subr.bf16.mxu1 %v5156_v56  ;;  %v5174_v41 = vpack.c.bf16 %v1565_v38, %v1557_v37  ;;  %v2192_v56 = vld [vmem:[#allocation12] sm:$0xff]  ;;  %v2303_v37 = vld [vmem:[#allocation15 + $0xe0] sm:$0xff]  ;;  %v2304_v38 = vld [vmem:[#allocation15 + $0xe8] sm:$0xff] }
 0x2dd   :  { %v5206_v42 = vpack.c.bf16 %v2304_v38, %v2303_v37  ;;  %v2474_v37 = vld [vmem:[#allocation20 + $0x58] sm:$0xff] }
 0x2de   :  { %5031 = vmatpush1.bf16.msra.mxu0 %v5030_v50  ;;  %v2191_v50 = vld [vmem:[#allocation3] sm:$0xff] }
 0x2df   :  { %5159 = vmatpush1.bf16.msra.mxu1 %v5158_v53  ;;  %5033 = vmatprep.subr.bf16.mxu0 %v5032_v54  ;;  %v5184_v53 = vpack.c.bf16 %v2276_v47, %v2275_v46  ;;  %v5186_v54 = vpack.c.bf16 %v2294_v44, %v2293_v48  ;;  %v2307_v44 = vld [vmem:[#allocation17] sm:$0xff] }
 0x2e0   :  { %5161 = vmatprep.subr.bf16.mxu1 %v5160_v59  ;;  %v2296_v59 = vld [vmem:[#allocation15 + $0xa8] sm:$0xff] }
 0x2e1   :  { %v5190_v17 = vpack.c.bf16 %v2296_v59, %v2295_v58  ;;  %v6406_v58 = vmov 0.0|0.0  }
 0x2e2   :  { %5035 = vmatpush1.bf16.msra.mxu0 %v5034_v51  ;;  %v5192_v51 = vpack.c.bf16 %v2280_v61, %v2279_v60  ;;  %v2309_v61 = vld [vmem:[#allocation17 + $0x10] sm:$0xff] }
 0x2e3   :  { %5163 = vmatpush1.bf16.msra.mxu1 %v5162_v3  ;;  %5037 = vmatprep.subr.bf16.mxu0 %v5036_v4  ;;  %v5194_v3 = vpack.c.bf16 %v2298_v2, %v2297_v0  ;;  %v2281_v4 = vld [vmem:[#allocation15 + $0x30] sm:$0xff]  ;;  %v2310_v0 = vld [vmem:[#allocation17 + $0x18] sm:$0xff] }
 0x2e4   :  { %5165 = vmatprep.subr.bf16.mxu1 %v5164_v7  ;;  %v5196_v7 = vpack.c.bf16 %v2282_v52, %v2281_v4  ;;  %v5180_v2 = vpack.c.bf16 %v2310_v0, %v2309_v61  ;;  %v2466_v4 = vld [vmem:[#allocation20 + $0x18] sm:$0xff]  ;;  %v2479_v61 = vld [vmem:[#allocation20 + $0x80] sm:$0xff]  ;;  %v2488_v0 = vld [vmem:[#allocation20 + $0xc8] sm:$0xff] }
 0x2e5   :  { %v5246_v6 = vpack.c.bf16 %v2470_v5, %v2466_v4  ;;  %v2481_v4 = vld [vmem:[#allocation20 + $0x90] sm:$0xff]  ;;  %v2490_v5 = vld [vmem:[#allocation20 + $0xd8] sm:$0xff] }
 0x2e6   :  { %5039 = vmatpush1.bf16.msra.mxu0 %v5038_v13  ;;  %v5200_v13 = vpack.c.bf16 %v2284_v49, %v2283_v9 }
 0x2e7   :  { %5167 = vmatpush1.bf16.msra.mxu1 %v5166_v14  ;;  %5041 = vmatprep.subr.bf16.mxu0 %v5040_v15  ;;  %v5202_v14 = vpack.c.bf16 %v2302_v12, %v2301_v10  ;;  %v6812_v15 = vld [vmem:[#allocation11] sm:$0xff] }
 0x2e8   :  { %5169 = vmatprep.subr.bf16.mxu1 %v5168_v20  ;;  %v1572_v16 = vrot.slane %v6812_v15, %v6745_v22  ;;  %v1580_v18 = vrot.slane %v6812_v15, %v6754_v29  ;;  %v1576_v19 = vrot.slane %v6812_v15, %v6747_v25  ;;  %v1584_v20 = vrot.slane %v6812_v15, %v6757_v31 }
 0x2e9   :  { %v1592_v9 = vrot.slane %v6812_v15, %v6751_v27  ;;  %v1600_v49 = vrot.slane %v6812_v15, %v6765_v40  ;;  %v2476_v27 = vld [vmem:[#allocation20 + $0x68] sm:$0xff] }
 0x2ea   :  { %5043 = vmatpush1.bf16.msra.mxu0 %v5042_v30 }
 0x2eb   :  { %5171 = vmatpush1.bf16.msra.mxu1 %v5170_v32  ;;  %5045 = vmatprep.subr.bf16.mxu0 %v5044_v33 }
 0x2ec   :  { %5173 = vmatprep.subr.bf16.mxu1 %v5172_v63 }
 0x2ee   :  { %5047 = vmatpush1.bf16.msra.mxu0 %v5046_v39 }
 0x2ef   :  { %5175 = vmatpush1.bf16.msra.mxu1 %v5174_v41  ;;  %4485 = vmatprep.subr.mxu0 %v6404_v1 }
 0x2f0   :  { %5176 = vmatprep.subr.bf16.mxu1 %v6406_v58 }
 0x2f1   :  { %2029 = vmatmul.mubr.f32.vlgmr.msra.gmra.mrb[10].mxu0 %v6790_v11 }
 0x2f2   :  { %2171 = vmatmul.mubr.f32.vlgmr.msra.gmra.mrb[10].mxu1 %v6790_v11  ;;  %4486 = vmatpush3.msra.mxu0 %v2192_v56  ;;  %v5188_v11 = vpack.c.bf16 %v2278_v57, %v2277_v55  ;;  %v2288_v56 = vld [vmem:[#allocation15 + $0x68] sm:$0xff]  ;;  %v2305_v55 = vld [vmem:[#allocation15 + $0xf0] sm:$0xff]  ;;  %v2306_v57 = vld [vmem:[#allocation15 + $0xf8] sm:$0xff] }
 0x2f3   :  { %4487 = vmatprep.mubr.msk.f32.mxu0 %vm6405_vm2, %v6404_v1  ;;  %5183 = vmatprep.subr.bf16.mxu0 %v5182_v45  ;;  %v5208_v47 = vpack.c.bf16 %v2288_v56, %v2287_v43  ;;  %v5210_v59 = vpack.c.bf16 %v2306_v57, %v2305_v55  ;;  %v2471_v43 = vld [vmem:[#allocation20 + $0x40] sm:$0xff]  ;;  %v2473_v57 = vld [vmem:[#allocation20 + $0x50] sm:$0xff] }
 0x2f4   :  { %4498 = vmatprep.mubr.msk.f32.mxu1 %vm6405_vm2, %v6404_v1  ;;  %v2475_v56 = vld [vmem:[#allocation20 + $0x60] sm:$0xff] }
 0x2f5   :  { %4488 = vmatmul.mubr.msk.f32.vlgmr.msra.gmra.mrb[12].mxu0 %vm2200_vm1, %v2191_v50  ;;  %v2308_v50 = vld [vmem:[#allocation17 + $0x8] sm:$0xff]  ;;  %v5220_v55 = vpack.c.bf16 %v2475_v56, %v2471_v43  ;;  %v2509_v43 = vld [vmem:[#allocation20 + $0x170] sm:$0xff] }
 0x2f6   :  { %5185 = vmatpush3.bf16.msra.mxu0 %v5184_v53 }
 0x2f7   :  { %5187 = vmatprep.subr.bf16.mxu0 %v5186_v54  ;;  %v5177_v54 = vpack.c.bf16 %v2308_v50, %v2307_v44 }
 0x2f9   :  { %5178 = vmatpush3.bf16.msra.mxu1 %v5177_v54 }
 0x2fa   :  { %5189 = vmatpush3.bf16.msra.mxu0 %v5188_v11  ;;  %v2289_v11 = vld [vmem:[#allocation15 + $0x70] sm:$0xff]  ;;  %5179 = vmatprep.subr.bf16.mxu1 %v6406_v58 }
 0x2fb   :  { %5191 = vmatprep.subr.bf16.mxu0 %v5190_v17  ;;  %v2290_v17 = vld [vmem:[#allocation15 + $0x78] sm:$0xff] }
 0x2fc   :  { %v5212_v60 = vpack.c.bf16 %v2290_v17, %v2289_v11  ;;  %v2482_v11 = vld [vmem:[#allocation20 + $0x98] sm:$0xff] }
 0x2fd   :  { %5181 = vmatpush3.bf16.msra.mxu1 %v5180_v2  ;;  %v2492_v2 = vld [vmem:[#allocation20 + $0xe8] sm:$0xff] }
 0x2fe   :  { %5193 = vmatpush3.bf16.msra.mxu0 %v5192_v51  ;;  %v2464_v51 = vld [vmem:[#allocation20 + $0x8] sm:$0xff] }
 0x2ff   :  { %5195 = vmatprep.subr.bf16.mxu0 %v5194_v3  ;;  %v2468_v3 = vld [vmem:[#allocation20 + $0x28] sm:$0xff] }
 0x300   :  { %v5214_v52 = vpack.c.bf16 %v2468_v3, %v2464_v51 }
 0x302   :  { %5197 = vmatpush3.bf16.msra.mxu0 %v5196_v7  ;;  %5215 = vmatprep.subr.bf16.mxu1 %v5214_v52  ;;  %v1588_v7 = vrot.slane %v6812_v15, %v6749_v26  ;;  %v2463_v26 = vld [vmem:[#allocation20] sm:$0xff]  ;;  %v2485_v52 = vld [vmem:[#allocation20 + $0xb0] sm:$0xff] }
 0x303   :  { %5199 = vmatprep.subr.bf16.mxu0 %v5198_v8  ;;  %v1596_v8 = vrot.slane %v6812_v15, %v6762_v36 }
 0x306   :  { %5201 = vmatpush3.bf16.msra.mxu0 %v5200_v13 }
 0x307   :  { %5203 = vmatprep.subr.bf16.mxu0 %v5202_v14 }
 0x30a   :  { %5205 = vmatpush3.bf16.msra.mxu0 %v5204_v62 }
 0x30b   :  { %5207 = vmatprep.subr.bf16.mxu0 %v5206_v42  ;;  %v2478_v42 = vld [vmem:[#allocation20 + $0x78] sm:$0xff] }
 0x30c   :  { %v5250_v54 = vpack.c.bf16 %v2478_v42, %v2474_v37  ;;  %v2516_v37 = vld [vmem:[#allocation20 + $0x1a8] sm:$0xff]  ;;  %v2505_v42 = vld [vmem:[#allocation20 + $0x150] sm:$0xff] }
 0x30e   :  { %5209 = vmatpush3.bf16.msra.mxu0 %v5208_v47  ;;  %v2484_v47 = vld [vmem:[#allocation20 + $0xa8] sm:$0xff] }
 0x30f   :  { %5211 = vmatprep.subr.bf16.mxu0 %v5210_v59  ;;  %v2477_v59 = vld [vmem:[#allocation20 + $0x70] sm:$0xff] }
 0x312   :  { %5213 = vmatpush3.bf16.msra.mxu0 %v5212_v60  ;;  %v2486_v60 = vld [vmem:[#allocation20 + $0xb8] sm:$0xff] }
 0x313   :  { %5247 = vmatprep.subr.bf16.mxu0 %v5246_v6  ;;  %v5254_v51 = vpack.c.bf16 %v2486_v60, %v2482_v11  ;;  %v5226_v6 = vpack.c.bf16 %v2492_v2, %v2488_v0  ;;  %v2524_v60 = vld [vmem:[#allocation20 + $0x1e8] sm:$0xff]  ;;  %v2526_v0 = vld [vmem:[#allocation20 + $0x1f8] sm:$0xff]  ;;  %v2519_v2 = vld [vmem:[#allocation20 + $0x1c0] sm:$0xff] }
 0x344   :  { %v1746_v24 = vpop.f32.mrb[8].mxu0  ;;  %v1888_v28 = vpop.f32.mrb[8].mxu1 }
 0x345   :  { %v5814_v30 = vadd.f32 %v1746_v24, %v1572_v16  ;;  %v5816_v32 = vadd.f32 %v1888_v28, %v1580_v18  ;;  %v1748_v33 = vpop.f32.mrb[9].mxu0  ;;  %v1890_v34 = vpop.f32.mrb[9].mxu1  ;;  %v2467_v24 = vld [vmem:[#allocation20 + $0x20] sm:$0xff] }
 0x346   :  { %v5815_v35 = vadd.f32 %v1748_v33, %v1576_v19  ;;  %v5817_v63 = vadd.f32 %v1890_v34, %v1584_v20  ;;  %v4398_v20 = vld [vmem:[#allocation14] ss:$0 sm:$0xff]  ;;  %v5216_v34 = vpack.c.bf16 %v2467_v24, %v2463_v26  ;;  %v2499_v26 = vld [vmem:[#allocation20 + $0x120] sm:$0xff]  ;;  %v2504_v24 = vld [vmem:[#allocation20 + $0x148] sm:$0xff] }
 0x347   :  { %v2177_v39 = vmax.f32 %v5814_v30, 0.0  ;;  %v2179_v41 = vmax.f32 %v5816_v32, 0.0  ;;  %v2472_v30 = vld [vmem:[#allocation20 + $0x48] sm:$0xff] }
 0x348   :  { %v2178_v45 = vmax.f32 %v5815_v35, 0.0  ;;  %v2180_v46 = vmax.f32 %v5817_v63, 0.0  ;;  %v2465_v35 = vld [vmem:[#allocation20 + $0x10] sm:$0xff] }
 0x349   :  { %v6822_v48 = vmax.f32 %v2177_v39, %v2179_v41  ;;  %v2469_v63 = vld [vmem:[#allocation20 + $0x30] sm:$0xff]  ;;  %v5218_v41 = vpack.c.bf16 %v2476_v27, %v2472_v30 }
 0x34a   :  { %v6824_v53 = vmax.f32 %v2178_v45, %v2180_v46  ;;  %v2480_v46 = vld [vmem:[#allocation20 + $0x88] sm:$0xff]  ;;  %v5248_v50 = vpack.c.bf16 %v2469_v63, %v2465_v35  ;;  %v2497_v27 = vld [vmem:[#allocation20 + $0x110] sm:$0xff]  ;;  %v2507_v35 = vld [vmem:[#allocation20 + $0x160] sm:$0xff] }
 0x34b   :  { %v5222_v17 = vpack.c.bf16 %v2484_v47, %v2480_v46  ;;  %v2512_v63 = vld [vmem:[#allocation20 + $0x188] sm:$0xff]  ;;  %v2518_v46 = vld [vmem:[#allocation20 + $0x1b8] sm:$0xff]  ;;  %v5268_v47 = vpack.c.bf16 %v2509_v43, %v2505_v42 }
 0x34c   :  { %v5238_v56 = vpack.c.bf16 %v2516_v37, %v2512_v63  ;;  %v2701_v63 = vld [vmem:[#allocation21 + $0x50] sm:$0xff]  ;;  %v2714_v42 = vld [vmem:[#allocation21 + $0xb8] sm:$0xff] }
 0x34d   :  { %v2705_v37 = vld [vmem:[#allocation21 + $0x70] sm:$0xff] }
 0x3c4   :  { %v2030_v10 = vpop.f32.mrb[10].mxu0 }
 0x3c5   :  { %v5818_v12 = vadd.f32 %v2030_v10, %v1588_v7  ;;  %v2172_v13 = vpop.f32.mrb[10].mxu1  ;;  %v2032_v14 = vpop.f32.mrb[11].mxu0  ;;  %v2494_v7 = vld [vmem:[#allocation20 + $0xf8] sm:$0xff]  ;;  %v2500_v10 = vld [vmem:[#allocation20 + $0x128] sm:$0xff] }
 0x3c6   :  { %v5820_v16 = vadd.f32 %v2172_v13, %v1596_v8  ;;  %v5819_v18 = vadd.f32 %v2032_v14, %v1592_v9  ;;  %v2174_v19 = vpop.f32.mrb[11].mxu1  ;;  %v2487_v8 = vld [vmem:[#allocation20 + $0xc0] sm:$0xff]  ;;  %v5258_v13 = vpack.c.bf16 %v2494_v7, %v2490_v5  ;;  %v2696_v7 = vld [vmem:[#allocation21 + $0x28] sm:$0xff] }
 0x3c7   :  { %v2181_v21 = vmax.f32 %v5818_v12, 0.0  ;;  %v5821_v23 = vadd.f32 %v2174_v19, %v1600_v49  ;;  %v2491_v9 = vld [vmem:[#allocation20 + $0xe0] sm:$0xff]  ;;  %v2496_v49 = vld [vmem:[#allocation20 + $0x108] sm:$0xff]  ;;  %v5256_v12 = vpack.c.bf16 %v2485_v52, %v2481_v4  ;;  %v2498_v19 = vld [vmem:[#allocation20 + $0x118] sm:$0xff] }
 0x3c8   :  { %v2183_v28 = vmax.f32 %v5820_v16, 0.0  ;;  %v2182_v36 = vmax.f32 %v5819_v18, 0.0  ;;  %v2270_v62 = vpop.f32.mrb[12].mxu0  ;;  %v5228_v14 = vpack.c.bf16 %v2491_v9, %v2487_v8  ;;  %v2489_v16 = vld [vmem:[#allocation20 + $0xd0] sm:$0xff]  ;;  %v2694_v8 = vld [vmem:[#allocation21 + $0x18] sm:$0xff] }
 0x3c9   :  { %v2184_v32 = vmax.f32 %v5821_v23, 0.0  ;;  %v2271_v33 = vadd.f32 %v4398_v20, %v2270_v62  ;;  %v4489_v40 = vpop.f32.mrb[13].mxu0  ;;  %v2493_v18 = vld [vmem:[#allocation20 + $0xf0] sm:$0xff]  ;;  %v5230_v20 = vpack.c.bf16 %v2500_v10, %v2496_v49  ;;  %v2495_v23 = vld [vmem:[#allocation20 + $0x100] sm:$0xff]  ;;  %v2698_v49 = vld [vmem:[#allocation21 + $0x38] sm:$0xff] }
 0x3ca   :  { %v2187_v15 = vmax.f32 %v2181_v21, %v2183_v28  ;;  %v2502_v21 = vld [vmem:[#allocation20 + $0x138] sm:$0xff]  ;;  %v2508_v28 = vld [vmem:[#allocation20 + $0x168] sm:$0xff]  ;;  %v5232_v30 = vpack.c.bf16 %v2499_v26, %v2495_v23  ;;  %v2521_v4 = vld [vmem:[#allocation20 + $0x1d0] sm:$0xff]  ;;  %v6842_v10 = vpack.c.bf16 %v2698_v49, %v2694_v8 }
 0x3cb   :  { %v2188_v38 = vmax.f32 %v2182_v36, %v2184_v32  ;;  %v2274_v39 = vmax.f32 %v2271_v33, 0.0  ;;  %v5260_v36 = vpack.c.bf16 %v2493_v18, %v2489_v16  ;;  %v5262_v62 = vpack.c.bf16 %v2502_v21, %v2498_v19  ;;  %v2501_v32 = vld [vmem:[#allocation20 + $0x130] sm:$0xff]  ;;  %v2506_v33 = vld [vmem:[#allocation20 + $0x158] sm:$0xff]  ;;  %v2691_v19 = vld [vmem:[#allocation21] sm:$0xff] }
 0x3cc   :  { %v2189_v45 = vmax.f32 %v6822_v48, %v2187_v15  ;;  %v2483_v48 = vld [vmem:[#allocation20 + $0xa0] sm:$0xff]  ;;  %v5234_v40 = vpack.c.bf16 %v2508_v28, %v2504_v24  ;;  %v2510_v15 = vld [vmem:[#allocation20 + $0x178] sm:$0xff]  ;;  %v2525_v52 = vld [vmem:[#allocation20 + $0x1f0] sm:$0xff] }
 0x3cd   :  { %v2190_v44 = vmax.f32 %v6824_v53, %v2188_v38  ;;  %4499 = vmatmul.mubr.msk.f32.vlgmr.msra.gmra.mrb[12].mxu1 %vm2311_vm3, %v2274_v39  ;;  %v5252_v53 = vpack.c.bf16 %v2477_v59, %v2473_v57  ;;  %v5224_v3 = vpack.c.bf16 %v2483_v48, %v2479_v61  ;;  %v5264_v38 = vpack.c.bf16 %v2501_v32, %v2497_v27  ;;  %v2517_v59 = vld [vmem:[#allocation20 + $0x1b0] sm:$0xff]  ;;  %v2522_v61 = vld [vmem:[#allocation20 + $0x1d8] sm:$0xff]  ;;  %v2700_v24 = vld [vmem:[#allocation21 + $0x48] sm:$0xff] }
 0x3ce   :  { %5217 = vmatpush1.bf16.msra.mxu1 %v5216_v34  ;;  %2613 = vmatprep.mubr.f32.mxu1 %v6404_v1  ;;  %v2503_v34 = vld [vmem:[#allocation20 + $0x140] sm:$0xff]  ;;  %v5266_v39 = vpack.c.bf16 %v2510_v15, %v2506_v33  ;;  %v5276_v5 = vpack.c.bf16 %v2525_v52, %v2521_v4  ;;  %v4401_v18 = vld [vmem:[#allocation18] ss:$0 sm:$0xff]  ;;  %v2693_v23 = vld [vmem:[#allocation21 + $0x10] sm:$0xff] }
 0x3cf   :  { %2449 = vmatprep.mubr.f32.mxu0 %v2190_v44  ;;  %5219 = vmatprep.subr.bf16.mxu1 %v5218_v41  ;;  %v5236_v41 = vpack.c.bf16 %v2507_v35, %v2503_v34  ;;  %v2697_v26 = vld [vmem:[#allocation21 + $0x30] sm:$0xff]  ;;  %v2704_v28 = vld [vmem:[#allocation21 + $0x68] sm:$0xff]  ;;  %v2699_v33 = vld [vmem:[#allocation21 + $0x40] sm:$0xff] }
 0x3d0   :  { %2450 = vmatmul.mubr.f32.vlgmr.msra.gmra.mrb[14].mxu0 %v2189_v45  ;;  %v2514_v45 = vld [vmem:[#allocation20 + $0x198] sm:$0xff]  ;;  %v6848_v32 = vpack.c.bf16 %v2697_v26, %v2693_v23  ;;  %v6850_v34 = vpack.c.bf16 %v2704_v28, %v2700_v24  ;;  %v2728_v4 = vld [vmem:[#allocation21 + $0x128] sm:$0xff]  ;;  %v2723_v8 = vld [vmem:[#allocation21 + $0x100] sm:$0xff] }
 0x3d1   :  { %5249 = vmatpush1.bf16.msra.mxu0 %v5248_v50  ;;  %2684 = vmatprep.mubr.f32.mxu0 %v6404_v1  ;;  %v5270_v44 = vpack.c.bf16 %v2518_v46, %v2514_v45  ;;  %v2511_v50 = vld [vmem:[#allocation20 + $0x180] sm:$0xff]  ;;  %v2726_v52 = vld [vmem:[#allocation21 + $0x118] sm:$0xff] }
 0x3d2   :  { %5251 = vmatprep.subr.bf16.mxu0 %v5250_v54  ;;  %5221 = vmatpush1.bf16.msra.mxu1 %v5220_v55  ;;  %v2515_v54 = vld [vmem:[#allocation20 + $0x1a0] sm:$0xff]  ;;  %v2513_v55 = vld [vmem:[#allocation20 + $0x190] sm:$0xff] }
 0x3d3   :  { %5223 = vmatprep.subr.bf16.mxu1 %v5222_v17  ;;  %v5240_v57 = vpack.c.bf16 %v2515_v54, %v2511_v50  ;;  %v5272_v11 = vpack.c.bf16 %v2517_v59, %v2513_v55  ;;  %v2520_v17 = vld [vmem:[#allocation20 + $0x1c8] sm:$0xff]  ;;  %v2707_v45 = vld [vmem:[#allocation21 + $0x80] sm:$0xff]  ;;  %v2709_v50 = vld [vmem:[#allocation21 + $0x90] sm:$0xff] }
 0x3d4   :  { %v5242_v48 = vpack.c.bf16 %v2524_v60, %v2520_v17  ;;  %v2711_v46 = vld [vmem:[#allocation21 + $0xa0] sm:$0xff]  ;;  %v2713_v54 = vld [vmem:[#allocation21 + $0xb0] sm:$0xff]  ;;  %v2716_v55 = vld [vmem:[#allocation21 + $0xc8] sm:$0xff] }
 0x3d5   :  { %5253 = vmatpush1.bf16.msra.mxu0 %v5252_v53  ;;  %v2523_v53 = vld [vmem:[#allocation20 + $0x1e0] sm:$0xff]  ;;  %v2718_v59 = vld [vmem:[#allocation21 + $0xd8] sm:$0xff]  ;;  %v6870_v17 = vpack.c.bf16 %v2711_v46, %v2707_v45  ;;  %v6872_v60 = vpack.c.bf16 %v2713_v54, %v2709_v50  ;;  %v2741_v50 = vld [vmem:[#allocation21 + $0x190] sm:$0xff] }
 0x3d6   :  { %5255 = vmatprep.subr.bf16.mxu0 %v5254_v51  ;;  %5225 = vmatpush1.bf16.msra.mxu1 %v5224_v3  ;;  %v5274_v51 = vpack.c.bf16 %v2526_v0, %v2522_v61  ;;  %v5244_v3 = vpack.c.bf16 %v2523_v53, %v2519_v2  ;;  %v2715_v61 = vld [vmem:[#allocation21 + $0xc0] sm:$0xff]  ;;  %v2717_v53 = vld [vmem:[#allocation21 + $0xd0] sm:$0xff] }
 0x3d7   :  { %5227 = vmatprep.subr.bf16.mxu1 %v5226_v6  ;;  %v2692_v6 = vld [vmem:[#allocation21 + $0x8] sm:$0xff]  ;;  %v2727_v49 = vld [vmem:[#allocation21 + $0x120] sm:$0xff]  ;;  %v2745_v54 = vld [vmem:[#allocation21 + $0x1b0] sm:$0xff] }
 0x3d8   :  { %v6840_v9 = vpack.c.bf16 %v2696_v7, %v2692_v6  ;;  %v6894_v23 = vpack.c.bf16 %v2727_v49, %v2723_v8  ;;  %v2731_v24 = vld [vmem:[#allocation21 + $0x140] sm:$0xff] }
 0x3d9   :  { %5257 = vmatpush1.bf16.msra.mxu0 %v5256_v12  ;;  %v2735_v28 = vld [vmem:[#allocation21 + $0x160] sm:$0xff] }
 0x3da   :  { %5259 = vmatprep.subr.bf16.mxu0 %v5258_v13  ;;  %5229 = vmatpush1.bf16.msra.mxu1 %v5228_v14 }
 0x3db   :  { %5231 = vmatprep.subr.bf16.mxu1 %v5230_v20  ;;  %v2695_v20 = vld [vmem:[#allocation21 + $0x20] sm:$0xff] }
 0x3dc   :  { %v6846_v27 = vpack.c.bf16 %v2695_v20, %v2691_v19  ;;  %v2736_v19 = vld [vmem:[#allocation21 + $0x168] sm:$0xff]  ;;  %v2734_v20 = vld [vmem:[#allocation21 + $0x158] sm:$0xff] }
 0x3dd   :  { %5261 = vmatpush1.bf16.msra.mxu0 %v5260_v36  ;;  %v2702_v36 = vld [vmem:[#allocation21 + $0x58] sm:$0xff] }
 0x3de   :  { %5263 = vmatprep.subr.bf16.mxu0 %v5262_v62  ;;  %5233 = vmatpush1.bf16.msra.mxu1 %v5232_v30  ;;  %v2706_v62 = vld [vmem:[#allocation21 + $0x78] sm:$0xff] }
 0x3df   :  { %5235 = vmatprep.subr.bf16.mxu1 %v5234_v40  ;;  %v2703_v40 = vld [vmem:[#allocation21 + $0x60] sm:$0xff]  ;;  %v6852_v35 = vpack.c.bf16 %v2706_v62, %v2702_v36 }
 0x3e0   :  { %v6856_v43 = vpack.c.bf16 %v2703_v40, %v2699_v33  ;;  %v2737_v33 = vld [vmem:[#allocation21 + $0x170] sm:$0xff]  ;;  %v2740_v40 = vld [vmem:[#allocation21 + $0x188] sm:$0xff] }
 0x3e1   :  { %5265 = vmatpush1.bf16.msra.mxu0 %v5264_v38  ;;  %v2708_v38 = vld [vmem:[#allocation21 + $0x88] sm:$0xff] }
 0x3e2   :  { %5267 = vmatprep.subr.bf16.mxu0 %v5266_v39  ;;  %5237 = vmatpush1.bf16.msra.mxu1 %v5236_v41  ;;  %v2712_v39 = vld [vmem:[#allocation21 + $0xa8] sm:$0xff]  ;;  %v2710_v41 = vld [vmem:[#allocation21 + $0x98] sm:$0xff] }
 0x3e3   :  { %5239 = vmatprep.subr.bf16.mxu1 %v5238_v56  ;;  %v6858_v56 = vpack.c.bf16 %v2705_v37, %v2701_v63  ;;  %v2742_v63 = vld [vmem:[#allocation21 + $0x198] sm:$0xff] }
 0x3e4   :  { %v2746_v37 = vld [vmem:[#allocation21 + $0x1b8] sm:$0xff] }
 0x3e5   :  { %5269 = vmatpush1.bf16.msra.mxu0 %v5268_v47  ;;  %v6862_v47 = vpack.c.bf16 %v2712_v39, %v2708_v38  ;;  %v6906_v38 = vpack.c.bf16 %v2735_v28, %v2731_v24  ;;  %v6914_v46 = vpack.c.bf16 %v2746_v37, %v2742_v63 }
 0x3e6   :  { %5271 = vmatprep.subr.bf16.mxu0 %v5270_v44  ;;  %5241 = vmatpush1.bf16.msra.mxu1 %v5240_v57  ;;  %v6864_v44 = vpack.c.bf16 %v2714_v42, %v2710_v41  ;;  %v2720_v57 = vld [vmem:[#allocation21 + $0xe8] sm:$0xff]  ;;  %v2739_v41 = vld [vmem:[#allocation21 + $0x180] sm:$0xff] }
 0x3e7   :  { %5243 = vmatprep.subr.bf16.mxu1 %v5242_v48  ;;  %v2719_v48 = vld [vmem:[#allocation21 + $0xe0] sm:$0xff]  ;;  %v6876_v0 = vpack.c.bf16 %v2720_v57, %v2716_v55  ;;  %v2748_v55 = vld [vmem:[#allocation21 + $0x1c8] sm:$0xff] }
 0x3e8   :  { %v6882_v6 = vpack.c.bf16 %v2719_v48, %v2715_v61  ;;  %v2743_v42 = vld [vmem:[#allocation21 + $0x1a0] sm:$0xff]  ;;  %v2752_v57 = vld [vmem:[#allocation21 + $0x1e8] sm:$0xff]  ;;  %v6920_v48 = vpack.c.bf16 %v2745_v54, %v2741_v50 }
 0x3e9   :  { %5273 = vmatpush1.bf16.msra.mxu0 %v5272_v11  ;;  %v2722_v11 = vld [vmem:[#allocation21 + $0xf8] sm:$0xff]  ;;  %v6918_v61 = vpack.c.bf16 %v2743_v42, %v2739_v41 }
 0x3ea   :  { %5275 = vmatprep.subr.bf16.mxu0 %v5274_v51  ;;  %5245 = vmatpush1.bf16.msra.mxu1 %v5244_v3  ;;  %v6878_v2 = vpack.c.bf16 %v2722_v11, %v2718_v59  ;;  %v2721_v51 = vld [vmem:[#allocation21 + $0xf0] sm:$0xff]  ;;  %v2724_v3 = vld [vmem:[#allocation21 + $0x108] sm:$0xff]  ;;  %v2750_v59 = vld [vmem:[#allocation21 + $0x1d8] sm:$0xff] }
 0x3eb   :  { %5279 = vmatprep.subr.bf16.mxu1 %v6840_v9  ;;  %v6884_v7 = vpack.c.bf16 %v2721_v51, %v2717_v53  ;;  %v2754_v11 = vld [vmem:[#allocation21 + $0x1f8] sm:$0xff]  ;;  %v2747_v53 = vld [vmem:[#allocation21 + $0x1c0] sm:$0xff]  ;;  %v6924_v51 = vpack.c.bf16 %v2752_v57, %v2748_v55 }
 0x3ed   :  { %5277 = vmatpush1.bf16.msra.mxu0 %v5276_v5  ;;  %v2730_v5 = vld [vmem:[#allocation21 + $0x138] sm:$0xff] }
 0x3ee   :  { %5311 = vmatprep.subr.bf16.mxu0 %v6842_v10 }
 0x4a0   :  { %v2381_v12 = vpop.f32.mrb[12].mxu1 }
 0x4a1   :  { %v4500_v13 = vpop.f32.mrb[13].mxu1 }
 0x4a2   :  { %v6890_v13 = vpack.c.bf16 %v2730_v5, %v2726_v52  ;;  %v2749_v52 = vld [vmem:[#allocation21 + $0x1d0] sm:$0xff] }
 0x4a3   :  { %v4465_v14 = vpop.f32.mrb[14].mxu0  ;;  %v2753_v5 = vld [vmem:[#allocation21 + $0x1f0] sm:$0xff] }
 0x4a4   :  { %v4466_v16 = vpop.f32.mrb[15].mxu0  ;;  %v6932_v49 = vpack.c.bf16 %v2753_v5, %v2749_v52 }
 0x4a5   :  { %v4467_v21 = vadd.f32 %v4466_v16, %v4465_v14  ;;  %v2725_v14 = vld [vmem:[#allocation21 + $0x110] sm:$0xff] }
 0x4a6   :  { %v2729_v16 = vld [vmem:[#allocation21 + $0x130] sm:$0xff] }
 0x4a7   :  { %v2452_v30 = vadd.f32 %v4467_v21, %v2381_v12  ;;  %v6888_v12 = vpack.c.bf16 %v2728_v4, %v2724_v3  ;;  %v2738_v21 = vld [vmem:[#allocation21 + $0x178] sm:$0xff]  ;;  %v6896_v26 = vpack.c.bf16 %v2729_v16, %v2725_v14  ;;  %v6926_v3 = vpack.c.bf16 %v2754_v11, %v2750_v59  ;;  %v2751_v4 = vld [vmem:[#allocation21 + $0x1e0] sm:$0xff]  ;;  %v2755_v14 = vld [vmem:[%s7334_s5] sm:$0x1] }
 0x4a8   :  { %v6902_v62 = vpack.c.bf16 %v2738_v21, %v2734_v20  ;;  %v6930_v8 = vpack.c.bf16 %v2751_v4, %v2747_v53  ;;  %v2527_v21 = vld [vmem:[#allocation23] sm:$0xf] }
 0x4a9   :  { %v2462_v15 = vadd.f32 %v4401_v18, %v2452_v30  ;;  %v2732_v18 = vld [vmem:[#allocation21 + $0x148] sm:$0xff]  ;;  %v2733_v30 = vld [vmem:[#allocation21 + $0x150] sm:$0xff]  ;;  %v2532_v24 = vrot.slane %v2527_v21, %v6745_v22  ;;  %v2536_v28 = vrot.slane %v2527_v21, %v6747_v25  ;;  %v2544_v42 = vrot.slane %v2527_v21, %v6757_v31 }
 0x4aa   :  { %v6900_v36 = vpack.c.bf16 %v2736_v19, %v2732_v18  ;;  %v6908_v39 = vpack.c.bf16 %v2737_v33, %v2733_v30  ;;  %v2540_v25 = vrot.slane %v2527_v21, %v6754_v29  ;;  %v2756_v29 = vld [vmem:[%s7335_s6] sm:$0x1] }
 0x4ab   :  { %2614 = vmatmul.mubr.f32.vlgmr.msra.gmra.mrb[14].mxu1 %v2462_v15  ;;  %2685 = vmatmul.mubr.f32.vlgmr.msra.gmra.mrb[16].mxu0 %v2462_v15  ;;  %v2744_v15 = vld [vmem:[#allocation21 + $0x1a8] sm:$0xff] }
 0x4ac   :  { %5281 = vmatpush1.bf16.msra.mxu1 %v6846_v27  ;;  %5313 = vmatpush1.bf16.msra.mxu0 %v6848_v32  ;;  %v6912_v45 = vpack.c.bf16 %v2744_v15, %v2740_v40 }
 0x4ad   :  { %5283 = vmatprep.subr.bf16.mxu1 %v6850_v34  ;;  %5315 = vmatprep.subr.bf16.mxu0 %v6852_v35 }
 0x4ae   :  { %2821 = vmatprep.mubr.f32.mxu1 %v6404_v1  ;;  %2892 = vmatprep.mubr.f32.mxu0 %v6404_v1 }
 0x4b0   :  { %5285 = vmatpush1.bf16.msra.mxu1 %v6856_v43  ;;  %5317 = vmatpush1.bf16.msra.mxu0 %v6858_v56 }
 0x4b1   :  { %5287 = vmatprep.subr.bf16.mxu1 %v6862_v47  ;;  %5319 = vmatprep.subr.bf16.mxu0 %v6864_v44 }
 0x4b4   :  { %5289 = vmatpush1.bf16.msra.mxu1 %v6870_v17  ;;  %5321 = vmatpush1.bf16.msra.mxu0 %v6872_v60 }
 0x4b5   :  { %5291 = vmatprep.subr.bf16.mxu1 %v6876_v0  ;;  %5323 = vmatprep.subr.bf16.mxu0 %v6878_v2 }
 0x4b8   :  { %5293 = vmatpush1.bf16.msra.mxu1 %v6882_v6  ;;  %5325 = vmatpush1.bf16.msra.mxu0 %v6884_v7 }
 0x4b9   :  { %5295 = vmatprep.subr.bf16.mxu1 %v6888_v12  ;;  %5327 = vmatprep.subr.bf16.mxu0 %v6890_v13 }
 0x4bc   :  { %5297 = vmatpush1.bf16.msra.mxu1 %v6894_v23  ;;  %5329 = vmatpush1.bf16.msra.mxu0 %v6896_v26 }
 0x4bd   :  { %5299 = vmatprep.subr.bf16.mxu1 %v6900_v36  ;;  %5331 = vmatprep.subr.bf16.mxu0 %v6902_v62 }
 0x4c0   :  { %5301 = vmatpush1.bf16.msra.mxu1 %v6906_v38  ;;  %5333 = vmatpush1.bf16.msra.mxu0 %v6908_v39 }
 0x4c1   :  { %5303 = vmatprep.subr.bf16.mxu1 %v6912_v45  ;;  %5335 = vmatprep.subr.bf16.mxu0 %v6914_v46 }
 0x4c4   :  { %5305 = vmatpush1.bf16.msra.mxu1 %v6918_v61  ;;  %5337 = vmatpush1.bf16.msra.mxu0 %v6920_v48 }
 0x4c5   :  { %5307 = vmatprep.subr.bf16.mxu1 %v6924_v51  ;;  %5339 = vmatprep.subr.bf16.mxu0 %v6926_v3 }
 0x4c8   :  { %5309 = vmatpush1.bf16.msra.mxu1 %v6930_v8  ;;  %5341 = vmatpush1.bf16.msra.mxu0 %v6932_v49 }
 0x4c9   :  { %5343 = vmatprep.subr.bf16.mxu1 %v6840_v9  ;;  %5375 = vmatprep.subr.bf16.mxu0 %v6842_v10 }
 0x4cb   :  { %2822 = vmatmul.mubr.f32.vlgmr.msra.gmra.mrb[16].mxu1 %v2755_v14  ;;  %2893 = vmatmul.mubr.f32.vlgmr.msra.gmra.mrb[18].mxu0 %v2755_v14 }
 0x4cc   :  { %5345 = vmatpush1.bf16.msra.mxu1 %v6846_v27  ;;  %5377 = vmatpush1.bf16.msra.mxu0 %v6848_v32 }
 0x4cd   :  { %5347 = vmatprep.subr.bf16.mxu1 %v6850_v34  ;;  %5379 = vmatprep.subr.bf16.mxu0 %v6852_v35 }
 0x4ce   :  { %2991 = vmatprep.mubr.f32.mxu1 %v6404_v1  ;;  %3062 = vmatprep.mubr.f32.mxu0 %v6404_v1 }
 0x4d0   :  { %5349 = vmatpush1.bf16.msra.mxu1 %v6856_v43  ;;  %5381 = vmatpush1.bf16.msra.mxu0 %v6858_v56 }
 0x4d1   :  { %5351 = vmatprep.subr.bf16.mxu1 %v6862_v47  ;;  %5383 = vmatprep.subr.bf16.mxu0 %v6864_v44 }
 0x4d4   :  { %5353 = vmatpush1.bf16.msra.mxu1 %v6870_v17  ;;  %5385 = vmatpush1.bf16.msra.mxu0 %v6872_v60 }
 0x4d5   :  { %5355 = vmatprep.subr.bf16.mxu1 %v6876_v0  ;;  %5387 = vmatprep.subr.bf16.mxu0 %v6878_v2 }
 0x4d8   :  { %5357 = vmatpush1.bf16.msra.mxu1 %v6882_v6  ;;  %5389 = vmatpush1.bf16.msra.mxu0 %v6884_v7 }
 0x4d9   :  { %5359 = vmatprep.subr.bf16.mxu1 %v6888_v12  ;;  %5391 = vmatprep.subr.bf16.mxu0 %v6890_v13 }
 0x4dc   :  { %5361 = vmatpush1.bf16.msra.mxu1 %v6894_v23  ;;  %5393 = vmatpush1.bf16.msra.mxu0 %v6896_v26 }
 0x4dd   :  { %5363 = vmatprep.subr.bf16.mxu1 %v6900_v36  ;;  %5395 = vmatprep.subr.bf16.mxu0 %v6902_v62 }
 0x4e0   :  { %5365 = vmatpush1.bf16.msra.mxu1 %v6906_v38  ;;  %5397 = vmatpush1.bf16.msra.mxu0 %v6908_v39 }
 0x4e1   :  { %5367 = vmatprep.subr.bf16.mxu1 %v6912_v45  ;;  %5399 = vmatprep.subr.bf16.mxu0 %v6914_v46 }
 0x4e4   :  { %5369 = vmatpush1.bf16.msra.mxu1 %v6918_v61  ;;  %5401 = vmatpush1.bf16.msra.mxu0 %v6920_v48 }
 0x4e5   :  { %5371 = vmatprep.subr.bf16.mxu1 %v6924_v51  ;;  %5403 = vmatprep.subr.bf16.mxu0 %v6926_v3 }
 0x4e8   :  { %5373 = vmatpush1.bf16.msra.mxu1 %v6930_v8  ;;  %5405 = vmatpush1.bf16.msra.mxu0 %v6932_v49 }
 0x4e9   :  { %5407 = vmatprep.subr.bf16.mxu1 %v6840_v9  ;;  %5439 = vmatprep.subr.bf16.mxu0 %v6842_v10 }
 0x57e   :  { %v2615_v16 = vpop.f32.mrb[14].mxu1  ;;  %v2686_v18 = vpop.f32.mrb[16].mxu0 }
 0x57f   :  { %v2617_v19 = vpop.f32.mrb[15].mxu1  ;;  %v2688_v20 = vpop.f32.mrb[17].mxu0  ;;  %v6979_v30 = vadd.f32 %v2615_v16, %v2532_v24  ;;  %v6990_v59 = vadd.f32 %v2686_v18, %v2540_v25 }
 0x580   :  { %v6981_v33 = vadd.f32 %v2617_v19, %v2536_v28  ;;  %v6986_v22 = vadd.f32 %v2688_v20, %v2544_v42 }
 0x59e   :  { %v2823_v40 = vpop.f32.mrb[16].mxu1  ;;  %v2894_v15 = vpop.f32.mrb[18].mxu0 }
 0x59f   :  { %v2899_v63 = vadd.f32 %v2823_v40, %v6979_v30  ;;  %v2825_v37 = vpop.f32.mrb[17].mxu1  ;;  %v2896_v41 = vpop.f32.mrb[19].mxu0  ;;  %v2901_v53 = vadd.f32 %v2894_v15, %v6990_v59 }
 0x5a0   :  { %v2900_v50 = vadd.f32 %v2825_v37, %v6981_v33  ;;  %v2902_v57 = vadd.f32 %v2896_v41, %v6986_v22 }
 0x5a1   :  { %v4402_v54 = vmul.f32 -1.442695, %v2899_v63 }
 0x5a2   :  { %v4403_v55 = vmul.f32 -1.442695, %v2900_v50  ;;  %v4404_v11 = vmul.f32 -1.442695, %v2902_v57 }
 0x5a3   :  { %5857 = vpow2.f32 %v4402_v54 }
 0x5a4   :  { %5859 = vpow2.f32 %v4403_v55 }
 0x5a5   :  { %5861 = vpow2.f32 %v4404_v11 }
 0x5a6   :  { %5863 = vtanh.f32 %v2901_v53 }
 0x5ad   :  { %v5858_v4 = vpop.eup %5857 }
 0x5ae   :  { %v5860_v52 = vpop.eup %5859  ;;  %v2906_v31 = vadd.f32 1.0, %v5858_v4 }
 0x5af   :  { %v2912_v5 = vadd.f32 1.0, %v5860_v52  ;;  %v5862_v14 = vpop.eup %5861 }
 0x5b0   :  { %5865 = vrcp.f32 %v2906_v31  ;;  %v5864_v16 = vpop.eup %5863  ;;  %v2919_v21 = vadd.f32 1.0, %v5862_v14 }
 0x5b1   :  { %5867 = vrcp.f32 %v2912_v5 }
 0x5b2   :  { %5869 = vrcp.f32 %v2919_v21 }
 0x5ba   :  { %v5866_v19 = vpop.eup %5865 }
 0x5bb   :  { %v5868_v18 = vpop.eup %5867  ;;  %v2923_v20 = vmul.f32 %v5866_v19, %v5864_v16 }
 0x5bc   :  { %v2922_v24 = vmul.f32 %v5868_v18, %v2756_v29  ;;  %v5870_v40 = vpop.eup %5869 }
 0x5be   :  { %v6996_v28 = vadd.f32 %v2923_v20, %v2922_v24 }
 0x5c0   :  { %5871 = vtanh.f32 %v6996_v28 }
 0x5ca   :  { %v5872_v15 = vpop.eup %5871 }
 0x5cb   :  { %v2926_v63 = vmul.f32 %v5872_v15, %v5870_v40  ;;  %v3105_v40 = vrot.slane %v6996_v28, 7 }
 0x5cd   :  { %2992 = vmatmul.mubr.f32.vlgmr.msra.gmra.mrb[18].mxu1 %v2926_v63  ;;  %3063 = vmatmul.mubr.f32.vlgmr.msra.gmra.mrb[20].mxu0 %v2926_v63 }
 0x5ce   :  { %5409 = vmatpush1.bf16.msra.mxu1 %v6846_v27  ;;  %5441 = vmatpush1.bf16.msra.mxu0 %v6848_v32 }
 0x5cf   :  { %5411 = vmatprep.subr.bf16.mxu1 %v6850_v34  ;;  %5443 = vmatprep.subr.bf16.mxu0 %v6852_v35 }
 0x5d0   :  { %3179 = vmatprep.mubr.f32.mxu1 %v6404_v1  ;;  %3250 = vmatprep.mubr.f32.mxu0 %v6404_v1 }
 0x5d2   :  { %5413 = vmatpush1.bf16.msra.mxu1 %v6856_v43  ;;  %5445 = vmatpush1.bf16.msra.mxu0 %v6858_v56 }
 0x5d3   :  { %5415 = vmatprep.subr.bf16.mxu1 %v6862_v47  ;;  %5447 = vmatprep.subr.bf16.mxu0 %v6864_v44 }
 0x5d6   :  { %5417 = vmatpush1.bf16.msra.mxu1 %v6870_v17  ;;  %5449 = vmatpush1.bf16.msra.mxu0 %v6872_v60 }
 0x5d7   :  { %5419 = vmatprep.subr.bf16.mxu1 %v6876_v0  ;;  %5451 = vmatprep.subr.bf16.mxu0 %v6878_v2 }
 0x5da   :  { %5421 = vmatpush1.bf16.msra.mxu1 %v6882_v6  ;;  %5453 = vmatpush1.bf16.msra.mxu0 %v6884_v7 }
 0x5db   :  { %5423 = vmatprep.subr.bf16.mxu1 %v6888_v12  ;;  %5455 = vmatprep.subr.bf16.mxu0 %v6890_v13 }
 0x5de   :  { %5425 = vmatpush1.bf16.msra.mxu1 %v6894_v23  ;;  %5457 = vmatpush1.bf16.msra.mxu0 %v6896_v26 }
 0x5df   :  { %5427 = vmatprep.subr.bf16.mxu1 %v6900_v36  ;;  %5459 = vmatprep.subr.bf16.mxu0 %v6902_v62 }
 0x5e2   :  { %5429 = vmatpush1.bf16.msra.mxu1 %v6906_v38  ;;  %5461 = vmatpush1.bf16.msra.mxu0 %v6908_v39 }
 0x5e3   :  { %5431 = vmatprep.subr.bf16.mxu1 %v6912_v45  ;;  %5463 = vmatprep.subr.bf16.mxu0 %v6914_v46 }
 0x5e6   :  { %5433 = vmatpush1.bf16.msra.mxu1 %v6918_v61  ;;  %5465 = vmatpush1.bf16.msra.mxu0 %v6920_v48 }
 0x5e7   :  { %5435 = vmatprep.subr.bf16.mxu1 %v6924_v51  ;;  %5467 = vmatprep.subr.bf16.mxu0 %v6926_v3 }
 0x5ea   :  { %5437 = vmatpush1.bf16.msra.mxu1 %v6930_v8  ;;  %5469 = vmatpush1.bf16.msra.mxu0 %v6932_v49 }
 0x5eb   :  { %5471 = vmatprep.subr.bf16.mxu1 %v6840_v9  ;;  %5503 = vmatprep.subr.bf16.mxu0 %v6842_v10 }
 0x6a0   :  { %v2993_v37 = vpop.f32.mrb[18].mxu1  ;;  %v3064_v41 = vpop.f32.mrb[20].mxu0 }
 0x6a1   :  { %v3073_v42 = vrot.slane %v2993_v37, 7  ;;  %v2995_v50 = vpop.f32.mrb[19].mxu1  ;;  %v3066_v54 = vpop.f32.mrb[21].mxu0  ;;  %v3075_v31 = vrot.slane %v3064_v41, 7 }
 0x6a2   :  { %v3074_v55 = vrot.slane %v2995_v50, 7  ;;  %v3076_v4 = vrot.slane %v3066_v54, 7 }
 0x6a3   :  { %v3081_v25 = vadd.f32 %v3073_v42, %v6979_v30  ;;  %v3083_v14 = vadd.f32 %v3075_v31, %v6990_v59 }
 0x6a4   :  { %v3082_v57 = vadd.f32 %v3074_v55, %v6981_v33  ;;  %v3084_v52 = vadd.f32 %v3076_v4, %v6986_v22 }
 0x6a5   :  { %v4405_v11 = vmul.f32 -1.442695, %v3081_v25 }
 0x6a6   :  { %v4406_v53 = vmul.f32 -1.442695, %v3082_v57  ;;  %v4407_v5 = vmul.f32 -1.442695, %v3084_v52 }
 0x6a7   :  { %5873 = vpow2.f32 %v4405_v11 }
 0x6a8   :  { %5875 = vpow2.f32 %v4406_v53 }
 0x6a9   :  { %5877 = vpow2.f32 %v4407_v5 }
 0x6aa   :  { %5879 = vtanh.f32 %v3083_v14 }
 0x6b1   :  { %v5874_v16 = vpop.eup %5873 }
 0x6b2   :  { %v5876_v29 = vpop.eup %5875  ;;  %v3088_v19 = vadd.f32 1.0, %v5874_v16 }
 0x6b3   :  { %v3094_v18 = vadd.f32 1.0, %v5876_v29  ;;  %v5878_v20 = vpop.eup %5877 }
 0x6b4   :  { %5881 = vrcp.f32 %v3088_v19  ;;  %v5880_v21 = vpop.eup %5879  ;;  %v3101_v37 = vadd.f32 1.0, %v5878_v20 }
 0x6b5   :  { %5883 = vrcp.f32 %v3094_v18 }
 0x6b6   :  { %5885 = vrcp.f32 %v3101_v37 }
 0x6be   :  { %v5882_v24 = vpop.eup %5881 }
 0x6bf   :  { %v5884_v15 = vpop.eup %5883  ;;  %v3108_v63 = vmul.f32 %v5882_v24, %v5880_v21 }
 0x6c0   :  { %v3107_v41 = vmul.f32 %v5884_v15, %v3105_v40  ;;  %v5886_v50 = vpop.eup %5885 }
 0x6c2   :  { %v7038_v42 = vadd.f32 %v3108_v63, %v3107_v41 }
 0x6c4   :  { %5887 = vtanh.f32 %v7038_v42 }
 0x6ce   :  { %v5888_v54 = vpop.eup %5887 }
 0x6cf   :  { %v3111_v55 = vmul.f32 %v5888_v54, %v5886_v50  ;;  %v3293_v54 = vrot.slane %v7038_v42, 7 }
 0x6d1   :  { %v3113_v25 = vrot.slane %v3111_v55, 1 }
 0x6d3   :  { %3180 = vmatmul.mubr.f32.vlgmr.msra.gmra.mrb[20].mxu1 %v3113_v25  ;;  %3251 = vmatmul.mubr.f32.vlgmr.msra.gmra.mrb[22].mxu0 %v3113_v25 }
 0x6d4   :  { %5473 = vmatpush1.bf16.msra.mxu1 %v6846_v27  ;;  %5505 = vmatpush1.bf16.msra.mxu0 %v6848_v32 }
 0x6d5   :  { %5475 = vmatprep.subr.bf16.mxu1 %v6850_v34  ;;  %5507 = vmatprep.subr.bf16.mxu0 %v6852_v35 }
 0x6d6   :  { %3367 = vmatprep.mubr.f32.mxu1 %v6404_v1  ;;  %3438 = vmatprep.mubr.f32.mxu0 %v6404_v1 }
 0x6d8   :  { %5477 = vmatpush1.bf16.msra.mxu1 %v6856_v43  ;;  %5509 = vmatpush1.bf16.msra.mxu0 %v6858_v56 }
 0x6d9   :  { %5479 = vmatprep.subr.bf16.mxu1 %v6862_v47  ;;  %5511 = vmatprep.subr.bf16.mxu0 %v6864_v44 }
 0x6dc   :  { %5481 = vmatpush1.bf16.msra.mxu1 %v6870_v17  ;;  %5513 = vmatpush1.bf16.msra.mxu0 %v6872_v60 }
 0x6dd   :  { %5483 = vmatprep.subr.bf16.mxu1 %v6876_v0  ;;  %5515 = vmatprep.subr.bf16.mxu0 %v6878_v2 }
 0x6e0   :  { %5485 = vmatpush1.bf16.msra.mxu1 %v6882_v6  ;;  %5517 = vmatpush1.bf16.msra.mxu0 %v6884_v7 }
 0x6e1   :  { %5487 = vmatprep.subr.bf16.mxu1 %v6888_v12  ;;  %5519 = vmatprep.subr.bf16.mxu0 %v6890_v13 }
 0x6e4   :  { %5489 = vmatpush1.bf16.msra.mxu1 %v6894_v23  ;;  %5521 = vmatpush1.bf16.msra.mxu0 %v6896_v26 }
 0x6e5   :  { %5491 = vmatprep.subr.bf16.mxu1 %v6900_v36  ;;  %5523 = vmatprep.subr.bf16.mxu0 %v6902_v62 }
 0x6e8   :  { %5493 = vmatpush1.bf16.msra.mxu1 %v6906_v38  ;;  %5525 = vmatpush1.bf16.msra.mxu0 %v6908_v39 }
 0x6e9   :  { %5495 = vmatprep.subr.bf16.mxu1 %v6912_v45  ;;  %5527 = vmatprep.subr.bf16.mxu0 %v6914_v46 }
 0x6ec   :  { %5497 = vmatpush1.bf16.msra.mxu1 %v6918_v61  ;;  %5529 = vmatpush1.bf16.msra.mxu0 %v6920_v48 }
 0x6ed   :  { %5499 = vmatprep.subr.bf16.mxu1 %v6924_v51  ;;  %5531 = vmatprep.subr.bf16.mxu0 %v6926_v3 }
 0x6f0   :  { %5501 = vmatpush1.bf16.msra.mxu1 %v6930_v8  ;;  %5533 = vmatpush1.bf16.msra.mxu0 %v6932_v49 }
 0x6f1   :  { %5535 = vmatprep.subr.bf16.mxu1 %v6840_v9  ;;  %5567 = vmatprep.subr.bf16.mxu0 %v6842_v10 }
 0x7a6   :  { %v3181_v28 = vpop.f32.mrb[20].mxu1  ;;  %v3252_v57 = vpop.f32.mrb[22].mxu0 }
 0x7a7   :  { %v3261_v11 = vrot.slane %v3181_v28, 6  ;;  %v3183_v53 = vpop.f32.mrb[21].mxu1  ;;  %v3254_v4 = vpop.f32.mrb[23].mxu0  ;;  %v3263_v18 = vrot.slane %v3252_v57, 6 }
 0x7a8   :  { %v3262_v52 = vrot.slane %v3183_v53, 6  ;;  %v3264_v29 = vrot.slane %v3254_v4, 6 }
 0x7a9   :  { %v3269_v31 = vadd.f32 %v3261_v11, %v6979_v30  ;;  %v3271_v21 = vadd.f32 %v3263_v18, %v6990_v59 }
 0x7aa   :  { %v3270_v5 = vadd.f32 %v3262_v52, %v6981_v33  ;;  %v3272_v19 = vadd.f32 %v3264_v29, %v6986_v22 }
 0x7ab   :  { %v4408_v14 = vmul.f32 -1.442695, %v3269_v31 }
 0x7ac   :  { %v4409_v16 = vmul.f32 -1.442695, %v3270_v5  ;;  %v4410_v20 = vmul.f32 -1.442695, %v3272_v19 }
 0x7ad   :  { %5889 = vpow2.f32 %v4408_v14 }
 0x7ae   :  { %5891 = vpow2.f32 %v4409_v16 }
 0x7af   :  { %5893 = vpow2.f32 %v4410_v20 }
 0x7b0   :  { %5895 = vtanh.f32 %v3271_v21 }
 0x7b7   :  { %v5890_v24 = vpop.eup %5889 }
 0x7b8   :  { %v5892_v40 = vpop.eup %5891  ;;  %v3276_v15 = vadd.f32 1.0, %v5890_v24 }
 0x7b9   :  { %v3282_v63 = vadd.f32 1.0, %v5892_v40  ;;  %v5894_v37 = vpop.eup %5893 }
 0x7ba   :  { %5897 = vrcp.f32 %v3276_v15  ;;  %v5896_v41 = vpop.eup %5895  ;;  %v3289_v28 = vadd.f32 1.0, %v5894_v37 }
 0x7bb   :  { %5899 = vrcp.f32 %v3282_v63 }
 0x7bc   :  { %5901 = vrcp.f32 %v3289_v28 }
 0x7c4   :  { %v5898_v50 = vpop.eup %5897 }
 0x7c5   :  { %v5900_v55 = vpop.eup %5899  ;;  %v3296_v25 = vmul.f32 %v5898_v50, %v5896_v41 }
 0x7c6   :  { %v3295_v57 = vmul.f32 %v5900_v55, %v3293_v54  ;;  %v5902_v53 = vpop.eup %5901 }
 0x7c8   :  { %v7080_v11 = vadd.f32 %v3296_v25, %v3295_v57 }
 0x7ca   :  { %5903 = vtanh.f32 %v7080_v11 }
 0x7d4   :  { %v5904_v4 = vpop.eup %5903 }
 0x7d5   :  { %v3299_v52 = vmul.f32 %v5904_v4, %v5902_v53  ;;  %v3481_v4 = vrot.slane %v7080_v11, 7 }
 0x7d7   :  { %v3301_v31 = vrot.slane %v3299_v52, 2 }
 0x7d9   :  { %3368 = vmatmul.mubr.f32.vlgmr.msra.gmra.mrb[22].mxu1 %v3301_v31  ;;  %3439 = vmatmul.mubr.f32.vlgmr.msra.gmra.mrb[24].mxu0 %v3301_v31 }
 0x7da   :  { %5537 = vmatpush1.bf16.msra.mxu1 %v6846_v27  ;;  %5569 = vmatpush1.bf16.msra.mxu0 %v6848_v32 }
 0x7db   :  { %5539 = vmatprep.subr.bf16.mxu1 %v6850_v34  ;;  %5571 = vmatprep.subr.bf16.mxu0 %v6852_v35 }
 0x7dc   :  { %3555 = vmatprep.mubr.f32.mxu1 %v6404_v1  ;;  %3626 = vmatprep.mubr.f32.mxu0 %v6404_v1 }
 0x7de   :  { %5541 = vmatpush1.bf16.msra.mxu1 %v6856_v43  ;;  %5573 = vmatpush1.bf16.msra.mxu0 %v6858_v56 }
 0x7df   :  { %5543 = vmatprep.subr.bf16.mxu1 %v6862_v47  ;;  %5575 = vmatprep.subr.bf16.mxu0 %v6864_v44 }
 0x7e2   :  { %5545 = vmatpush1.bf16.msra.mxu1 %v6870_v17  ;;  %5577 = vmatpush1.bf16.msra.mxu0 %v6872_v60 }
 0x7e3   :  { %5547 = vmatprep.subr.bf16.mxu1 %v6876_v0  ;;  %5579 = vmatprep.subr.bf16.mxu0 %v6878_v2 }
 0x7e6   :  { %5549 = vmatpush1.bf16.msra.mxu1 %v6882_v6  ;;  %5581 = vmatpush1.bf16.msra.mxu0 %v6884_v7 }
 0x7e7   :  { %5551 = vmatprep.subr.bf16.mxu1 %v6888_v12  ;;  %5583 = vmatprep.subr.bf16.mxu0 %v6890_v13 }
 0x7ea   :  { %5553 = vmatpush1.bf16.msra.mxu1 %v6894_v23  ;;  %5585 = vmatpush1.bf16.msra.mxu0 %v6896_v26 }
 0x7eb   :  { %5555 = vmatprep.subr.bf16.mxu1 %v6900_v36  ;;  %5587 = vmatprep.subr.bf16.mxu0 %v6902_v62 }
 0x7ee   :  { %5557 = vmatpush1.bf16.msra.mxu1 %v6906_v38  ;;  %5589 = vmatpush1.bf16.msra.mxu0 %v6908_v39 }
 0x7ef   :  { %5559 = vmatprep.subr.bf16.mxu1 %v6912_v45  ;;  %5591 = vmatprep.subr.bf16.mxu0 %v6914_v46 }
 0x7f2   :  { %5561 = vmatpush1.bf16.msra.mxu1 %v6918_v61  ;;  %5593 = vmatpush1.bf16.msra.mxu0 %v6920_v48 }
 0x7f3   :  { %5563 = vmatprep.subr.bf16.mxu1 %v6924_v51  ;;  %5595 = vmatprep.subr.bf16.mxu0 %v6926_v3 }
 0x7f6   :  { %5565 = vmatpush1.bf16.msra.mxu1 %v6930_v8  ;;  %5597 = vmatpush1.bf16.msra.mxu0 %v6932_v49 }
 0x7f7   :  { %5599 = vmatprep.subr.bf16.mxu1 %v6840_v9  ;;  %5631 = vmatprep.subr.bf16.mxu0 %v6842_v10 }
 0x8ac   :  { %v3369_v42 = vpop.f32.mrb[22].mxu1  ;;  %v3440_v5 = vpop.f32.mrb[24].mxu0 }
 0x8ad   :  { %v3449_v14 = vrot.slane %v3369_v42, 5  ;;  %v3371_v16 = vpop.f32.mrb[23].mxu1  ;;  %v3442_v29 = vpop.f32.mrb[25].mxu0  ;;  %v3451_v63 = vrot.slane %v3440_v5, 5 }
 0x8ae   :  { %v3450_v19 = vrot.slane %v3371_v16, 5  ;;  %v3452_v40 = vrot.slane %v3442_v29, 5 }
 0x8af   :  { %v3457_v18 = vadd.f32 %v3449_v14, %v6979_v30  ;;  %v3459_v41 = vadd.f32 %v3451_v63, %v6990_v59 }
 0x8b0   :  { %v3458_v20 = vadd.f32 %v3450_v19, %v6981_v33  ;;  %v3460_v15 = vadd.f32 %v3452_v40, %v6986_v22 }
 0x8b1   :  { %v4411_v21 = vmul.f32 -1.442695, %v3457_v18 }
 0x8b2   :  { %v4412_v24 = vmul.f32 -1.442695, %v3458_v20  ;;  %v4413_v37 = vmul.f32 -1.442695, %v3460_v15 }
 0x8b3   :  { %5905 = vpow2.f32 %v4411_v21 }
 0x8b4   :  { %5907 = vpow2.f32 %v4412_v24 }
 0x8b5   :  { %5909 = vpow2.f32 %v4413_v37 }
 0x8b6   :  { %5911 = vtanh.f32 %v3459_v41 }
 0x8bd   :  { %v5906_v50 = vpop.eup %5905 }
 0x8be   :  { %v5908_v54 = vpop.eup %5907  ;;  %v3464_v55 = vadd.f32 1.0, %v5906_v50 }
 0x8bf   :  { %v3470_v25 = vadd.f32 1.0, %v5908_v54  ;;  %v5910_v28 = vpop.eup %5909 }
 0x8c0   :  { %5913 = vrcp.f32 %v3464_v55  ;;  %v5912_v57 = vpop.eup %5911  ;;  %v3477_v42 = vadd.f32 1.0, %v5910_v28 }
 0x8c1   :  { %5915 = vrcp.f32 %v3470_v25 }
 0x8c2   :  { %5917 = vrcp.f32 %v3477_v42 }
 0x8ca   :  { %v5914_v53 = vpop.eup %5913 }
 0x8cb   :  { %v5916_v52 = vpop.eup %5915  ;;  %v3484_v31 = vmul.f32 %v5914_v53, %v5912_v57 }
 0x8cc   :  { %v3483_v5 = vmul.f32 %v5916_v52, %v3481_v4  ;;  %v5918_v16 = vpop.eup %5917 }
 0x8ce   :  { %v7122_v14 = vadd.f32 %v3484_v31, %v3483_v5 }
 0x8d0   :  { %5919 = vtanh.f32 %v7122_v14 }
 0x8da   :  { %v5920_v29 = vpop.eup %5919 }
 0x8db   :  { %v3487_v19 = vmul.f32 %v5920_v29, %v5918_v16  ;;  %v3669_v29 = vrot.slane %v7122_v14, 7 }
 0x8dd   :  { %v3489_v18 = vrot.slane %v3487_v19, 3 }
 0x8df   :  { %3556 = vmatmul.mubr.f32.vlgmr.msra.gmra.mrb[24].mxu1 %v3489_v18  ;;  %3627 = vmatmul.mubr.f32.vlgmr.msra.gmra.mrb[26].mxu0 %v3489_v18 }
 0x8e0   :  { %5601 = vmatpush1.bf16.msra.mxu1 %v6846_v27  ;;  %5633 = vmatpush1.bf16.msra.mxu0 %v6848_v32 }
 0x8e1   :  { %5603 = vmatprep.subr.bf16.mxu1 %v6850_v34  ;;  %5635 = vmatprep.subr.bf16.mxu0 %v6852_v35 }
 0x8e2   :  { %3743 = vmatprep.mubr.f32.mxu1 %v6404_v1  ;;  %3814 = vmatprep.mubr.f32.mxu0 %v6404_v1 }
 0x8e4   :  { %5605 = vmatpush1.bf16.msra.mxu1 %v6856_v43  ;;  %5637 = vmatpush1.bf16.msra.mxu0 %v6858_v56 }
 0x8e5   :  { %5607 = vmatprep.subr.bf16.mxu1 %v6862_v47  ;;  %5639 = vmatprep.subr.bf16.mxu0 %v6864_v44 }
 0x8e8   :  { %5609 = vmatpush1.bf16.msra.mxu1 %v6870_v17  ;;  %5641 = vmatpush1.bf16.msra.mxu0 %v6872_v60 }
 0x8e9   :  { %5611 = vmatprep.subr.bf16.mxu1 %v6876_v0  ;;  %5643 = vmatprep.subr.bf16.mxu0 %v6878_v2 }
 0x8ec   :  { %5613 = vmatpush1.bf16.msra.mxu1 %v6882_v6  ;;  %5645 = vmatpush1.bf16.msra.mxu0 %v6884_v7 }
 0x8ed   :  { %5615 = vmatprep.subr.bf16.mxu1 %v6888_v12  ;;  %5647 = vmatprep.subr.bf16.mxu0 %v6890_v13 }
 0x8f0   :  { %5617 = vmatpush1.bf16.msra.mxu1 %v6894_v23  ;;  %5649 = vmatpush1.bf16.msra.mxu0 %v6896_v26 }
 0x8f1   :  { %5619 = vmatprep.subr.bf16.mxu1 %v6900_v36  ;;  %5651 = vmatprep.subr.bf16.mxu0 %v6902_v62 }
 0x8f4   :  { %5621 = vmatpush1.bf16.msra.mxu1 %v6906_v38  ;;  %5653 = vmatpush1.bf16.msra.mxu0 %v6908_v39 }
 0x8f5   :  { %5623 = vmatprep.subr.bf16.mxu1 %v6912_v45  ;;  %5655 = vmatprep.subr.bf16.mxu0 %v6914_v46 }
 0x8f8   :  { %5625 = vmatpush1.bf16.msra.mxu1 %v6918_v61  ;;  %5657 = vmatpush1.bf16.msra.mxu0 %v6920_v48 }
 0x8f9   :  { %5627 = vmatprep.subr.bf16.mxu1 %v6924_v51  ;;  %5659 = vmatprep.subr.bf16.mxu0 %v6926_v3 }
 0x8fc   :  { %5629 = vmatpush1.bf16.msra.mxu1 %v6930_v8  ;;  %5661 = vmatpush1.bf16.msra.mxu0 %v6932_v49 }
 0x8fd   :  { %5663 = vmatprep.subr.bf16.mxu1 %v6840_v9  ;;  %5695 = vmatprep.subr.bf16.mxu0 %v6842_v10 }
 0x9b2   :  { %v3557_v11 = vpop.f32.mrb[24].mxu1  ;;  %v3628_v20 = vpop.f32.mrb[26].mxu0 }
 0x9b3   :  { %v3637_v21 = vrot.slane %v3557_v11, 4  ;;  %v3559_v24 = vpop.f32.mrb[25].mxu1  ;;  %v3630_v40 = vpop.f32.mrb[27].mxu0  ;;  %v3639_v25 = vrot.slane %v3628_v20, 4 }
 0x9b4   :  { %v3638_v15 = vrot.slane %v3559_v24, 4  ;;  %v3640_v54 = vrot.slane %v3630_v40, 4 }
 0x9b5   :  { %v3645_v63 = vadd.f32 %v3637_v21, %v6979_v30  ;;  %v3647_v57 = vadd.f32 %v3639_v25, %v6990_v59 }
 0x9b6   :  { %v3646_v37 = vadd.f32 %v3638_v15, %v6981_v33  ;;  %v3648_v55 = vadd.f32 %v3640_v54, %v6986_v22 }
 0x9b7   :  { %v4414_v41 = vmul.f32 -1.442695, %v3645_v63 }
 0x9b8   :  { %v4415_v50 = vmul.f32 -1.442695, %v3646_v37  ;;  %v4416_v28 = vmul.f32 -1.442695, %v3648_v55 }
 0x9b9   :  { %5921 = vpow2.f32 %v4414_v41 }
 0x9ba   :  { %5923 = vpow2.f32 %v4415_v50 }
 0x9bb   :  { %5925 = vpow2.f32 %v4416_v28 }
 0x9bc   :  { %5927 = vtanh.f32 %v3647_v57 }
 0x9c3   :  { %v5922_v53 = vpop.eup %5921 }
 0x9c4   :  { %v5924_v4 = vpop.eup %5923  ;;  %v3652_v52 = vadd.f32 1.0, %v5922_v53 }
 0x9c5   :  { %v3658_v31 = vadd.f32 1.0, %v5924_v4  ;;  %v5926_v42 = vpop.eup %5925 }
 0x9c6   :  { %5929 = vrcp.f32 %v3652_v52  ;;  %v5928_v5 = vpop.eup %5927  ;;  %v3665_v11 = vadd.f32 1.0, %v5926_v42 }
 0x9c7   :  { %5931 = vrcp.f32 %v3658_v31 }
 0x9c8   :  { %5933 = vrcp.f32 %v3665_v11 }
 0x9d0   :  { %v5930_v16 = vpop.eup %5929 }
 0x9d1   :  { %v5932_v19 = vpop.eup %5931  ;;  %v3672_v18 = vmul.f32 %v5930_v16, %v5928_v5 }
 0x9d2   :  { %v3671_v20 = vmul.f32 %v5932_v19, %v3669_v29  ;;  %v5934_v24 = vpop.eup %5933 }
 0x9d4   :  { %v7164_v21 = vadd.f32 %v3672_v18, %v3671_v20 }
 0x9d6   :  { %5935 = vtanh.f32 %v7164_v21  ;;  %v3857_v20 = vrot.slane %v7164_v21, 7 }
 0x9e0   :  { %v5936_v40 = vpop.eup %5935 }
 0x9e1   :  { %v3675_v15 = vmul.f32 %v5936_v40, %v5934_v24 }
 0x9e3   :  { %v3677_v63 = vrot.slane %v3675_v15, 4 }
 0x9e5   :  { %3744 = vmatmul.mubr.f32.vlgmr.msra.gmra.mrb[26].mxu1 %v3677_v63  ;;  %3815 = vmatmul.mubr.f32.vlgmr.msra.gmra.mrb[28].mxu0 %v3677_v63 }
 0x9e6   :  { %5665 = vmatpush1.bf16.msra.mxu1 %v6846_v27  ;;  %5697 = vmatpush1.bf16.msra.mxu0 %v6848_v32 }
 0x9e7   :  { %5667 = vmatprep.subr.bf16.mxu1 %v6850_v34  ;;  %5699 = vmatprep.subr.bf16.mxu0 %v6852_v35 }
 0x9e8   :  { %3931 = vmatprep.mubr.f32.mxu1 %v6404_v1  ;;  %4002 = vmatprep.mubr.f32.mxu0 %v6404_v1 }
 0x9ea   :  { %5669 = vmatpush1.bf16.msra.mxu1 %v6856_v43  ;;  %5701 = vmatpush1.bf16.msra.mxu0 %v6858_v56 }
 0x9eb   :  { %5671 = vmatprep.subr.bf16.mxu1 %v6862_v47  ;;  %5703 = vmatprep.subr.bf16.mxu0 %v6864_v44 }
 0x9ee   :  { %5673 = vmatpush1.bf16.msra.mxu1 %v6870_v17  ;;  %5705 = vmatpush1.bf16.msra.mxu0 %v6872_v60 }
 0x9ef   :  { %5675 = vmatprep.subr.bf16.mxu1 %v6876_v0  ;;  %5707 = vmatprep.subr.bf16.mxu0 %v6878_v2 }
 0x9f2   :  { %5677 = vmatpush1.bf16.msra.mxu1 %v6882_v6  ;;  %5709 = vmatpush1.bf16.msra.mxu0 %v6884_v7 }
 0x9f3   :  { %5679 = vmatprep.subr.bf16.mxu1 %v6888_v12  ;;  %5711 = vmatprep.subr.bf16.mxu0 %v6890_v13 }
 0x9f6   :  { %5681 = vmatpush1.bf16.msra.mxu1 %v6894_v23  ;;  %5713 = vmatpush1.bf16.msra.mxu0 %v6896_v26 }
 0x9f7   :  { %5683 = vmatprep.subr.bf16.mxu1 %v6900_v36  ;;  %5715 = vmatprep.subr.bf16.mxu0 %v6902_v62 }
 0x9fa   :  { %5685 = vmatpush1.bf16.msra.mxu1 %v6906_v38  ;;  %5717 = vmatpush1.bf16.msra.mxu0 %v6908_v39 }
 0x9fb   :  { %5687 = vmatprep.subr.bf16.mxu1 %v6912_v45  ;;  %5719 = vmatprep.subr.bf16.mxu0 %v6914_v46 }
 0x9fe   :  { %5689 = vmatpush1.bf16.msra.mxu1 %v6918_v61  ;;  %5721 = vmatpush1.bf16.msra.mxu0 %v6920_v48 }
 0x9ff   :  { %5691 = vmatprep.subr.bf16.mxu1 %v6924_v51  ;;  %5723 = vmatprep.subr.bf16.mxu0 %v6926_v3 }
 0xa02   :  { %5693 = vmatpush1.bf16.msra.mxu1 %v6930_v8  ;;  %5725 = vmatpush1.bf16.msra.mxu0 %v6932_v49 }
 0xa03   :  { %5727 = vmatprep.subr.bf16.mxu1 %v6840_v9  ;;  %5759 = vmatprep.subr.bf16.mxu0 %v6842_v10 }
 0xab8   :  { %v3745_v14 = vpop.f32.mrb[26].mxu1  ;;  %v3816_v37 = vpop.f32.mrb[28].mxu0 }
 0xab9   :  { %v3825_v41 = vrot.slane %v3745_v14, 3  ;;  %v3747_v50 = vpop.f32.mrb[27].mxu1  ;;  %v3818_v54 = vpop.f32.mrb[29].mxu0  ;;  %v3827_v9 = vrot.slane %v3816_v37, 3 }
 0xaba   :  { %v3826_v55 = vrot.slane %v3747_v50, 3  ;;  %v3828_v4 = vrot.slane %v3818_v54, 3 }
 0xabb   :  { %v3833_v25 = vadd.f32 %v3825_v41, %v6979_v30  ;;  %v3835_v10 = vadd.f32 %v3827_v9, %v6990_v59  ;;  %v4244_v9 = vld [vmem:[#allocation24 + $0x20] sm:$0xff] }
 0xabc   :  { %v3834_v28 = vadd.f32 %v3826_v55, %v6981_v33  ;;  %v3836_v52 = vadd.f32 %v3828_v4, %v6986_v22  ;;  %v4243_v4 = vld [vmem:[#allocation24 + $0x18] sm:$0xff] }
 0xabd   :  { %v4417_v57 = vmul.f32 -1.442695, %v3833_v25  ;;  %v4240_v25 = vld [vmem:[#allocation24] sm:$0xff] }
 0xabe   :  { %v4418_v53 = vmul.f32 -1.442695, %v3834_v28  ;;  %v4419_v31 = vmul.f32 -1.442695, %v3836_v52  ;;  %v4241_v28 = vld [vmem:[#allocation24 + $0x8] sm:$0xff] }
 0xabf   :  { %5937 = vpow2.f32 %v4417_v57  ;;  %v5791_v57 = vpack.c.bf16 %v4241_v28, %v4240_v25 }
 0xac0   :  { %5939 = vpow2.f32 %v4418_v53  ;;  %v4242_v53 = vld [vmem:[#allocation24 + $0x10] sm:$0xff] }
 0xac1   :  { %5941 = vpow2.f32 %v4419_v31  ;;  %v5794_v52 = vpack.c.bf16 %v4243_v4, %v4242_v53  ;;  %v4245_v31 = vld [vmem:[#allocation24 + $0x28] sm:$0xff] }
 0xac2   :  { %5943 = vtanh.f32 %v3835_v10  ;;  %v5797_v10 = vpack.c.bf16 %v4245_v31, %v4244_v9 }
 0xac9   :  { %v5938_v42 = vpop.eup %5937 }
 0xaca   :  { %v5940_v5 = vpop.eup %5939  ;;  %v3840_v16 = vadd.f32 1.0, %v5938_v42  ;;  %v4246_v42 = vld [vmem:[#allocation24 + $0x30] sm:$0xff] }
 0xacb   :  { %v3846_v29 = vadd.f32 1.0, %v5940_v5  ;;  %v5942_v19 = vpop.eup %5941 }
 0xacc   :  { %5945 = vrcp.f32 %v3840_v16  ;;  %v5944_v18 = vpop.eup %5943  ;;  %v3853_v15 = vadd.f32 1.0, %v5942_v19  ;;  %v4248_v16 = vld [vmem:[#allocation24 + $0x40] sm:$0xff]  ;;  %v4250_v19 = vld [vmem:[#allocation24 + $0x50] sm:$0xff] }
 0xacd   :  { %5947 = vrcp.f32 %v3846_v29  ;;  %v4249_v29 = vld [vmem:[#allocation24 + $0x48] sm:$0xff] }
 0xace   :  { %5949 = vrcp.f32 %v3853_v15 }
 0xad6   :  { %v5946_v11 = vpop.eup %5945 }
 0xad7   :  { %v5948_v24 = vpop.eup %5947  ;;  %v3860_v40 = vmul.f32 %v5946_v11, %v5944_v18  ;;  %v5803_v18 = vpack.c.bf16 %v4249_v29, %v4248_v16  ;;  %v4251_v11 = vld [vmem:[#allocation24 + $0x58] sm:$0xff] }
 0xad8   :  { %v3859_v63 = vmul.f32 %v5948_v24, %v3857_v20  ;;  %v5950_v37 = vpop.eup %5949  ;;  %v5806_v20 = vpack.c.bf16 %v4251_v11, %v4250_v19  ;;  %v4252_v24 = vld [vmem:[#allocation24 + $0x60] sm:$0xff] }
 0xada   :  { %v7206_v14 = vadd.f32 %v3860_v40, %v3859_v63  ;;  %v4253_v40 = vld [vmem:[#allocation24 + $0x68] sm:$0xff]  ;;  %v4254_v63 = vld [vmem:[#allocation24 + $0x70] sm:$0xff] }
 0xadb   :  { %v5809_v15 = vpack.c.bf16 %v4253_v40, %v4252_v24 }
 0xadc   :  { %5951 = vtanh.f32 %v7206_v14 }
 0xae6   :  { %v5952_v41 = vpop.eup %5951 }
 0xae7   :  { %v3863_v50 = vmul.f32 %v5952_v41, %v5950_v37 }
 0xae9   :  { %v3865_v54 = vrot.slane %v3863_v50, 5 }
 0xaeb   :  { %3932 = vmatmul.mubr.f32.vlgmr.msra.gmra.mrb[28].mxu1 %v3865_v54  ;;  %4003 = vmatmul.mubr.f32.vlgmr.msra.gmra.mrb[30].mxu0 %v3865_v54 }
 0xaec   :  { %5729 = vmatpush1.bf16.msra.mxu1 %v6846_v27  ;;  %5761 = vmatpush1.bf16.msra.mxu0 %v6848_v32 }
 0xaed   :  { %5731 = vmatprep.subr.bf16.mxu1 %v6850_v34  ;;  %5763 = vmatprep.subr.bf16.mxu0 %v6852_v35 }
 0xaee   :  { %4119 = vmatprep.mubr.f32.mxu1 %v6404_v1  ;;  %4190 = vmatprep.mubr.f32.mxu0 %v6404_v1 }
 0xaf0   :  { %5733 = vmatpush1.bf16.msra.mxu1 %v6856_v43  ;;  %5765 = vmatpush1.bf16.msra.mxu0 %v6858_v56 }
 0xaf1   :  { %5735 = vmatprep.subr.bf16.mxu1 %v6862_v47  ;;  %5767 = vmatprep.subr.bf16.mxu0 %v6864_v44 }
 0xaf4   :  { %5737 = vmatpush1.bf16.msra.mxu1 %v6870_v17  ;;  %5769 = vmatpush1.bf16.msra.mxu0 %v6872_v60 }
 0xaf5   :  { %5739 = vmatprep.subr.bf16.mxu1 %v6876_v0  ;;  %5771 = vmatprep.subr.bf16.mxu0 %v6878_v2 }
 0xaf8   :  { %5741 = vmatpush1.bf16.msra.mxu1 %v6882_v6  ;;  %5773 = vmatpush1.bf16.msra.mxu0 %v6884_v7 }
 0xaf9   :  { %5743 = vmatprep.subr.bf16.mxu1 %v6888_v12  ;;  %5775 = vmatprep.subr.bf16.mxu0 %v6890_v13 }
 0xafc   :  { %5745 = vmatpush1.bf16.msra.mxu1 %v6894_v23  ;;  %5777 = vmatpush1.bf16.msra.mxu0 %v6896_v26 }
 0xafd   :  { %5747 = vmatprep.subr.bf16.mxu1 %v6900_v36  ;;  %5779 = vmatprep.subr.bf16.mxu0 %v6902_v62 }
 0xb00   :  { %5749 = vmatpush1.bf16.msra.mxu1 %v6906_v38  ;;  %5781 = vmatpush1.bf16.msra.mxu0 %v6908_v39 }
 0xb01   :  { %5751 = vmatprep.subr.bf16.mxu1 %v6912_v45  ;;  %5783 = vmatprep.subr.bf16.mxu0 %v6914_v46  ;;  %v4045_v45 = vrot.slane %v7206_v14, 7  ;;  %v4255_v14 = vld [vmem:[#allocation24 + $0x78] sm:$0xff] }
 0xb02   :  { %v5812_v37 = vpack.c.bf16 %v4255_v14, %v4254_v63 }
 0xb04   :  { %5753 = vmatpush1.bf16.msra.mxu1 %v6918_v61  ;;  %5785 = vmatpush1.bf16.msra.mxu0 %v6920_v48 }
 0xb05   :  { %5755 = vmatprep.subr.bf16.mxu1 %v6924_v51  ;;  %5787 = vmatprep.subr.bf16.mxu0 %v6926_v3 }
 0xb08   :  { %5757 = vmatpush1.bf16.msra.mxu1 %v6930_v8  ;;  %5789 = vmatpush1.bf16.msra.mxu0 %v6932_v49 }
 0xb09   :  { %5790 = vmatprep.subr.bf16.mxu1 %v6406_v58 }
 0xbbe   :  { %v3933_v27 = vpop.f32.mrb[28].mxu1  ;;  %v4004_v32 = vpop.f32.mrb[30].mxu0 }
 0xbbf   :  { %v4013_v34 = vrot.slane %v3933_v27, 2  ;;  %v3935_v35 = vpop.f32.mrb[29].mxu1  ;;  %v4006_v43 = vpop.f32.mrb[31].mxu0  ;;  %v4015_v6 = vrot.slane %v4004_v32, 2 }
 0xbc0   :  { %v4014_v56 = vrot.slane %v3935_v35, 2  ;;  %v4016_v0 = vrot.slane %v4006_v43, 2 }
 0xbc1   :  { %v4021_v47 = vadd.f32 %v4013_v34, %v6979_v30  ;;  %v4023_v12 = vadd.f32 %v4015_v6, %v6990_v59 }
 0xbc2   :  { %v4022_v44 = vadd.f32 %v4014_v56, %v6981_v33  ;;  %v4024_v2 = vadd.f32 %v4016_v0, %v6986_v22 }
 0xbc3   :  { %v4420_v17 = vmul.f32 -1.442695, %v4021_v47 }
 0xbc4   :  { %v4421_v60 = vmul.f32 -1.442695, %v4022_v44  ;;  %v4422_v7 = vmul.f32 -1.442695, %v4024_v2 }
 0xbc5   :  { %5953 = vpow2.f32 %v4420_v17 }
 0xbc6   :  { %5955 = vpow2.f32 %v4421_v60 }
 0xbc7   :  { %5957 = vpow2.f32 %v4422_v7 }
 0xbc8   :  { %5959 = vtanh.f32 %v4023_v12 }
 0xbcf   :  { %v5954_v13 = vpop.eup %5953 }
 0xbd0   :  { %v5956_v23 = vpop.eup %5955  ;;  %v4028_v26 = vadd.f32 1.0, %v5954_v13 }
 0xbd1   :  { %v4034_v36 = vadd.f32 1.0, %v5956_v23  ;;  %v5958_v62 = vpop.eup %5957 }
 0xbd2   :  { %5961 = vrcp.f32 %v4028_v26  ;;  %v5960_v38 = vpop.eup %5959  ;;  %v4041_v48 = vadd.f32 1.0, %v5958_v62 }
 0xbd3   :  { %5963 = vrcp.f32 %v4034_v36 }
 0xbd4   :  { %5965 = vrcp.f32 %v4041_v48 }
 0xbdc   :  { %v5962_v39 = vpop.eup %5961 }
 0xbdd   :  { %v5964_v46 = vpop.eup %5963  ;;  %v4048_v61 = vmul.f32 %v5962_v39, %v5960_v38 }
 0xbde   :  { %v4047_v51 = vmul.f32 %v5964_v46, %v4045_v45  ;;  %v5966_v8 = vpop.eup %5965 }
 0xbe0   :  { %v7247_v3 = vadd.f32 %v4048_v61, %v4047_v51 }
 0xbe2   :  { %5967 = vtanh.f32 %v7247_v3  ;;  %v4233_v23 = vrot.slane %v7247_v3, 7 }
 0xbec   :  { %v5968_v49 = vpop.eup %5967 }
 0xbed   :  { %v4051_v21 = vmul.f32 %v5968_v49, %v5966_v8 }
 0xbef   :  { %v4053_v55 = vrot.slane %v4051_v21, 6 }
 0xbf1   :  { %4120 = vmatmul.mubr.f32.vlgmr.msra.gmra.mrb[30].mxu1 %v4053_v55  ;;  %4191 = vmatmul.mubr.f32.vlgmr.msra.gmra.mrb[32].mxu0 %v4053_v55 }
 0xbf2   :  { %4533 = vmatprep.mubr.msk.f32.mxu1 %vm6405_vm2, %v6404_v1  ;;  %5792 = vmatpush3.bf16.msra.mxu1 %v5791_v57  ;;  %v4247_v1 = vld [vmem:[#allocation24 + $0x38] sm:$0xff] }
 0xbf3   :  { %5793 = vmatprep.subr.bf16.mxu1 %v6406_v58  ;;  %v5800_v5 = vpack.c.bf16 %v4247_v1, %v4246_v42 }
 0xbf6   :  { %5795 = vmatpush3.bf16.msra.mxu1 %v5794_v52 }
 0xbf7   :  { %5796 = vmatprep.subr.bf16.mxu1 %v6406_v58 }
 0xbfa   :  { %5798 = vmatpush3.bf16.msra.mxu1 %v5797_v10 }
 0xbfb   :  { %5799 = vmatprep.subr.bf16.mxu1 %v6406_v58 }
 0xbfe   :  { %5801 = vmatpush3.bf16.msra.mxu1 %v5800_v5 }
 0xbff   :  { %5802 = vmatprep.subr.bf16.mxu1 %v6406_v58 }
 0xc02   :  { %5804 = vmatpush3.bf16.msra.mxu1 %v5803_v18 }
 0xc03   :  { %5805 = vmatprep.subr.bf16.mxu1 %v6406_v58 }
 0xc06   :  { %5807 = vmatpush3.bf16.msra.mxu1 %v5806_v20 }
 0xc07   :  { %5808 = vmatprep.subr.bf16.mxu1 %v6406_v58 }
 0xc0a   :  { %5810 = vmatpush3.bf16.msra.mxu1 %v5809_v15 }
 0xc0b   :  { %5811 = vmatprep.subr.bf16.mxu1 %v6406_v58 }
 0xc0e   :  { %5813 = vmatpush3.bf16.msra.mxu1 %v5812_v37 }
 0xcc4   :  { %v4121_v41 = vpop.f32.mrb[30].mxu1  ;;  %v4192_v50 = vpop.f32.mrb[32].mxu0 }
 0xcc5   :  { %v4201_v54 = vrot.slane %v4121_v41, 1  ;;  %v4123_v27 = vpop.f32.mrb[31].mxu1  ;;  %v4194_v32 = vpop.f32.mrb[33].mxu0  ;;  %v4203_v60 = vrot.slane %v4192_v50, 1 }
 0xcc6   :  { %v4202_v34 = vrot.slane %v4123_v27, 1  ;;  %v4204_v44 = vrot.slane %v4194_v32, 1 }
 0xcc7   :  { %v4209_v35 = vadd.f32 %v4201_v54, %v6979_v30  ;;  %v4211_v0 = vadd.f32 %v4203_v60, %v6990_v59 }
 0xcc8   :  { %v4210_v43 = vadd.f32 %v4202_v34, %v6981_v33  ;;  %v4212_v17 = vadd.f32 %v4204_v44, %v6986_v22 }
 0xcc9   :  { %v4423_v56 = vmul.f32 -1.442695, %v4209_v35 }
 0xcca   :  { %v4424_v47 = vmul.f32 -1.442695, %v4210_v43  ;;  %v4425_v58 = vmul.f32 -1.442695, %v4212_v17 }
 0xccb   :  { %5969 = vpow2.f32 %v4423_v56 }
 0xccc   :  { %5971 = vpow2.f32 %v4424_v47 }
 0xccd   :  { %5973 = vpow2.f32 %v4425_v58 }
 0xcce   :  { %5975 = vtanh.f32 %v4211_v0 }
 0xcd5   :  { %v5970_v2 = vpop.eup %5969 }
 0xcd6   :  { %v5972_v6 = vpop.eup %5971  ;;  %v4216_v7 = vadd.f32 1.0, %v5970_v2 }
 0xcd7   :  { %v4222_v12 = vadd.f32 1.0, %v5972_v6  ;;  %v5974_v30 = vpop.eup %5973 }
 0xcd8   :  { %5977 = vrcp.f32 %v4216_v7  ;;  %v5976_v33 = vpop.eup %5975  ;;  %v4229_v22 = vadd.f32 1.0, %v5974_v30 }
 0xcd9   :  { %5979 = vrcp.f32 %v4222_v12 }
 0xcda   :  { %5981 = vrcp.f32 %v4229_v22 }
 0xce2   :  { %v5978_v13 = vpop.eup %5977 }
 0xce3   :  { %v5980_v26 = vpop.eup %5979  ;;  %v4236_v36 = vmul.f32 %v5978_v13, %v5976_v33 }
 0xce4   :  { %v4235_v62 = vmul.f32 %v5980_v26, %v4233_v23  ;;  %v5982_v59 = vpop.eup %5981 }
 0xce6   :  { %v4237_v38 = vadd.f32 %v4236_v36, %v4235_v62 }
 0xce8   :  { %5983 = vtanh.f32 %v4237_v38  ;;  %4340 = vst.msk [vmem:[#allocation29 - $0x7] sm:$0x80] %vm4338_vm4, %v4237_v38 }
 0xcf2   :  { %v5984_v39 = vpop.eup %5983 }
 0xcf3   :  { %v4239_v45 = vmul.f32 %v5984_v39, %v5982_v59 }
 0xcf5   :  { %v4258_v46 = vrot.slane %v4239_v45, 7  ;;  %4339 = vst.msk [vmem:[#allocation27 - $0x7] sm:$0x80] %vm4338_vm4, %v4239_v45 }
 0xcf7   :  { %4534 = vmatmul.mubr.f32.vlgmr.msra.gmra.mrb[32].mxu1 %v4258_v46 }
 0xcf8   :  { %6308 = shalt.err (!%p6305_p4)
}
 0xcf9   :  { %s6309_s29 = scalar_lea.hbm %s7319_s19, 16 }
 0xcfa   :  { %p6310_p5 = scmp.ne.s32.totalorder %s7319_s19, %s6309_s29  ;;  %p6313_p6 = scmp.lt.u32.totalorder %s6309_s29, %s7319_s19 }
 0xcfc   :  { %p6315_p7 = pnand %p6313_p6, %p6310_p5 }
 0xcfe   :  { %6318 = shalt.err (!%p6315_p7)
}
 0xcff   :  { %4360 = dma.vmem_to_hbm [thread:$0]  %s4358_s26, 16, %s7319_s19, [#allocation28]  }
 0xd00   :  { %s6408_s12 = smov [#allocation29]  }
 0xd01   :  { %s4367_s10 = sshll.u32 %s6408_s12, 4  ;;  %s4368_s10 = int_to_ptr.vmem [resolvable:$true] %s4367_s10 }
 0xd02   :  { %s6319_s25 = scalar_lea.vmem %s4368_s10, 16  ;;  %s6323_s2 = scalar_lea.vmem %s4368_s10, 32 }
 0xd03   :  { %p6320_p8 = scmp.ne.s32.totalorder %s4368_s10, %s6319_s25  ;;  %p6324_p9 = scmp.lt.s32.totalorder %s4368_s10, %s4368_s10 }
 0xd04   :  { %p6325_p10 = scmp.lt.s32.totalorder %s6323_s2, %s6319_s25 }
 0xd06   :  { %p6326_p11 = por %p6325_p10, %p6324_p9 }
 0xd08   :  { %p6327_p12 = pnand %p6326_p11, %p6320_p8 }
 0xd0a   :  { %6330 = shalt.err (!%p6327_p12)
}
 0xd0b   :  { %s6331_s16 = scalar_lea.hbm %s7320_s20, 16 }
 0xd0c   :  { %p6332_p13 = scmp.ne.s32.totalorder %s7320_s20, %s6331_s16  ;;  %p6335_p0 = scmp.lt.u32.totalorder %s6331_s16, %s7320_s20 }
 0xd0e   :  { %p6337_p1 = pnand %p6335_p0, %p6332_p13 }
 0xd10   :  { %6340 = shalt.err (!%p6337_p1)
}
 0xd11   :  { %4370 = dma.vmem_to_hbm [thread:$0]  %s4368_s10, 16, %s7320_s20, [#allocation28]   ;;  %v4256_v61 = vld [vmem:[#allocation2] sm:$0x1]  ;;  %vm4336_vm5 = vcmask 0  }
 0xd12   :  { %s6409_s21 = smov [#allocation26]  }
 0xd13   :  { %s4347_s17 = sshll.u32 %s6409_s21, 4  ;;  %s4348_s17 = int_to_ptr.vmem [resolvable:$true] %s4347_s17 }
 0xd14   :  { %s6341_s6 = scalar_lea.vmem %s4348_s17, 16  ;;  %s6345_s28 = scalar_lea.vmem %s4348_s17, 32 }
 0xd15   :  { %p6342_p2 = scmp.ne.s32.totalorder %s4348_s17, %s6341_s6  ;;  %p6346_p3 = scmp.lt.s32.totalorder %s4348_s17, %s4348_s17 }
 0xd16   :  { %p6347_p4 = scmp.lt.s32.totalorder %s6345_s28, %s6341_s6 }
 0xd18   :  { %p6348_p5 = por %p6347_p4, %p6346_p3 }
 0xd1a   :  { %p6349_p6 = pnand %p6348_p5, %p6342_p2 }
 0xdca   :  { %v4326_v48 = vpop.f32.mrb[32].mxu1 }
 0xdcb   :  { %v4327_v51 = vadd.f32 %v4326_v48, %v4256_v61  ;;  %v4535_v3 = vpop.f32.mrb[33].mxu1 }
 0xdcd   :  { %v4330_v8 = vsub.f32 %v4327_v51, %v4327_v51 }
 0xdcf   :  { %v4331_v49 = vmul.f32 1.442695, %v4330_v8 }
 0xdd1   :  { %5985 = vpow2.f32 %v4331_v49 }
 0xddb   :  { %v5986_v21 = vpop.eup %5985 }
 0xddc   :  { %5987 = vrcp.f32 %v5986_v21 }
 0xde6   :  { %v5988_v55 = vpop.eup %5987 }
 0xde7   :  { %v4335_v25 = vmul.f32 %v5988_v55, %v5986_v21 }
 0xde9   :  { %4337 = vst.msk [vmem:[#allocation26] sm:$0x1] %vm4336_vm5, %v4335_v25 }
 0xdea   :  { %6352 = shalt.err (!%p6349_p6)
}
 0xdeb   :  { %s6353_s9 = scalar_lea.hbm %s7318_s18, 16 }
 0xdec   :  { %p6354_p7 = scmp.ne.s32.totalorder %s7318_s18, %s6353_s9  ;;  %p6357_p8 = scmp.lt.u32.totalorder %s6353_s9, %s7318_s18 }
 0xdee   :  { %p6359_p9 = pnand %p6357_p8, %p6354_p7 }
 0xdf0   :  { %6362 = shalt.err (!%p6359_p9)
}
 0xdf1   :  { %4350 = dma.vmem_to_hbm [thread:$0]  %s4348_s17, 16, %s7318_s18, [#allocation5]  }
 0xdf2   :  { %6379 = dma.done.wait [#allocation5], 16  }
 0xdf3   :  { %6380 = vsyncadd [#allocation5], 4294967280 }
 0xdf4   :  { %6381 = dma.done.wait [#allocation28], 32  }
 0xdf5   :  { %6382 = vsyncadd [#allocation28], 4294967264 }
 0xdf6   :  { %4380 = vsyncpa [#allocation4], 1 }
 0xdf7   :  { %4381 = vsyncpa [#allocation7], 1 }
 0xdf8   :  { %4382 = vsyncpa [#allocation10], 1 }
 0xdf9   :  { %4383 = vsyncpa [#allocation13], 1 }
 0xdfa   :  { %4384 = vsyncpa [#allocation16], 1 }
 0xdfb   :  { %4385 = vsyncpa [#allocation19], 1 }
 0xdfc   :  { %4386 = vsyncpa [#allocation22], 1 }
 0xdfd   :  { %4387 = vsyncpa [#allocation25], 1 }
 0xdfe   :  { %4388 = vsyncpa [#allocation5], 1 }
 0xdff   :  { %4389 = vsyncpa [#allocation28], 1 }

</bundles_post_ra>
